<compile_context>
chip_gen: v7x
topology: tpu7x:2x2x1
jax: 0.10.0
libtpu: 0.0.40
codegen_flags: <defaults>
</compile_context>

<pallas_src>
import functools

import jax
import jax.numpy as jnp
from jax.experimental import pallas as pl
from jax.experimental.pallas import tpu as pltpu


# ---------------------------------------------------------------------------
# Kernel
# ---------------------------------------------------------------------------
def _layer_norm(x, gamma, beta, eps=1e-5):
    mu = jnp.mean(x, axis=-1, keepdims=True)
    var = jnp.mean((x - mu) ** 2, axis=-1, keepdims=True)
    return (x - mu) * jax.lax.rsqrt(var + eps) * gamma + beta


def simple_artspeech_kernel(
    tok_ref,                      # (TILE_N, 1) int32 token ids
    table_ref,                    # (vocab_pad, embed_pad) embedding table
    w1_ref, b1_ref,               # shared Linear(embed_pad -> hidden)
    g1_ref, be1_ref,              # LayerNorm(hidden)            (n_art, 1, H)
    wa_ref, ba_ref,               # Linear(hidden -> inner)      (n_art, H, I)
    g2_ref, be2_ref,              # LayerNorm(inner)             (n_art, 1, I)
    wb_ref, bb_ref,               # Linear(inner -> inner)       (n_art, I, I)
    g3_ref, be3_ref,              # LayerNorm(inner)             (n_art, 1, I)
    wxy_ref, bxy_ref,             # fused x|y head               (n_art, I, out_pad)
    out_ref,                      # (TILE_N, n_art * out_pad)   token-major
    *, n_art, out_pad, vocab_pad, matmul_dtype,
):
    cast = lambda t: t.astype(matmul_dtype)
    tile_n = tok_ref.shape[0]

    # Embedding lookup as an exact one-hot row selection on the MXU.
    tok = tok_ref[...]                                           # (T, 1) int32
    lane = jax.lax.broadcasted_iota(jnp.int32, (tile_n, vocab_pad), 1)
    onehot = (lane == tok).astype(matmul_dtype)                  # (T, vocab_pad)
    emb = jnp.dot(onehot, cast(table_ref[...]),
                  preferred_element_type=jnp.float32)            # (T, embed_pad)

    # Shared trunk, computed ONCE per token tile:
    # Linear(embed -> hidden) + ReLU (dropout p=0 is identity).
    h = jnp.dot(cast(emb), cast(w1_ref[...]),
                preferred_element_type=jnp.float32)
    h = jnp.maximum(h + b1_ref[...], 0.0)                        # (T, hidden)

    # Per-articulator predictors (static unroll over the small n_art).
    for a in range(n_art):
        z = _layer_norm(h, g1_ref[a], be1_ref[a])
        z = jnp.dot(cast(z), cast(wa_ref[a]),
                    preferred_element_type=jnp.float32) + ba_ref[a]
        z = jnp.maximum(z, 0.0)
        z = _layer_norm(z, g2_ref[a], be2_ref[a])
        z = jnp.dot(cast(z), cast(wb_ref[a]),
                    preferred_element_type=jnp.float32) + bb_ref[a]
        z = jnp.maximum(z, 0.0)
        z = _layer_norm(z, g3_ref[a], be3_ref[a])

        # Fused x|y coordinate head (single lane-padded matmul) + sigmoid.
        xy = jnp.dot(cast(z), cast(wxy_ref[a]),
                     preferred_element_type=jnp.float32) + bxy_ref[a]
        out_ref[:, a * out_pad:(a + 1) * out_pad] = \
            jax.nn.sigmoid(xy).astype(out_ref.dtype)


# ---------------------------------------------------------------------------
# Wrapper
# ---------------------------------------------------------------------------
def simple_artspeech_forward(x_tokens, lengths, params, *, tile_n=256,
                             matmul_dtype=jnp.float32):
    """x_tokens: (bs, seq_len) int32.  `lengths` is accepted for API parity but,
    exactly as in the PyTorch forward, it does not affect the computation.
    Set matmul_dtype=jnp.bfloat16 on v6e/v7x for peak MXU throughput (relax
    numerical tolerance to ~1e-2)."""
    del lengths  # unused by the reference forward pass

    bs, seq_len = x_tokens.shape
    table = params["embedding"].astype(jnp.float32)              # (vocab, embed)
    vocab, embed_dim = table.shape
    hidden = params["w1"].shape[1]
    n_art = params["wa"].shape[0]
    inner = params["wa"].shape[-1]                               # 256
    ns = params["wx"].shape[-1]

    # Lane padding for MXU / store efficiency.
    vocab_pad = pl.cdiv(vocab, 128) * 128
    embed_pad = pl.cdiv(embed_dim, 128) * 128
    out_dim = 2 * ns
    out_pad = pl.cdiv(out_dim, 128) * 128

    # Zero-padded embedding table + trunk weight (zero rows/cols are exact).
    table_p = jnp.pad(table, ((0, vocab_pad - vocab), (0, embed_pad - embed_dim)))
    w1 = jnp.pad(params["w1"].astype(jnp.float32),
                 ((0, embed_pad - embed_dim), (0, 0)))

    # Fused + lane-padded coordinate heads: [wx | wy] -> (n_art, inner, out_pad).
    wxy = jnp.concatenate([params["wx"], params["wy"]], axis=-1)
    bxy = jnp.concatenate([params["bx"], params["by"]], axis=-1)
    if out_pad != out_dim:
        wxy = jnp.pad(wxy, ((0, 0), (0, 0), (0, out_pad - out_dim)))
        bxy = jnp.pad(bxy, ((0, 0), (0, 0), (0, out_pad - out_dim)))

    # Token tiling: clamp the tile to the (8-aligned) problem size so small
    # batches do not pay for a full default tile of padded compute.
    n_tok = bs * seq_len
    tile_n = max(8, min(tile_n, pl.cdiv(n_tok, 8) * 8))
    n_pad = pl.cdiv(n_tok, tile_n) * tile_n
    tok = x_tokens.reshape(n_tok).astype(jnp.int32)
    if n_pad != n_tok:
        tok = jnp.pad(tok, (0, n_pad - n_tok))                   # padded ids -> 0
    tok = tok.reshape(n_pad, 1)
    n_tiles = n_pad // tile_n

    full = lambda shape: pl.BlockSpec(shape, lambda i: (0,) * len(shape))

    kernel = functools.partial(
        simple_artspeech_kernel,
        n_art=n_art, out_pad=out_pad, vocab_pad=vocab_pad,
        matmul_dtype=matmul_dtype)

    out = pl.pallas_call(
        kernel,
        out_shape=jax.ShapeDtypeStruct((n_pad, n_art * out_pad), jnp.float32),
        grid_spec=pltpu.PrefetchScalarGridSpec(
            num_scalar_prefetch=0,
            grid=(n_tiles,),
            in_specs=[
                pl.BlockSpec((tile_n, 1), lambda i: (i, 0)),                 # tokens
                full((vocab_pad, embed_pad)),                                # table
                full((embed_pad, hidden)), full((1, hidden)),                # w1/b1
                full((n_art, 1, hidden)), full((n_art, 1, hidden)),          # ln1
                full((n_art, hidden, inner)), full((n_art, 1, inner)),       # wa/ba
                full((n_art, 1, inner)), full((n_art, 1, inner)),            # ln2
                full((n_art, inner, inner)), full((n_art, 1, inner)),        # wb/bb
                full((n_art, 1, inner)), full((n_art, 1, inner)),            # ln3
                full((n_art, inner, out_pad)), full((n_art, 1, out_pad)),    # wxy/bxy
            ],
            out_specs=pl.BlockSpec((tile_n, n_art * out_pad),
                                   lambda i: (i, 0)),
        ),
        compiler_params=pltpu.CompilerParams(
            dimension_semantics=("parallel",)),
    )(
        tok, table_p, w1, params["b1"],
        params["ln1_g"], params["ln1_b"],
        params["wa"], params["ba"],
        params["ln2_g"], params["ln2_b"],
        params["wb"], params["bb"],
        params["ln3_g"], params["ln3_b"],
        wxy, bxy,
    )

    # Strip token + lane padding; output is already token-major (no transpose).
    out = out[:n_tok].reshape(n_tok, n_art, out_pad)[:, :, :out_dim]
    return out.reshape(bs, seq_len, n_art, 2, ns)


# ---------------------------------------------------------------------------
# Deterministic synthetic parameters
# ---------------------------------------------------------------------------
def make_params(key, vocab_size, n_articulators, embed_dim, hidden, num_samples):
    ks = iter(jax.random.split(key, 32))
    nrm = lambda shape, s=0.05: (s * jax.random.normal(next(ks), shape)).astype(jnp.float32)
    ones = lambda shape: jnp.ones(shape, jnp.float32)
    na = n_articulators
    return {
        "embedding": nrm((vocab_size, embed_dim), 0.5),
        "w1": nrm((embed_dim, hidden)), "b1": nrm((1, hidden)),
        "ln1_g": ones((na, 1, hidden)) + nrm((na, 1, hidden)),
        "ln1_b": nrm((na, 1, hidden)),
        "wa": nrm((na, hidden, 256)), "ba": nrm((na, 1, 256)),
        "ln2_g": ones((na, 1, 256)) + nrm((na, 1, 256)),
        "ln2_b": nrm((na, 1, 256)),
        "wb": nrm((na, 256, 256)), "bb": nrm((na, 1, 256)),
        "ln3_g": ones((na, 1, 256)) + nrm((na, 1, 256)),
        "ln3_b": nrm((na, 1, 256)),
        "wx": nrm((na, 256, num_samples)), "bx": nrm((na, 1, num_samples)),
        "wy": nrm((na, 256, num_samples)), "by": nrm((na, 1, num_samples)),
    }


# Pure-JAX reference (mirrors the PyTorch forward) for a correctness check.
def reference_forward(x_tokens, params):
    def ln(x, g, b, eps=1e-5):
        mu = x.mean(-1, keepdims=True)
        var = ((x - mu) ** 2).mean(-1, keepdims=True)
        return (x - mu) / jnp.sqrt(var + eps) * g + b

    emb = jnp.take(params["embedding"], x_tokens, axis=0)
    h = jnp.maximum(emb @ params["w1"] + params["b1"][0], 0.0)
    outs = []
    for a in range(params["wa"].shape[0]):
        z = ln(h, params["ln1_g"][a, 0], params["ln1_b"][a, 0])
        z = jnp.maximum(z @ params["wa"][a] + params["ba"][a, 0], 0.0)
        z = ln(z, params["ln2_g"][a, 0], params["ln2_b"][a, 0])
        z = jnp.maximum(z @ params["wb"][a] + params["bb"][a, 0], 0.0)
        z = ln(z, params["ln3_g"][a, 0], params["ln3_b"][a, 0])
        xp = z @ params["wx"][a] + params["bx"][a, 0]
        yp = z @ params["wy"][a] + params["by"][a, 0]
        outs.append(jnp.stack([xp, yp], axis=2))
    return jax.nn.sigmoid(jnp.stack(outs, axis=2))


if __name__ == "__main__":
    vocab_size, n_articulators = 40, 3
    embed_dim, hidden, num_samples = 64, 128, 50
    bs, seq_len = 2, 8

    key = jax.random.PRNGKey(0)
    k_tok, k_par = jax.random.split(key)
    x_tokens = jax.random.randint(k_tok, (bs, seq_len), 0, vocab_size, dtype=jnp.int32)
    lengths = [seq_len, seq_len - 2]  # unused by forward, API parity only
    params = make_params(k_par, vocab_size, n_articulators, embed_dim, hidden, num_samples)

    out = simple_artspeech_forward(x_tokens, lengths, params)
    out = jax.block_until_ready(out)

    ref = reference_forward(x_tokens, params)
    assert out.shape == (bs, seq_len, n_articulators, 2, num_samples), out.shape
    assert jnp.allclose(out, ref, atol=2e-5, rtol=1e-5), float(jnp.abs(out - ref).max())
    print("KERNEL_OK")
</pallas_src>

<mosaic_0001>
module attributes {stable_mosaic.version = 11 : i64} {
  func.func @simple_artspeech_kernel(%arg0: i32, %arg1: memref<16x1xi32, #tpu.memory_space<vmem>>, %arg2: memref<128x128xf32, #tpu.memory_space<vmem>>, %arg3: memref<128x128xf32, #tpu.memory_space<vmem>>, %arg4: memref<1x128xf32, #tpu.memory_space<vmem>>, %arg5: memref<3x1x128xf32, #tpu.memory_space<vmem>>, %arg6: memref<3x1x128xf32, #tpu.memory_space<vmem>>, %arg7: memref<3x128x256xf32, #tpu.memory_space<vmem>>, %arg8: memref<3x1x256xf32, #tpu.memory_space<vmem>>, %arg9: memref<3x1x256xf32, #tpu.memory_space<vmem>>, %arg10: memref<3x1x256xf32, #tpu.memory_space<vmem>>, %arg11: memref<3x256x256xf32, #tpu.memory_space<vmem>>, %arg12: memref<3x1x256xf32, #tpu.memory_space<vmem>>, %arg13: memref<3x1x256xf32, #tpu.memory_space<vmem>>, %arg14: memref<3x1x256xf32, #tpu.memory_space<vmem>>, %arg15: memref<3x256x128xf32, #tpu.memory_space<vmem>>, %arg16: memref<3x1x128xf32, #tpu.memory_space<vmem>>, %arg17: memref<16x384xf32, #tpu.memory_space<vmem>>) attributes {dimension_semantics = [#tpu.dimension_semantics<parallel>], iteration_bounds = array<i64: 1>, scalar_prefetch = 0 : i64, scratch_operands = 0 : i64, tpu.core_type = #tpu.core_type<tc>, window_params = [{transform_indices = @transform_0, window_bounds = array<i64: 16, 1>}, {pipeline_mode = #tpu.pipeline_mode<synchronous>, transform_indices = @transform_1, window_bounds = array<i64: 128, 128>}, {pipeline_mode = #tpu.pipeline_mode<synchronous>, transform_indices = @transform_2, window_bounds = array<i64: 128, 128>}, {pipeline_mode = #tpu.pipeline_mode<synchronous>, transform_indices = @transform_3, window_bounds = array<i64: 1, 128>}, {pipeline_mode = #tpu.pipeline_mode<synchronous>, transform_indices = @transform_4, window_bounds = array<i64: 3, 1, 128>}, {pipeline_mode = #tpu.pipeline_mode<synchronous>, transform_indices = @transform_5, window_bounds = array<i64: 3, 1, 128>}, {pipeline_mode = #tpu.pipeline_mode<synchronous>, transform_indices = @transform_6, window_bounds = array<i64: 3, 128, 256>}, {pipeline_mode = #tpu.pipeline_mode<synchronous>, transform_indices = @transform_7, window_bounds = array<i64: 3, 1, 256>}, {pipeline_mode = #tpu.pipeline_mode<synchronous>, transform_indices = @transform_8, window_bounds = array<i64: 3, 1, 256>}, {pipeline_mode = #tpu.pipeline_mode<synchronous>, transform_indices = @transform_9, window_bounds = array<i64: 3, 1, 256>}, {pipeline_mode = #tpu.pipeline_mode<synchronous>, transform_indices = @transform_10, window_bounds = array<i64: 3, 256, 256>}, {pipeline_mode = #tpu.pipeline_mode<synchronous>, transform_indices = @transform_11, window_bounds = array<i64: 3, 1, 256>}, {pipeline_mode = #tpu.pipeline_mode<synchronous>, transform_indices = @transform_12, window_bounds = array<i64: 3, 1, 256>}, {pipeline_mode = #tpu.pipeline_mode<synchronous>, transform_indices = @transform_13, window_bounds = array<i64: 3, 1, 256>}, {pipeline_mode = #tpu.pipeline_mode<synchronous>, transform_indices = @transform_14, window_bounds = array<i64: 3, 256, 128>}, {pipeline_mode = #tpu.pipeline_mode<synchronous>, transform_indices = @transform_15, window_bounds = array<i64: 3, 1, 128>}, {transform_indices = @transform_16, window_bounds = array<i64: 16, 384>}]} {
    %c0 = arith.constant 0 : index
    %c0_0 = arith.constant 0 : index
    %0 = vector.load %arg1[%c0, %c0_0] : memref<16x1xi32, #tpu.memory_space<vmem>>, vector<16x1xi32>
    %1 = tpu.iota {dimensions = array<i32: 1>} : vector<16x128xi32>
    %2 = vector.broadcast %0 : vector<16x1xi32> to vector<16x128xi32>
    %3 = arith.cmpi eq, %1, %2 : vector<16x128xi32>
    %4 = arith.extui %3 : vector<16x128xi1> to vector<16x128xi32>
    %5 = arith.sitofp %4 : vector<16x128xi32> to vector<16x128xf32>
    %c0_1 = arith.constant 0 : index
    %c0_2 = arith.constant 0 : index
    %6 = vector.load %arg2[%c0_1, %c0_2] : memref<128x128xf32, #tpu.memory_space<vmem>>, vector<128x128xf32>
    %cst = arith.constant dense<0.000000e+00> : vector<16x128xf32>
    %7 = tpu.matmul %5, %6, %cst {dimension_numbers = #tpu.dot_dimension_numbers<[1], [0], [0], [1], [0, 0, 1, 1], [], []>} : vector<16x128xf32>, vector<128x128xf32>, vector<16x128xf32> -> vector<16x128xf32>
    %c0_3 = arith.constant 0 : index
    %c0_4 = arith.constant 0 : index
    %8 = vector.load %arg3[%c0_3, %c0_4] : memref<128x128xf32, #tpu.memory_space<vmem>>, vector<128x128xf32>
    %cst_5 = arith.constant dense<0.000000e+00> : vector<16x128xf32>
    %9 = tpu.matmul %7, %8, %cst_5 {dimension_numbers = #tpu.dot_dimension_numbers<[1], [0], [0], [1], [0, 0, 1, 1], [], []>} : vector<16x128xf32>, vector<128x128xf32>, vector<16x128xf32> -> vector<16x128xf32>
    %c0_6 = arith.constant 0 : index
    %c0_7 = arith.constant 0 : index
    %10 = vector.load %arg4[%c0_6, %c0_7] : memref<1x128xf32, #tpu.memory_space<vmem>>, vector<1x128xf32>
    %11 = vector.broadcast %10 : vector<1x128xf32> to vector<16x128xf32>
    %12 = arith.addf %9, %11 : vector<16x128xf32>
    %cst_8 = arith.constant 0.000000e+00 : f32
    %13 = vector.broadcast %cst_8 : f32 to vector<16x128xf32>
    %14 = arith.maximumf %12, %13 : vector<16x128xf32>
    %c0_9 = arith.constant 0 : index
    %c0_10 = arith.constant 0 : index
    %c0_11 = arith.constant 0 : index
    %15 = vector.load %arg5[%c0_9, %c0_10, %c0_11] : memref<3x1x128xf32, #tpu.memory_space<vmem>>, vector<1x1x128xf32>
    %16 = vector.shape_cast %15 : vector<1x1x128xf32> to vector<1x128xf32>
    %c0_12 = arith.constant 0 : index
    %c0_13 = arith.constant 0 : index
    %c0_14 = arith.constant 0 : index
    %17 = vector.load %arg6[%c0_12, %c0_13, %c0_14] : memref<3x1x128xf32, #tpu.memory_space<vmem>>, vector<1x1x128xf32>
    %18 = vector.shape_cast %17 : vector<1x1x128xf32> to vector<1x128xf32>
    %cst_15 = arith.constant dense<0.000000e+00> : vector<16xf32>
    %19 = vector.multi_reduction <add>, %14, %cst_15 [1] : vector<16x128xf32> to vector<16xf32>
    %20 = vector.shape_cast %19 : vector<16xf32> to vector<16x1xf32>
    %cst_16 = arith.constant 1.280000e+02 : f32
    %21 = vector.broadcast %cst_16 : f32 to vector<16x1xf32>
    %22 = arith.divf %20, %21 : vector<16x1xf32>
    %23 = vector.broadcast %22 : vector<16x1xf32> to vector<16x128xf32>
    %24 = arith.subf %14, %23 : vector<16x128xf32>
    %25 = arith.mulf %24, %24 : vector<16x128xf32>
    %cst_17 = arith.constant dense<0.000000e+00> : vector<16xf32>
    %26 = vector.multi_reduction <add>, %25, %cst_17 [1] : vector<16x128xf32> to vector<16xf32>
    %27 = vector.shape_cast %26 : vector<16xf32> to vector<16x1xf32>
    %cst_18 = arith.constant 1.280000e+02 : f32
    %28 = vector.broadcast %cst_18 : f32 to vector<16x1xf32>
    %29 = arith.divf %27, %28 : vector<16x1xf32>
    %30 = vector.broadcast %22 : vector<16x1xf32> to vector<16x128xf32>
    %31 = arith.subf %14, %30 : vector<16x128xf32>
    %cst_19 = arith.constant 9.99999974E-6 : f32
    %32 = vector.broadcast %cst_19 : f32 to vector<16x1xf32>
    %33 = arith.addf %29, %32 : vector<16x1xf32>
    %34 = math.rsqrt %33 : vector<16x1xf32>
    %35 = vector.broadcast %34 : vector<16x1xf32> to vector<16x128xf32>
    %36 = arith.mulf %31, %35 : vector<16x128xf32>
    %37 = vector.broadcast %16 : vector<1x128xf32> to vector<16x128xf32>
    %38 = arith.mulf %36, %37 : vector<16x128xf32>
    %39 = vector.broadcast %18 : vector<1x128xf32> to vector<16x128xf32>
    %40 = arith.addf %38, %39 : vector<16x128xf32>
    %c0_20 = arith.constant 0 : index
    %c0_21 = arith.constant 0 : index
    %c0_22 = arith.constant 0 : index
    %41 = vector.load %arg7[%c0_20, %c0_21, %c0_22] : memref<3x128x256xf32, #tpu.memory_space<vmem>>, vector<1x128x256xf32>
    %42 = vector.shape_cast %41 : vector<1x128x256xf32> to vector<128x256xf32>
    %cst_23 = arith.constant dense<0.000000e+00> : vector<16x256xf32>
    %43 = tpu.matmul %40, %42, %cst_23 {dimension_numbers = #tpu.dot_dimension_numbers<[1], [0], [0], [1], [0, 0, 1, 1], [], []>} : vector<16x128xf32>, vector<128x256xf32>, vector<16x256xf32> -> vector<16x256xf32>
    %c0_24 = arith.constant 0 : index
    %c0_25 = arith.constant 0 : index
    %c0_26 = arith.constant 0 : index
    %44 = vector.load %arg8[%c0_24, %c0_25, %c0_26] : memref<3x1x256xf32, #tpu.memory_space<vmem>>, vector<1x1x256xf32>
    %45 = vector.shape_cast %44 : vector<1x1x256xf32> to vector<1x256xf32>
    %46 = vector.broadcast %45 : vector<1x256xf32> to vector<16x256xf32>
    %47 = arith.addf %43, %46 : vector<16x256xf32>
    %cst_27 = arith.constant 0.000000e+00 : f32
    %48 = vector.broadcast %cst_27 : f32 to vector<16x256xf32>
    %49 = arith.maximumf %47, %48 : vector<16x256xf32>
    %c0_28 = arith.constant 0 : index
    %c0_29 = arith.constant 0 : index
    %c0_30 = arith.constant 0 : index
    %50 = vector.load %arg9[%c0_28, %c0_29, %c0_30] : memref<3x1x256xf32, #tpu.memory_space<vmem>>, vector<1x1x256xf32>
    %51 = vector.shape_cast %50 : vector<1x1x256xf32> to vector<1x256xf32>
    %c0_31 = arith.constant 0 : index
    %c0_32 = arith.constant 0 : index
    %c0_33 = arith.constant 0 : index
    %52 = vector.load %arg10[%c0_31, %c0_32, %c0_33] : memref<3x1x256xf32, #tpu.memory_space<vmem>>, vector<1x1x256xf32>
    %53 = vector.shape_cast %52 : vector<1x1x256xf32> to vector<1x256xf32>
    %cst_34 = arith.constant dense<0.000000e+00> : vector<16xf32>
    %54 = vector.multi_reduction <add>, %49, %cst_34 [1] : vector<16x256xf32> to vector<16xf32>
    %55 = vector.shape_cast %54 : vector<16xf32> to vector<16x1xf32>
    %cst_35 = arith.constant 2.560000e+02 : f32
    %56 = vector.broadcast %cst_35 : f32 to vector<16x1xf32>
    %57 = arith.divf %55, %56 : vector<16x1xf32>
    %58 = vector.broadcast %57 : vector<16x1xf32> to vector<16x256xf32>
    %59 = arith.subf %49, %58 : vector<16x256xf32>
    %60 = arith.mulf %59, %59 : vector<16x256xf32>
    %cst_36 = arith.constant dense<0.000000e+00> : vector<16xf32>
    %61 = vector.multi_reduction <add>, %60, %cst_36 [1] : vector<16x256xf32> to vector<16xf32>
    %62 = vector.shape_cast %61 : vector<16xf32> to vector<16x1xf32>
    %cst_37 = arith.constant 2.560000e+02 : f32
    %63 = vector.broadcast %cst_37 : f32 to vector<16x1xf32>
    %64 = arith.divf %62, %63 : vector<16x1xf32>
    %65 = vector.broadcast %57 : vector<16x1xf32> to vector<16x256xf32>
    %66 = arith.subf %49, %65 : vector<16x256xf32>
    %cst_38 = arith.constant 9.99999974E-6 : f32
    %67 = vector.broadcast %cst_38 : f32 to vector<16x1xf32>
    %68 = arith.addf %64, %67 : vector<16x1xf32>
    %69 = math.rsqrt %68 : vector<16x1xf32>
    %70 = vector.broadcast %69 : vector<16x1xf32> to vector<16x256xf32>
    %71 = arith.mulf %66, %70 : vector<16x256xf32>
    %72 = vector.broadcast %51 : vector<1x256xf32> to vector<16x256xf32>
    %73 = arith.mulf %71, %72 : vector<16x256xf32>
    %74 = vector.broadcast %53 : vector<1x256xf32> to vector<16x256xf32>
    %75 = arith.addf %73, %74 : vector<16x256xf32>
    %c0_39 = arith.constant 0 : index
    %c0_40 = arith.constant 0 : index
    %c0_41 = arith.constant 0 : index
    %76 = vector.load %arg11[%c0_39, %c0_40, %c0_41] : memref<3x256x256xf32, #tpu.memory_space<vmem>>, vector<1x256x256xf32>
    %77 = vector.shape_cast %76 : vector<1x256x256xf32> to vector<256x256xf32>
    %cst_42 = arith.constant dense<0.000000e+00> : vector<16x256xf32>
    %78 = tpu.matmul %75, %77, %cst_42 {dimension_numbers = #tpu.dot_dimension_numbers<[1], [0], [0], [1], [0, 0, 1, 1], [], []>} : vector<16x256xf32>, vector<256x256xf32>, vector<16x256xf32> -> vector<16x256xf32>
    %c0_43 = arith.constant 0 : index
    %c0_44 = arith.constant 0 : index
    %c0_45 = arith.constant 0 : index
    %79 = vector.load %arg12[%c0_43, %c0_44, %c0_45] : memref<3x1x256xf32, #tpu.memory_space<vmem>>, vector<1x1x256xf32>
    %80 = vector.shape_cast %79 : vector<1x1x256xf32> to vector<1x256xf32>
    %81 = vector.broadcast %80 : vector<1x256xf32> to vector<16x256xf32>
    %82 = arith.addf %78, %81 : vector<16x256xf32>
    %cst_46 = arith.constant 0.000000e+00 : f32
    %83 = vector.broadcast %cst_46 : f32 to vector<16x256xf32>
    %84 = arith.maximumf %82, %83 : vector<16x256xf32>
    %c0_47 = arith.constant 0 : index
    %c0_48 = arith.constant 0 : index
    %c0_49 = arith.constant 0 : index
    %85 = vector.load %arg13[%c0_47, %c0_48, %c0_49] : memref<3x1x256xf32, #tpu.memory_space<vmem>>, vector<1x1x256xf32>
    %86 = vector.shape_cast %85 : vector<1x1x256xf32> to vector<1x256xf32>
    %c0_50 = arith.constant 0 : index
    %c0_51 = arith.constant 0 : index
    %c0_52 = arith.constant 0 : index
    %87 = vector.load %arg14[%c0_50, %c0_51, %c0_52] : memref<3x1x256xf32, #tpu.memory_space<vmem>>, vector<1x1x256xf32>
    %88 = vector.shape_cast %87 : vector<1x1x256xf32> to vector<1x256xf32>
    %cst_53 = arith.constant dense<0.000000e+00> : vector<16xf32>
    %89 = vector.multi_reduction <add>, %84, %cst_53 [1] : vector<16x256xf32> to vector<16xf32>
    %90 = vector.shape_cast %89 : vector<16xf32> to vector<16x1xf32>
    %cst_54 = arith.constant 2.560000e+02 : f32
    %91 = vector.broadcast %cst_54 : f32 to vector<16x1xf32>
    %92 = arith.divf %90, %91 : vector<16x1xf32>
    %93 = vector.broadcast %92 : vector<16x1xf32> to vector<16x256xf32>
    %94 = arith.subf %84, %93 : vector<16x256xf32>
    %95 = arith.mulf %94, %94 : vector<16x256xf32>
    %cst_55 = arith.constant dense<0.000000e+00> : vector<16xf32>
    %96 = vector.multi_reduction <add>, %95, %cst_55 [1] : vector<16x256xf32> to vector<16xf32>
    %97 = vector.shape_cast %96 : vector<16xf32> to vector<16x1xf32>
    %cst_56 = arith.constant 2.560000e+02 : f32
    %98 = vector.broadcast %cst_56 : f32 to vector<16x1xf32>
    %99 = arith.divf %97, %98 : vector<16x1xf32>
    %100 = vector.broadcast %92 : vector<16x1xf32> to vector<16x256xf32>
    %101 = arith.subf %84, %100 : vector<16x256xf32>
    %cst_57 = arith.constant 9.99999974E-6 : f32
    %102 = vector.broadcast %cst_57 : f32 to vector<16x1xf32>
    %103 = arith.addf %99, %102 : vector<16x1xf32>
    %104 = math.rsqrt %103 : vector<16x1xf32>
    %105 = vector.broadcast %104 : vector<16x1xf32> to vector<16x256xf32>
    %106 = arith.mulf %101, %105 : vector<16x256xf32>
    %107 = vector.broadcast %86 : vector<1x256xf32> to vector<16x256xf32>
    %108 = arith.mulf %106, %107 : vector<16x256xf32>
    %109 = vector.broadcast %88 : vector<1x256xf32> to vector<16x256xf32>
    %110 = arith.addf %108, %109 : vector<16x256xf32>
    %c0_58 = arith.constant 0 : index
    %c0_59 = arith.constant 0 : index
    %c0_60 = arith.constant 0 : index
    %111 = vector.load %arg15[%c0_58, %c0_59, %c0_60] : memref<3x256x128xf32, #tpu.memory_space<vmem>>, vector<1x256x128xf32>
    %112 = vector.shape_cast %111 : vector<1x256x128xf32> to vector<256x128xf32>
    %cst_61 = arith.constant dense<0.000000e+00> : vector<16x128xf32>
    %113 = tpu.matmul %110, %112, %cst_61 {dimension_numbers = #tpu.dot_dimension_numbers<[1], [0], [0], [1], [0, 0, 1, 1], [], []>} : vector<16x256xf32>, vector<256x128xf32>, vector<16x128xf32> -> vector<16x128xf32>
    %c0_62 = arith.constant 0 : index
    %c0_63 = arith.constant 0 : index
    %c0_64 = arith.constant 0 : index
    %114 = vector.load %arg16[%c0_62, %c0_63, %c0_64] : memref<3x1x128xf32, #tpu.memory_space<vmem>>, vector<1x1x128xf32>
    %115 = vector.shape_cast %114 : vector<1x1x128xf32> to vector<1x128xf32>
    %116 = vector.broadcast %115 : vector<1x128xf32> to vector<16x128xf32>
    %117 = arith.addf %113, %116 : vector<16x128xf32>
    %118 = arith.negf %117 : vector<16x128xf32>
    %119 = math.exp %118 : vector<16x128xf32>
    %cst_65 = arith.constant 1.000000e+00 : f32
    %120 = vector.broadcast %cst_65 : f32 to vector<16x128xf32>
    %121 = arith.addf %120, %119 : vector<16x128xf32>
    %122 = arith.divf %120, %121 : vector<16x128xf32>
    %c0_66 = arith.constant 0 : index
    %c0_67 = arith.constant 0 : index
    %123 = vector.load %arg17[%c0_66, %c0_67] : memref<16x384xf32, #tpu.memory_space<vmem>>, vector<16x128xf32>
    tpu.vector_store %arg17[%c0_66, %c0_67], %122 {strides = array<i32>} : memref<16x384xf32, #tpu.memory_space<vmem>>, vector<16x128xf32>,
    %c1 = arith.constant 1 : index
    %c0_68 = arith.constant 0 : index
    %c0_69 = arith.constant 0 : index
    %124 = vector.load %arg5[%c1, %c0_68, %c0_69] : memref<3x1x128xf32, #tpu.memory_space<vmem>>, vector<1x1x128xf32>
    %125 = vector.shape_cast %124 : vector<1x1x128xf32> to vector<1x128xf32>
    %c1_70 = arith.constant 1 : index
    %c0_71 = arith.constant 0 : index
    %c0_72 = arith.constant 0 : index
    %126 = vector.load %arg6[%c1_70, %c0_71, %c0_72] : memref<3x1x128xf32, #tpu.memory_space<vmem>>, vector<1x1x128xf32>
    %127 = vector.shape_cast %126 : vector<1x1x128xf32> to vector<1x128xf32>
    %cst_73 = arith.constant dense<0.000000e+00> : vector<16xf32>
    %128 = vector.multi_reduction <add>, %14, %cst_73 [1] : vector<16x128xf32> to vector<16xf32>
    %129 = vector.shape_cast %128 : vector<16xf32> to vector<16x1xf32>
    %cst_74 = arith.constant 1.280000e+02 : f32
    %130 = vector.broadcast %cst_74 : f32 to vector<16x1xf32>
    %131 = arith.divf %129, %130 : vector<16x1xf32>
    %132 = vector.broadcast %131 : vector<16x1xf32> to vector<16x128xf32>
    %133 = arith.subf %14, %132 : vector<16x128xf32>
    %134 = arith.mulf %133, %133 : vector<16x128xf32>
    %cst_75 = arith.constant dense<0.000000e+00> : vector<16xf32>
    %135 = vector.multi_reduction <add>, %134, %cst_75 [1] : vector<16x128xf32> to vector<16xf32>
    %136 = vector.shape_cast %135 : vector<16xf32> to vector<16x1xf32>
    %cst_76 = arith.constant 1.280000e+02 : f32
    %137 = vector.broadcast %cst_76 : f32 to vector<16x1xf32>
    %138 = arith.divf %136, %137 : vector<16x1xf32>
    %139 = vector.broadcast %131 : vector<16x1xf32> to vector<16x128xf32>
    %140 = arith.subf %14, %139 : vector<16x128xf32>
    %cst_77 = arith.constant 9.99999974E-6 : f32
    %141 = vector.broadcast %cst_77 : f32 to vector<16x1xf32>
    %142 = arith.addf %138, %141 : vector<16x1xf32>
    %143 = math.rsqrt %142 : vector<16x1xf32>
    %144 = vector.broadcast %143 : vector<16x1xf32> to vector<16x128xf32>
    %145 = arith.mulf %140, %144 : vector<16x128xf32>
    %146 = vector.broadcast %125 : vector<1x128xf32> to vector<16x128xf32>
    %147 = arith.mulf %145, %146 : vector<16x128xf32>
    %148 = vector.broadcast %127 : vector<1x128xf32> to vector<16x128xf32>
    %149 = arith.addf %147, %148 : vector<16x128xf32>
    %c1_78 = arith.constant 1 : index
    %c0_79 = arith.constant 0 : index
    %c0_80 = arith.constant 0 : index
    %150 = vector.load %arg7[%c1_78, %c0_79, %c0_80] : memref<3x128x256xf32, #tpu.memory_space<vmem>>, vector<1x128x256xf32>
    %151 = vector.shape_cast %150 : vector<1x128x256xf32> to vector<128x256xf32>
    %cst_81 = arith.constant dense<0.000000e+00> : vector<16x256xf32>
    %152 = tpu.matmul %149, %151, %cst_81 {dimension_numbers = #tpu.dot_dimension_numbers<[1], [0], [0], [1], [0, 0, 1, 1], [], []>} : vector<16x128xf32>, vector<128x256xf32>, vector<16x256xf32> -> vector<16x256xf32>
    %c1_82 = arith.constant 1 : index
    %c0_83 = arith.constant 0 : index
    %c0_84 = arith.constant 0 : index
    %153 = vector.load %arg8[%c1_82, %c0_83, %c0_84] : memref<3x1x256xf32, #tpu.memory_space<vmem>>, vector<1x1x256xf32>
    %154 = vector.shape_cast %153 : vector<1x1x256xf32> to vector<1x256xf32>
    %155 = vector.broadcast %154 : vector<1x256xf32> to vector<16x256xf32>
    %156 = arith.addf %152, %155 : vector<16x256xf32>
    %cst_85 = arith.constant 0.000000e+00 : f32
    %157 = vector.broadcast %cst_85 : f32 to vector<16x256xf32>
    %158 = arith.maximumf %156, %157 : vector<16x256xf32>
    %c1_86 = arith.constant 1 : index
    %c0_87 = arith.constant 0 : index
    %c0_88 = arith.constant 0 : index
    %159 = vector.load %arg9[%c1_86, %c0_87, %c0_88] : memref<3x1x256xf32, #tpu.memory_space<vmem>>, vector<1x1x256xf32>
    %160 = vector.shape_cast %159 : vector<1x1x256xf32> to vector<1x256xf32>
    %c1_89 = arith.constant 1 : index
    %c0_90 = arith.constant 0 : index
    %c0_91 = arith.constant 0 : index
    %161 = vector.load %arg10[%c1_89, %c0_90, %c0_91] : memref<3x1x256xf32, #tpu.memory_space<vmem>>, vector<1x1x256xf32>
    %162 = vector.shape_cast %161 : vector<1x1x256xf32> to vector<1x256xf32>
    %cst_92 = arith.constant dense<0.000000e+00> : vector<16xf32>
    %163 = vector.multi_reduction <add>, %158, %cst_92 [1] : vector<16x256xf32> to vector<16xf32>
    %164 = vector.shape_cast %163 : vector<16xf32> to vector<16x1xf32>
    %cst_93 = arith.constant 2.560000e+02 : f32
    %165 = vector.broadcast %cst_93 : f32 to vector<16x1xf32>
    %166 = arith.divf %164, %165 : vector<16x1xf32>
    %167 = vector.broadcast %166 : vector<16x1xf32> to vector<16x256xf32>
    %168 = arith.subf %158, %167 : vector<16x256xf32>
    %169 = arith.mulf %168, %168 : vector<16x256xf32>
    %cst_94 = arith.constant dense<0.000000e+00> : vector<16xf32>
    %170 = vector.multi_reduction <add>, %169, %cst_94 [1] : vector<16x256xf32> to vector<16xf32>
    %171 = vector.shape_cast %170 : vector<16xf32> to vector<16x1xf32>
    %cst_95 = arith.constant 2.560000e+02 : f32
    %172 = vector.broadcast %cst_95 : f32 to vector<16x1xf32>
    %173 = arith.divf %171, %172 : vector<16x1xf32>
    %174 = vector.broadcast %166 : vector<16x1xf32> to vector<16x256xf32>
    %175 = arith.subf %158, %174 : vector<16x256xf32>
    %cst_96 = arith.constant 9.99999974E-6 : f32
    %176 = vector.broadcast %cst_96 : f32 to vector<16x1xf32>
    %177 = arith.addf %173, %176 : vector<16x1xf32>
    %178 = math.rsqrt %177 : vector<16x1xf32>
    %179 = vector.broadcast %178 : vector<16x1xf32> to vector<16x256xf32>
    %180 = arith.mulf %175, %179 : vector<16x256xf32>
    %181 = vector.broadcast %160 : vector<1x256xf32> to vector<16x256xf32>
    %182 = arith.mulf %180, %181 : vector<16x256xf32>
    %183 = vector.broadcast %162 : vector<1x256xf32> to vector<16x256xf32>
    %184 = arith.addf %182, %183 : vector<16x256xf32>
    %c1_97 = arith.constant 1 : index
    %c0_98 = arith.constant 0 : index
    %c0_99 = arith.constant 0 : index
    %185 = vector.load %arg11[%c1_97, %c0_98, %c0_99] : memref<3x256x256xf32, #tpu.memory_space<vmem>>, vector<1x256x256xf32>
    %186 = vector.shape_cast %185 : vector<1x256x256xf32> to vector<256x256xf32>
    %cst_100 = arith.constant dense<0.000000e+00> : vector<16x256xf32>
    %187 = tpu.matmul %184, %186, %cst_100 {dimension_numbers = #tpu.dot_dimension_numbers<[1], [0], [0], [1], [0, 0, 1, 1], [], []>} : vector<16x256xf32>, vector<256x256xf32>, vector<16x256xf32> -> vector<16x256xf32>
    %c1_101 = arith.constant 1 : index
    %c0_102 = arith.constant 0 : index
    %c0_103 = arith.constant 0 : index
    %188 = vector.load %arg12[%c1_101, %c0_102, %c0_103] : memref<3x1x256xf32, #tpu.memory_space<vmem>>, vector<1x1x256xf32>
    %189 = vector.shape_cast %188 : vector<1x1x256xf32> to vector<1x256xf32>
    %190 = vector.broadcast %189 : vector<1x256xf32> to vector<16x256xf32>
    %191 = arith.addf %187, %190 : vector<16x256xf32>
    %cst_104 = arith.constant 0.000000e+00 : f32
    %192 = vector.broadcast %cst_104 : f32 to vector<16x256xf32>
    %193 = arith.maximumf %191, %192 : vector<16x256xf32>
    %c1_105 = arith.constant 1 : index
    %c0_106 = arith.constant 0 : index
    %c0_107 = arith.constant 0 : index
    %194 = vector.load %arg13[%c1_105, %c0_106, %c0_107] : memref<3x1x256xf32, #tpu.memory_space<vmem>>, vector<1x1x256xf32>
    %195 = vector.shape_cast %194 : vector<1x1x256xf32> to vector<1x256xf32>
    %c1_108 = arith.constant 1 : index
    %c0_109 = arith.constant 0 : index
    %c0_110 = arith.constant 0 : index
    %196 = vector.load %arg14[%c1_108, %c0_109, %c0_110] : memref<3x1x256xf32, #tpu.memory_space<vmem>>, vector<1x1x256xf32>
    %197 = vector.shape_cast %196 : vector<1x1x256xf32> to vector<1x256xf32>
    %cst_111 = arith.constant dense<0.000000e+00> : vector<16xf32>
    %198 = vector.multi_reduction <add>, %193, %cst_111 [1] : vector<16x256xf32> to vector<16xf32>
    %199 = vector.shape_cast %198 : vector<16xf32> to vector<16x1xf32>
    %cst_112 = arith.constant 2.560000e+02 : f32
    %200 = vector.broadcast %cst_112 : f32 to vector<16x1xf32>
    %201 = arith.divf %199, %200 : vector<16x1xf32>
    %202 = vector.broadcast %201 : vector<16x1xf32> to vector<16x256xf32>
    %203 = arith.subf %193, %202 : vector<16x256xf32>
    %204 = arith.mulf %203, %203 : vector<16x256xf32>
    %cst_113 = arith.constant dense<0.000000e+00> : vector<16xf32>
    %205 = vector.multi_reduction <add>, %204, %cst_113 [1] : vector<16x256xf32> to vector<16xf32>
    %206 = vector.shape_cast %205 : vector<16xf32> to vector<16x1xf32>
    %cst_114 = arith.constant 2.560000e+02 : f32
    %207 = vector.broadcast %cst_114 : f32 to vector<16x1xf32>
    %208 = arith.divf %206, %207 : vector<16x1xf32>
    %209 = vector.broadcast %201 : vector<16x1xf32> to vector<16x256xf32>
    %210 = arith.subf %193, %209 : vector<16x256xf32>
    %cst_115 = arith.constant 9.99999974E-6 : f32
    %211 = vector.broadcast %cst_115 : f32 to vector<16x1xf32>
    %212 = arith.addf %208, %211 : vector<16x1xf32>
    %213 = math.rsqrt %212 : vector<16x1xf32>
    %214 = vector.broadcast %213 : vector<16x1xf32> to vector<16x256xf32>
    %215 = arith.mulf %210, %214 : vector<16x256xf32>
    %216 = vector.broadcast %195 : vector<1x256xf32> to vector<16x256xf32>
    %217 = arith.mulf %215, %216 : vector<16x256xf32>
    %218 = vector.broadcast %197 : vector<1x256xf32> to vector<16x256xf32>
    %219 = arith.addf %217, %218 : vector<16x256xf32>
    %c1_116 = arith.constant 1 : index
    %c0_117 = arith.constant 0 : index
    %c0_118 = arith.constant 0 : index
    %220 = vector.load %arg15[%c1_116, %c0_117, %c0_118] : memref<3x256x128xf32, #tpu.memory_space<vmem>>, vector<1x256x128xf32>
    %221 = vector.shape_cast %220 : vector<1x256x128xf32> to vector<256x128xf32>
    %cst_119 = arith.constant dense<0.000000e+00> : vector<16x128xf32>
    %222 = tpu.matmul %219, %221, %cst_119 {dimension_numbers = #tpu.dot_dimension_numbers<[1], [0], [0], [1], [0, 0, 1, 1], [], []>} : vector<16x256xf32>, vector<256x128xf32>, vector<16x128xf32> -> vector<16x128xf32>
    %c1_120 = arith.constant 1 : index
    %c0_121 = arith.constant 0 : index
    %c0_122 = arith.constant 0 : index
    %223 = vector.load %arg16[%c1_120, %c0_121, %c0_122] : memref<3x1x128xf32, #tpu.memory_space<vmem>>, vector<1x1x128xf32>
    %224 = vector.shape_cast %223 : vector<1x1x128xf32> to vector<1x128xf32>
    %225 = vector.broadcast %224 : vector<1x128xf32> to vector<16x128xf32>
    %226 = arith.addf %222, %225 : vector<16x128xf32>
    %227 = arith.negf %226 : vector<16x128xf32>
    %228 = math.exp %227 : vector<16x128xf32>
    %cst_123 = arith.constant 1.000000e+00 : f32
    %229 = vector.broadcast %cst_123 : f32 to vector<16x128xf32>
    %230 = arith.addf %229, %228 : vector<16x128xf32>
    %231 = arith.divf %229, %230 : vector<16x128xf32>
    %c0_124 = arith.constant 0 : index
    %c128 = arith.constant 128 : index
    %232 = vector.load %arg17[%c0_124, %c128] : memref<16x384xf32, #tpu.memory_space<vmem>>, vector<16x128xf32>
    tpu.vector_store %arg17[%c0_124, %c128], %231 {strides = array<i32>} : memref<16x384xf32, #tpu.memory_space<vmem>>, vector<16x128xf32>,
    %c2 = arith.constant 2 : index
    %c0_125 = arith.constant 0 : index
    %c0_126 = arith.constant 0 : index
    %233 = vector.load %arg5[%c2, %c0_125, %c0_126] : memref<3x1x128xf32, #tpu.memory_space<vmem>>, vector<1x1x128xf32>
    %234 = vector.shape_cast %233 : vector<1x1x128xf32> to vector<1x128xf32>
    %c2_127 = arith.constant 2 : index
    %c0_128 = arith.constant 0 : index
    %c0_129 = arith.constant 0 : index
    %235 = vector.load %arg6[%c2_127, %c0_128, %c0_129] : memref<3x1x128xf32, #tpu.memory_space<vmem>>, vector<1x1x128xf32>
    %236 = vector.shape_cast %235 : vector<1x1x128xf32> to vector<1x128xf32>
    %cst_130 = arith.constant dense<0.000000e+00> : vector<16xf32>
    %237 = vector.multi_reduction <add>, %14, %cst_130 [1] : vector<16x128xf32> to vector<16xf32>
    %238 = vector.shape_cast %237 : vector<16xf32> to vector<16x1xf32>
    %cst_131 = arith.constant 1.280000e+02 : f32
    %239 = vector.broadcast %cst_131 : f32 to vector<16x1xf32>
    %240 = arith.divf %238, %239 : vector<16x1xf32>
    %241 = vector.broadcast %240 : vector<16x1xf32> to vector<16x128xf32>
    %242 = arith.subf %14, %241 : vector<16x128xf32>
    %243 = arith.mulf %242, %242 : vector<16x128xf32>
    %cst_132 = arith.constant dense<0.000000e+00> : vector<16xf32>
    %244 = vector.multi_reduction <add>, %243, %cst_132 [1] : vector<16x128xf32> to vector<16xf32>
    %245 = vector.shape_cast %244 : vector<16xf32> to vector<16x1xf32>
    %cst_133 = arith.constant 1.280000e+02 : f32
    %246 = vector.broadcast %cst_133 : f32 to vector<16x1xf32>
    %247 = arith.divf %245, %246 : vector<16x1xf32>
    %248 = vector.broadcast %240 : vector<16x1xf32> to vector<16x128xf32>
    %249 = arith.subf %14, %248 : vector<16x128xf32>
    %cst_134 = arith.constant 9.99999974E-6 : f32
    %250 = vector.broadcast %cst_134 : f32 to vector<16x1xf32>
    %251 = arith.addf %247, %250 : vector<16x1xf32>
    %252 = math.rsqrt %251 : vector<16x1xf32>
    %253 = vector.broadcast %252 : vector<16x1xf32> to vector<16x128xf32>
    %254 = arith.mulf %249, %253 : vector<16x128xf32>
    %255 = vector.broadcast %234 : vector<1x128xf32> to vector<16x128xf32>
    %256 = arith.mulf %254, %255 : vector<16x128xf32>
    %257 = vector.broadcast %236 : vector<1x128xf32> to vector<16x128xf32>
    %258 = arith.addf %256, %257 : vector<16x128xf32>
    %c2_135 = arith.constant 2 : index
    %c0_136 = arith.constant 0 : index
    %c0_137 = arith.constant 0 : index
    %259 = vector.load %arg7[%c2_135, %c0_136, %c0_137] : memref<3x128x256xf32, #tpu.memory_space<vmem>>, vector<1x128x256xf32>
    %260 = vector.shape_cast %259 : vector<1x128x256xf32> to vector<128x256xf32>
    %cst_138 = arith.constant dense<0.000000e+00> : vector<16x256xf32>
    %261 = tpu.matmul %258, %260, %cst_138 {dimension_numbers = #tpu.dot_dimension_numbers<[1], [0], [0], [1], [0, 0, 1, 1], [], []>} : vector<16x128xf32>, vector<128x256xf32>, vector<16x256xf32> -> vector<16x256xf32>
    %c2_139 = arith.constant 2 : index
    %c0_140 = arith.constant 0 : index
    %c0_141 = arith.constant 0 : index
    %262 = vector.load %arg8[%c2_139, %c0_140, %c0_141] : memref<3x1x256xf32, #tpu.memory_space<vmem>>, vector<1x1x256xf32>
    %263 = vector.shape_cast %262 : vector<1x1x256xf32> to vector<1x256xf32>
    %264 = vector.broadcast %263 : vector<1x256xf32> to vector<16x256xf32>
    %265 = arith.addf %261, %264 : vector<16x256xf32>
    %cst_142 = arith.constant 0.000000e+00 : f32
    %266 = vector.broadcast %cst_142 : f32 to vector<16x256xf32>
    %267 = arith.maximumf %265, %266 : vector<16x256xf32>
    %c2_143 = arith.constant 2 : index
    %c0_144 = arith.constant 0 : index
    %c0_145 = arith.constant 0 : index
    %268 = vector.load %arg9[%c2_143, %c0_144, %c0_145] : memref<3x1x256xf32, #tpu.memory_space<vmem>>, vector<1x1x256xf32>
    %269 = vector.shape_cast %268 : vector<1x1x256xf32> to vector<1x256xf32>
    %c2_146 = arith.constant 2 : index
    %c0_147 = arith.constant 0 : index
    %c0_148 = arith.constant 0 : index
    %270 = vector.load %arg10[%c2_146, %c0_147, %c0_148] : memref<3x1x256xf32, #tpu.memory_space<vmem>>, vector<1x1x256xf32>
    %271 = vector.shape_cast %270 : vector<1x1x256xf32> to vector<1x256xf32>
    %cst_149 = arith.constant dense<0.000000e+00> : vector<16xf32>
    %272 = vector.multi_reduction <add>, %267, %cst_149 [1] : vector<16x256xf32> to vector<16xf32>
    %273 = vector.shape_cast %272 : vector<16xf32> to vector<16x1xf32>
    %cst_150 = arith.constant 2.560000e+02 : f32
    %274 = vector.broadcast %cst_150 : f32 to vector<16x1xf32>
    %275 = arith.divf %273, %274 : vector<16x1xf32>
    %276 = vector.broadcast %275 : vector<16x1xf32> to vector<16x256xf32>
    %277 = arith.subf %267, %276 : vector<16x256xf32>
    %278 = arith.mulf %277, %277 : vector<16x256xf32>
    %cst_151 = arith.constant dense<0.000000e+00> : vector<16xf32>
    %279 = vector.multi_reduction <add>, %278, %cst_151 [1] : vector<16x256xf32> to vector<16xf32>
    %280 = vector.shape_cast %279 : vector<16xf32> to vector<16x1xf32>
    %cst_152 = arith.constant 2.560000e+02 : f32
    %281 = vector.broadcast %cst_152 : f32 to vector<16x1xf32>
    %282 = arith.divf %280, %281 : vector<16x1xf32>
    %283 = vector.broadcast %275 : vector<16x1xf32> to vector<16x256xf32>
    %284 = arith.subf %267, %283 : vector<16x256xf32>
    %cst_153 = arith.constant 9.99999974E-6 : f32
    %285 = vector.broadcast %cst_153 : f32 to vector<16x1xf32>
    %286 = arith.addf %282, %285 : vector<16x1xf32>
    %287 = math.rsqrt %286 : vector<16x1xf32>
    %288 = vector.broadcast %287 : vector<16x1xf32> to vector<16x256xf32>
    %289 = arith.mulf %284, %288 : vector<16x256xf32>
    %290 = vector.broadcast %269 : vector<1x256xf32> to vector<16x256xf32>
    %291 = arith.mulf %289, %290 : vector<16x256xf32>
    %292 = vector.broadcast %271 : vector<1x256xf32> to vector<16x256xf32>
    %293 = arith.addf %291, %292 : vector<16x256xf32>
    %c2_154 = arith.constant 2 : index
    %c0_155 = arith.constant 0 : index
    %c0_156 = arith.constant 0 : index
    %294 = vector.load %arg11[%c2_154, %c0_155, %c0_156] : memref<3x256x256xf32, #tpu.memory_space<vmem>>, vector<1x256x256xf32>
    %295 = vector.shape_cast %294 : vector<1x256x256xf32> to vector<256x256xf32>
    %cst_157 = arith.constant dense<0.000000e+00> : vector<16x256xf32>
    %296 = tpu.matmul %293, %295, %cst_157 {dimension_numbers = #tpu.dot_dimension_numbers<[1], [0], [0], [1], [0, 0, 1, 1], [], []>} : vector<16x256xf32>, vector<256x256xf32>, vector<16x256xf32> -> vector<16x256xf32>
    %c2_158 = arith.constant 2 : index
    %c0_159 = arith.constant 0 : index
    %c0_160 = arith.constant 0 : index
    %297 = vector.load %arg12[%c2_158, %c0_159, %c0_160] : memref<3x1x256xf32, #tpu.memory_space<vmem>>, vector<1x1x256xf32>
    %298 = vector.shape_cast %297 : vector<1x1x256xf32> to vector<1x256xf32>
    %299 = vector.broadcast %298 : vector<1x256xf32> to vector<16x256xf32>
    %300 = arith.addf %296, %299 : vector<16x256xf32>
    %cst_161 = arith.constant 0.000000e+00 : f32
    %301 = vector.broadcast %cst_161 : f32 to vector<16x256xf32>
    %302 = arith.maximumf %300, %301 : vector<16x256xf32>
    %c2_162 = arith.constant 2 : index
    %c0_163 = arith.constant 0 : index
    %c0_164 = arith.constant 0 : index
    %303 = vector.load %arg13[%c2_162, %c0_163, %c0_164] : memref<3x1x256xf32, #tpu.memory_space<vmem>>, vector<1x1x256xf32>
    %304 = vector.shape_cast %303 : vector<1x1x256xf32> to vector<1x256xf32>
    %c2_165 = arith.constant 2 : index
    %c0_166 = arith.constant 0 : index
    %c0_167 = arith.constant 0 : index
    %305 = vector.load %arg14[%c2_165, %c0_166, %c0_167] : memref<3x1x256xf32, #tpu.memory_space<vmem>>, vector<1x1x256xf32>
    %306 = vector.shape_cast %305 : vector<1x1x256xf32> to vector<1x256xf32>
    %cst_168 = arith.constant dense<0.000000e+00> : vector<16xf32>
    %307 = vector.multi_reduction <add>, %302, %cst_168 [1] : vector<16x256xf32> to vector<16xf32>
    %308 = vector.shape_cast %307 : vector<16xf32> to vector<16x1xf32>
    %cst_169 = arith.constant 2.560000e+02 : f32
    %309 = vector.broadcast %cst_169 : f32 to vector<16x1xf32>
    %310 = arith.divf %308, %309 : vector<16x1xf32>
    %311 = vector.broadcast %310 : vector<16x1xf32> to vector<16x256xf32>
    %312 = arith.subf %302, %311 : vector<16x256xf32>
    %313 = arith.mulf %312, %312 : vector<16x256xf32>
    %cst_170 = arith.constant dense<0.000000e+00> : vector<16xf32>
    %314 = vector.multi_reduction <add>, %313, %cst_170 [1] : vector<16x256xf32> to vector<16xf32>
    %315 = vector.shape_cast %314 : vector<16xf32> to vector<16x1xf32>
    %cst_171 = arith.constant 2.560000e+02 : f32
    %316 = vector.broadcast %cst_171 : f32 to vector<16x1xf32>
    %317 = arith.divf %315, %316 : vector<16x1xf32>
    %318 = vector.broadcast %310 : vector<16x1xf32> to vector<16x256xf32>
    %319 = arith.subf %302, %318 : vector<16x256xf32>
    %cst_172 = arith.constant 9.99999974E-6 : f32
    %320 = vector.broadcast %cst_172 : f32 to vector<16x1xf32>
    %321 = arith.addf %317, %320 : vector<16x1xf32>
    %322 = math.rsqrt %321 : vector<16x1xf32>
    %323 = vector.broadcast %322 : vector<16x1xf32> to vector<16x256xf32>
    %324 = arith.mulf %319, %323 : vector<16x256xf32>
    %325 = vector.broadcast %304 : vector<1x256xf32> to vector<16x256xf32>
    %326 = arith.mulf %324, %325 : vector<16x256xf32>
    %327 = vector.broadcast %306 : vector<1x256xf32> to vector<16x256xf32>
    %328 = arith.addf %326, %327 : vector<16x256xf32>
    %c2_173 = arith.constant 2 : index
    %c0_174 = arith.constant 0 : index
    %c0_175 = arith.constant 0 : index
    %329 = vector.load %arg15[%c2_173, %c0_174, %c0_175] : memref<3x256x128xf32, #tpu.memory_space<vmem>>, vector<1x256x128xf32>
    %330 = vector.shape_cast %329 : vector<1x256x128xf32> to vector<256x128xf32>
    %cst_176 = arith.constant dense<0.000000e+00> : vector<16x128xf32>
    %331 = tpu.matmul %328, %330, %cst_176 {dimension_numbers = #tpu.dot_dimension_numbers<[1], [0], [0], [1], [0, 0, 1, 1], [], []>} : vector<16x256xf32>, vector<256x128xf32>, vector<16x128xf32> -> vector<16x128xf32>
    %c2_177 = arith.constant 2 : index
    %c0_178 = arith.constant 0 : index
    %c0_179 = arith.constant 0 : index
    %332 = vector.load %arg16[%c2_177, %c0_178, %c0_179] : memref<3x1x128xf32, #tpu.memory_space<vmem>>, vector<1x1x128xf32>
    %333 = vector.shape_cast %332 : vector<1x1x128xf32> to vector<1x128xf32>
    %334 = vector.broadcast %333 : vector<1x128xf32> to vector<16x128xf32>
    %335 = arith.addf %331, %334 : vector<16x128xf32>
    %336 = arith.negf %335 : vector<16x128xf32>
    %337 = math.exp %336 : vector<16x128xf32>
    %cst_180 = arith.constant 1.000000e+00 : f32
    %338 = vector.broadcast %cst_180 : f32 to vector<16x128xf32>
    %339 = arith.addf %338, %337 : vector<16x128xf32>
    %340 = arith.divf %338, %339 : vector<16x128xf32>
    %c0_181 = arith.constant 0 : index
    %c256 = arith.constant 256 : index
    %341 = vector.load %arg17[%c0_181, %c256] : memref<16x384xf32, #tpu.memory_space<vmem>>, vector<16x128xf32>
    tpu.vector_store %arg17[%c0_181, %c256], %340 {strides = array<i32>} : memref<16x384xf32, #tpu.memory_space<vmem>>, vector<16x128xf32>,
    return
  }
  func.func @transform_0(%arg0: i32) -> (i32, i32) {
    %c0_i32 = arith.constant 0 : i32
    %c0_i32_0 = arith.constant 0 : i32
    return %arg0, %c0_i32 : i32, i32
  }
  func.func @transform_1(%arg0: i32) -> (i32, i32) {
    %c0_i32 = arith.constant 0 : i32
    %c0_i32_0 = arith.constant 0 : i32
    %c0_i32_1 = arith.constant 0 : i32
    return %c0_i32, %c0_i32_0 : i32, i32
  }
  func.func @transform_2(%arg0: i32) -> (i32, i32) {
    %c0_i32 = arith.constant 0 : i32
    %c0_i32_0 = arith.constant 0 : i32
    %c0_i32_1 = arith.constant 0 : i32
    return %c0_i32, %c0_i32_0 : i32, i32
  }
  func.func @transform_3(%arg0: i32) -> (i32, i32) {
    %c0_i32 = arith.constant 0 : i32
    %c0_i32_0 = arith.constant 0 : i32
    %c0_i32_1 = arith.constant 0 : i32
    return %c0_i32, %c0_i32_0 : i32, i32
  }
  func.func @transform_4(%arg0: i32) -> (i32, i32, i32) {
    %c0_i32 = arith.constant 0 : i32
    %c0_i32_0 = arith.constant 0 : i32
    %c0_i32_1 = arith.constant 0 : i32
    %c0_i32_2 = arith.constant 0 : i32
    return %c0_i32, %c0_i32_0, %c0_i32_1 : i32, i32, i32
  }
  func.func @transform_5(%arg0: i32) -> (i32, i32, i32) {
    %c0_i32 = arith.constant 0 : i32
    %c0_i32_0 = arith.constant 0 : i32
    %c0_i32_1 = arith.constant 0 : i32
    %c0_i32_2 = arith.constant 0 : i32
    return %c0_i32, %c0_i32_0, %c0_i32_1 : i32, i32, i32
  }
  func.func @transform_6(%arg0: i32) -> (i32, i32, i32) {
    %c0_i32 = arith.constant 0 : i32
    %c0_i32_0 = arith.constant 0 : i32
    %c0_i32_1 = arith.constant 0 : i32
    %c0_i32_2 = arith.constant 0 : i32
    return %c0_i32, %c0_i32_0, %c0_i32_1 : i32, i32, i32
  }
  func.func @transform_7(%arg0: i32) -> (i32, i32, i32) {
    %c0_i32 = arith.constant 0 : i32
    %c0_i32_0 = arith.constant 0 : i32
    %c0_i32_1 = arith.constant 0 : i32
    %c0_i32_2 = arith.constant 0 : i32
    return %c0_i32, %c0_i32_0, %c0_i32_1 : i32, i32, i32
  }
  func.func @transform_8(%arg0: i32) -> (i32, i32, i32) {
    %c0_i32 = arith.constant 0 : i32
    %c0_i32_0 = arith.constant 0 : i32
    %c0_i32_1 = arith.constant 0 : i32
    %c0_i32_2 = arith.constant 0 : i32
    return %c0_i32, %c0_i32_0, %c0_i32_1 : i32, i32, i32
  }
  func.func @transform_9(%arg0: i32) -> (i32, i32, i32) {
    %c0_i32 = arith.constant 0 : i32
    %c0_i32_0 = arith.constant 0 : i32
    %c0_i32_1 = arith.constant 0 : i32
    %c0_i32_2 = arith.constant 0 : i32
    return %c0_i32, %c0_i32_0, %c0_i32_1 : i32, i32, i32
  }
  func.func @transform_10(%arg0: i32) -> (i32, i32, i32) {
    %c0_i32 = arith.constant 0 : i32
    %c0_i32_0 = arith.constant 0 : i32
    %c0_i32_1 = arith.constant 0 : i32
    %c0_i32_2 = arith.constant 0 : i32
    return %c0_i32, %c0_i32_0, %c0_i32_1 : i32, i32, i32
  }
  func.func @transform_11(%arg0: i32) -> (i32, i32, i32) {
    %c0_i32 = arith.constant 0 : i32
    %c0_i32_0 = arith.constant 0 : i32
    %c0_i32_1 = arith.constant 0 : i32
    %c0_i32_2 = arith.constant 0 : i32
    return %c0_i32, %c0_i32_0, %c0_i32_1 : i32, i32, i32
  }
  func.func @transform_12(%arg0: i32) -> (i32, i32, i32) {
    %c0_i32 = arith.constant 0 : i32
    %c0_i32_0 = arith.constant 0 : i32
    %c0_i32_1 = arith.constant 0 : i32
    %c0_i32_2 = arith.constant 0 : i32
    return %c0_i32, %c0_i32_0, %c0_i32_1 : i32, i32, i32
  }
  func.func @transform_13(%arg0: i32) -> (i32, i32, i32) {
    %c0_i32 = arith.constant 0 : i32
    %c0_i32_0 = arith.constant 0 : i32
    %c0_i32_1 = arith.constant 0 : i32
    %c0_i32_2 = arith.constant 0 : i32
    return %c0_i32, %c0_i32_0, %c0_i32_1 : i32, i32, i32
  }
  func.func @transform_14(%arg0: i32) -> (i32, i32, i32) {
    %c0_i32 = arith.constant 0 : i32
    %c0_i32_0 = arith.constant 0 : i32
    %c0_i32_1 = arith.constant 0 : i32
    %c0_i32_2 = arith.constant 0 : i32
    return %c0_i32, %c0_i32_0, %c0_i32_1 : i32, i32, i32
  }
  func.func @transform_15(%arg0: i32) -> (i32, i32, i32) {
    %c0_i32 = arith.constant 0 : i32
    %c0_i32_0 = arith.constant 0 : i32
    %c0_i32_1 = arith.constant 0 : i32
    %c0_i32_2 = arith.constant 0 : i32
    return %c0_i32, %c0_i32_0, %c0_i32_1 : i32, i32, i32
  }
  func.func @transform_16(%arg0: i32) -> (i32, i32) {
    %c0_i32 = arith.constant 0 : i32
    %c0_i32_0 = arith.constant 0 : i32
    return %arg0, %c0_i32 : i32, i32
  }
}

</mosaic_0001>

<bundles_post_ra>
// kernel: tpu_custom_call.1
= control target key start
LH: loop header
LB: loop body
LE: loop exit
PB: predicated region body
PF: predicated region fallthrough
CT: control target
= control target key end

     0   :  { %s3615_s0 = inlined_call_operand.vmem [shape: s32[16,1], index: 0, kind: input, shape index: {}]   ;;  %s3616_s1 = inlined_call_operand.hbm [shape: f32[128,128], index: 1, kind: input, shape index: {}]   ;;  %s3617_s2 = inlined_call_operand.hbm [shape: f32[128,128], index: 2, kind: input, shape index: {}]   ;;  %s3618_s3 = inlined_call_operand.hbm [shape: f32[1,128], index: 3, kind: input, shape index: {}]   ;;  %s3619_s4 = inlined_call_operand.hbm [shape: f32[3,1,128], index: 4, kind: input, shape index: {}]   ;;  %s3620_s5 = inlined_call_operand.vmem [shape: f32[3,1,128], index: 5, kind: input, shape index: {}]   ;;  %s3621_s6 = inlined_call_operand.hbm [shape: f32[3,128,256], index: 6, kind: input, shape index: {}]   ;;  %s3622_s7 = inlined_call_operand.vmem [shape: f32[3,1,256], index: 7, kind: input, shape index: {}]   ;;  %s3623_s8 = inlined_call_operand.vmem [shape: f32[3,1,256], index: 8, kind: input, shape index: {}]   ;;  %s3624_s9 = inlined_call_operand.vmem [shape: f32[3,1,256], index: 9, kind: input, shape index: {}]   ;;  %s3625_s10 = inlined_call_operand.hbm [shape: f32[3,256,256], index: 10, kind: input, shape index: {}]   ;;  %s3626_s11 = inlined_call_operand.vmem [shape: f32[3,1,256], index: 11, kind: input, shape index: {}]   ;;  %s3627_s12 = inlined_call_operand.vmem [shape: f32[3,1,256], index: 12, kind: input, shape index: {}]   ;;  %s3628_s13 = inlined_call_operand.vmem [shape: f32[3,1,256], index: 13, kind: input, shape index: {}]   ;;  %s3629_s14 = inlined_call_operand.hbm [shape: f32[3,256,128], index: 14, kind: input, shape index: {}]   ;;  %s3630_s15 = inlined_call_operand.vmem [shape: f32[3,1,128], index: 15, kind: input, shape index: {}]   ;;  %s3631_s16 = inlined_call_operand.hbm [shape: f32[16,384], index: 16, kind: output, shape index: {}]  }
   0x1   :  { %3637 = sst [smem:[#allocation20_spill]] %s3615_s0 }
   0x2   :  { %21 = vsyncpa [#allocation3], 0 }
   0x3   :  { %22 = vsyncpa [#allocation6], 0 }
   0x4   :  { %23 = vsyncpa [#allocation9], 0 }
   0x5   :  { %24 = vsyncpa [#allocation12], 0 }
   0x6   :  { %25 = vsyncpa [#allocation4], 0  ;;  %s3051_s21 = smov [#allocation5]   ;;  %s3052_s23 = smov [#allocation8]  }
   0x7   :  { %s45_s22 = sshll.u32 %s3051_s21, 4  ;;  %s67_s24 = sshll.u32 %s3052_s23, 4  ;;  %s46_s22 = int_to_ptr.vmem [resolvable:$true] %s45_s22  ;;  %s3154_s24 = int_to_ptr.vmem [resolvable:$true] %s67_s24 }
   0x8   :  { %s2865_s27 = scalar_lea.hbm %s3617_s2, 2048 }
   0x9   :  { %p2866_p0 = scmp.ne.s32.totalorder %s3617_s2, %s2865_s27  ;;  %p2869_p1 = scmp.lt.u32.totalorder %s2865_s27, %s3617_s2 }
   0xb   :  { %p2871_p2 = pnand %p2869_p1, %p2866_p0 }
   0xd   :  { %2874 = shalt.err (!%p2871_p2)
}
   0xe   :  { %s2875_s17 = scalar_lea.vmem %s46_s22, 2048  ;;  %p2880_p4 = scmp.lt.s32.totalorder %s46_s22, %s46_s22 }
   0xf   :  { %p2876_p3 = scmp.ne.s32.totalorder %s46_s22, %s2875_s17  ;;  %p2881_p5 = scmp.lt.s32.totalorder %s2875_s17, %s2875_s17 }
  0x11   :  { %p2882_p6 = por %p2881_p5, %p2880_p4 }
  0x13   :  { %p2883_p7 = pnand %p2882_p6, %p2876_p3 }
  0x15   :  { %2886 = shalt.err (!%p2883_p7)
}
  0x16   :  { %s3633_s18 = smov 128   ;;  %s3635_s19 = smov 8  }
  0x17   :  { %51 = dma.hbm_to_vmem [thread:$0]  %s3617_s2, 2048, %s46_s22, [#allocation6], %s3633_s18, %s3633_s18, %s3635_s19  }
  0x18   :  { %s2887_s26 = scalar_lea.hbm %s3619_s4, 48 }
  0x19   :  { %p2888_p8 = scmp.ne.s32.totalorder %s3619_s4, %s2887_s26  ;;  %p2891_p9 = scmp.lt.u32.totalorder %s2887_s26, %s3619_s4 }
  0x1b   :  { %p2893_p10 = pnand %p2891_p9, %p2888_p8 }
  0x1d   :  { %2896 = shalt.err (!%p2893_p10)
}
  0x1e   :  { %s2897_s0 = scalar_lea.vmem %s3154_s24, 48  ;;  %s2901_s2 = scalar_lea.vmem %s3154_s24, 64 }
  0x1f   :  { %p2898_p11 = scmp.ne.s32.totalorder %s3154_s24, %s2897_s0  ;;  %p2902_p12 = scmp.lt.s32.totalorder %s3154_s24, %s3154_s24 }
  0x20   :  { %p2903_p13 = scmp.lt.s32.totalorder %s2901_s2, %s2897_s0 }
  0x22   :  { %p2904_p0 = por %p2903_p13, %p2902_p12 }
  0x24   :  { %p2905_p1 = pnand %p2904_p0, %p2898_p11 }
  0x26   :  { %2908 = shalt.err (!%p2905_p1)
}
  0x27   :  { %s3055_s22 = smov 16   ;;  %s3056_s17 = smov 1  }
  0x28   :  { %73 = dma.hbm_to_vmem [thread:$0]  %s3619_s4, 48, %s3154_s24, [#allocation9], %s3055_s22, %s3055_s22, %s3056_s17  }
  0x29   :  { %s3057_s23 = smov [#allocation11]   ;;  %s3058_s26 = smov [#allocation2]  }
  0x2a   :  { %s99_s25 = sshll.u32 %s3057_s23, 4  ;;  %s33_s27 = sshll.u32 %s3058_s26, 4  ;;  %s100_s25 = int_to_ptr.vmem [resolvable:$true] %s99_s25  ;;  %s34_s27 = int_to_ptr.vmem [resolvable:$true] %s33_s27 }
  0x2b   :  { %s2909_s30 = scalar_lea.hbm %s3625_s10, 24576 }
  0x2c   :  { %p2910_p2 = scmp.ne.s32.totalorder %s3625_s10, %s2909_s30  ;;  %p2913_p3 = scmp.lt.u32.totalorder %s2909_s30, %s3625_s10 }
  0x2e   :  { %p2915_p4 = pnand %p2913_p3, %p2910_p2 }
  0x30   :  { %2918 = shalt.err (!%p2915_p4)
}
  0x31   :  { %s2919_s4 = scalar_lea.vmem %s100_s25, 24576  ;;  %p2924_p6 = scmp.lt.s32.totalorder %s100_s25, %s100_s25 }
  0x32   :  { %p2920_p5 = scmp.ne.s32.totalorder %s100_s25, %s2919_s4  ;;  %p2925_p7 = scmp.lt.s32.totalorder %s2919_s4, %s2919_s4 }
  0x34   :  { %p2926_p8 = por %p2925_p7, %p2924_p6 }
  0x36   :  { %p2927_p9 = pnand %p2926_p8, %p2920_p5 }
  0x38   :  { %2930 = shalt.err (!%p2927_p9)
}
  0x39   :  { %s3059_s24 = smov 256   ;;  %s2931_s21 = scalar_lea.hbm %s3616_s1, 2048 }
  0x3a   :  { %105 = dma.hbm_to_vmem [thread:$0]  %s3625_s10, 24576, %s100_s25, [#allocation12], %s3059_s24, %s3059_s24, %s3055_s22  }
  0x3b   :  { %p2932_p10 = scmp.ne.s32.totalorder %s3616_s1, %s2931_s21  ;;  %p2935_p11 = scmp.lt.u32.totalorder %s2931_s21, %s3616_s1 }
  0x3d   :  { %p2937_p12 = pnand %p2935_p11, %p2932_p10 }
  0x3f   :  { %2940 = shalt.err (!%p2937_p12)
}
  0x40   :  { %s2941_s30 = scalar_lea.vmem %s34_s27, 2048  ;;  %p2946_p0 = scmp.lt.s32.totalorder %s34_s27, %s34_s27 }
  0x41   :  { %p2942_p13 = scmp.ne.s32.totalorder %s34_s27, %s2941_s30  ;;  %p2947_p1 = scmp.lt.s32.totalorder %s2941_s30, %s2941_s30 }
  0x43   :  { %p2948_p2 = por %p2947_p1, %p2946_p0 }
  0x45   :  { %p2949_p3 = pnand %p2948_p2, %p2942_p13 }
  0x47   :  { %2952 = shalt.err (!%p2949_p3)
}
  0x48   :  { %s3638_s10 = smov 8   ;;  %s3639_s25 = smov 128  }
  0x49   :  { %39 = dma.hbm_to_vmem [thread:$0]  %s3616_s1, 2048, %s34_s27, [#allocation3], %s3639_s25, %s3639_s25, %s3638_s10  }
  0x4a   :  { %s3060_s4 = smov [#allocation7]   ;;  %s3061_s20 = smov [#allocation10]  }
  0x4b   :  { %s58_s17 = sshll.u32 %s3060_s4, 4  ;;  %s81_s18 = sshll.u32 %s3061_s20, 4  ;;  %s59_s17 = int_to_ptr.vmem [resolvable:$true] %s58_s17  ;;  %s82_s18 = int_to_ptr.vmem [resolvable:$true] %s81_s18 }
  0x4c   :  { %s2953_s23 = scalar_lea.hbm %s3618_s3, 16 }
  0x4d   :  { %p2954_p4 = scmp.ne.s32.totalorder %s3618_s3, %s2953_s23  ;;  %p2957_p5 = scmp.lt.u32.totalorder %s2953_s23, %s3618_s3 }
  0x4f   :  { %p2959_p6 = pnand %p2957_p5, %p2954_p4 }
  0x51   :  { %2962 = shalt.err (!%p2959_p6)
}
  0x52   :  { %s2963_s1 = scalar_lea.vmem %s59_s17, 16  ;;  %s2967_s27 = scalar_lea.vmem %s59_s17, 32 }
  0x53   :  { %p2964_p7 = scmp.ne.s32.totalorder %s59_s17, %s2963_s1  ;;  %p2968_p8 = scmp.lt.s32.totalorder %s59_s17, %s59_s17 }
  0x54   :  { %p2969_p9 = scmp.lt.s32.totalorder %s2967_s27, %s2963_s1 }
  0x56   :  { %p2970_p10 = por %p2969_p9, %p2968_p8 }
  0x58   :  { %p2971_p11 = pnand %p2970_p10, %p2964_p7 }
  0x5a   :  { %2974 = shalt.err (!%p2971_p11)
}
  0x5b   :  { %61 = dma.hbm_to_vmem [thread:$0]  %s3618_s3, 16, %s59_s17, [#allocation6]  }
  0x5c   :  { %s2975_s19 = scalar_lea.hbm %s3621_s6, 12288 }
  0x5d   :  { %p2976_p12 = scmp.ne.s32.totalorder %s3621_s6, %s2975_s19  ;;  %p2979_p13 = scmp.lt.u32.totalorder %s2975_s19, %s3621_s6 }
  0x5f   :  { %p2981_p0 = pnand %p2979_p13, %p2976_p12 }
  0x61   :  { %2984 = shalt.err (!%p2981_p0)
}
  0x62   :  { %s2985_s29 = scalar_lea.vmem %s82_s18, 12288  ;;  %p2990_p2 = scmp.lt.s32.totalorder %s82_s18, %s82_s18 }
  0x63   :  { %p2986_p1 = scmp.ne.s32.totalorder %s82_s18, %s2985_s29  ;;  %p2991_p3 = scmp.lt.s32.totalorder %s2985_s29, %s2985_s29 }
  0x65   :  { %p2992_p4 = por %p2991_p3, %p2990_p2 }
  0x67   :  { %p2993_p5 = pnand %p2992_p4, %p2986_p1 }
  0x69   :  { %2996 = shalt.err (!%p2993_p5)
}
  0x6a   :  { %87 = dma.hbm_to_vmem [thread:$0]  %s3621_s6, 12288, %s82_s18, [#allocation9], %s3059_s24, %s3059_s24, %s3055_s22  }
  0x6b   :  { %s3062_s30 = smov [#allocation13]   ;;  %s2997_s2 = scalar_lea.hbm %s3629_s14, 12288 }
  0x6c   :  { %s117_s1 = sshll.u32 %s3062_s30, 4  ;;  %p2998_p6 = scmp.ne.s32.totalorder %s3629_s14, %s2997_s2  ;;  %s118_s1 = int_to_ptr.vmem [resolvable:$true] %s117_s1 }
  0x6d   :  { %p3001_p7 = scmp.lt.u32.totalorder %s2997_s2, %s3629_s14 }
  0x6f   :  { %p3003_p8 = pnand %p3001_p7, %p2998_p6 }
  0x71   :  { %3006 = shalt.err (!%p3003_p8)
}
  0x72   :  { %s3007_s23 = scalar_lea.vmem %s118_s1, 12288  ;;  %p3012_p10 = scmp.lt.s32.totalorder %s118_s1, %s118_s1 }
  0x73   :  { %p3008_p9 = scmp.ne.s32.totalorder %s118_s1, %s3007_s23  ;;  %p3013_p11 = scmp.lt.s32.totalorder %s3007_s23, %s3007_s23 }
  0x75   :  { %p3014_p12 = por %p3013_p11, %p3012_p10 }
  0x77   :  { %p3015_p13 = pnand %p3014_p12, %p3008_p9 }
  0x79   :  { %3018 = shalt.err (!%p3015_p13)
}
  0x7a   :  { %123 = dma.hbm_to_vmem [thread:$0]  %s3629_s14, 12288, %s118_s1, [#allocation12], %s3639_s25, %s3639_s25, %s3638_s10  }
  0x7b   :  { %3041 = dma.done.wait [#allocation3], 2048  }
  0x7c   :  { %3042 = vsyncadd [#allocation3], 4294965248 }
  0x7d   :  { %3043 = dma.done.wait [#allocation6], 2064  }
  0x7e   :  { %3044 = vsyncadd [#allocation6], 4294965232 }
  0x7f   :  { %3045 = dma.done.wait [#allocation9], 12336  }
  0x80   :  { %3046 = vsyncadd [#allocation9], 4294954960 }
  0x81   :  { %3047 = dma.done.wait [#allocation12], 36864  }
  0x82   :  { %3048 = vsyncadd [#allocation12], 4294930432  ;;  %v3063_v0 = vmov 0   ;;  %s3640_s26 = sld [smem:[#allocation20_spill]]  ;;  %v163_v2 = vld [vmem:[#allocation2] sm:$0xff]  ;;  %v164_v3 = vld [vmem:[#allocation2 + $0x8] sm:$0xff]  ;;  %v149_v51 = vlaneseq }
  0x83   :  { %2812 = vset.pattern.permute.xlu0 %v3063_v0  ;;  %v165_v4 = vld [vmem:[#allocation2 + $0x10] sm:$0xff]  ;;  %v166_v5 = vld [vmem:[#allocation2 + $0x18] sm:$0xff]  ;;  %v2346_v7 = vpack.c.bf16 %v164_v3, %v163_v2  ;;  %v167_v9 = vld [vmem:[#allocation2 + $0x20] sm:$0xff]  ;;  %v3064_v54 = vmov 1.0  }
  0x84   :  { %v2350_v8 = vpack.c.bf16 %v166_v5, %v165_v4  ;;  %v168_v10 = vld [vmem:[#allocation2 + $0x28] sm:$0xff]  ;;  %v254_v12 = vld [vmem:[#allocation5] sm:$0xff]  ;;  %v256_v14 = vld [vmem:[#allocation5 + $0x10] sm:$0xff]  ;;  %v150_v52 = vand.u32 127, %v149_v51 }
  0x85   :  { %2347 = vmatprep.subr.bf16.mxu0 %v2346_v7  ;;  %v2354_v11 = vpack.c.bf16 %v168_v10, %v167_v9  ;;  %v255_v13 = vld [vmem:[#allocation5 + $0x8] sm:$0xff]  ;;  %v169_v15 = vld [vmem:[#allocation2 + $0x30] sm:$0xff]  ;;  %v170_v16 = vld [vmem:[#allocation2 + $0x38] sm:$0xff] }
  0x86   :  { %2349 = vmatpush3.bf16.msra.mxu0 %v2346_v7  ;;  %v2378_v17 = vpack.c.bf16 %v255_v13, %v254_v12  ;;  %v257_v18 = vld [vmem:[#allocation5 + $0x18] sm:$0xff]  ;;  %v258_v20 = vld [vmem:[#allocation5 + $0x20] sm:$0xff]  ;;  %v259_v21 = vld [vmem:[#allocation5 + $0x28] sm:$0xff]  ;;  %v2358_v22 = vpack.c.bf16 %v170_v16, %v169_v15 }
  0x87   :  { %2351 = vmatprep.subr.bf16.mxu0 %v2350_v8  ;;  %v2382_v19 = vpack.c.bf16 %v257_v18, %v256_v14  ;;  %v171_v23 = vld [vmem:[#allocation2 + $0x40] sm:$0xff]  ;;  %v172_v24 = vld [vmem:[#allocation2 + $0x48] sm:$0xff]  ;;  %v2386_v25 = vpack.c.bf16 %v259_v21, %v258_v20  ;;  %v260_v26 = vld [vmem:[#allocation5 + $0x30] sm:$0xff] }
  0x88   :  { %v147_v1 = vld [vmem:[%s3640_s26] sm:$0xff]  ;;  %v148_v6 = vld [vmem:[%s3640_s26 + $0x8] sm:$0xff]  ;;  %2379 = vmatprep.subr.bf16.mxu1 %v2378_v17  ;;  %v2362_v28 = vpack.c.bf16 %v172_v24, %v171_v23  ;;  %v262_v32 = vld [vmem:[#allocation5 + $0x40] sm:$0xff]  ;;  %s3066_s26 = smov [#allocation14]  }
  0x89   :  { %152 = vperm.xlu0 %2812, %v147_v1   ;;  %2381 = vmatpush3.bf16.msra.mxu1 %v2378_v17  ;;  %v261_v27 = vld [vmem:[#allocation5 + $0x38] sm:$0xff]  ;;  %v173_v29 = vld [vmem:[#allocation2 + $0x50] sm:$0xff]  ;;  %v263_v33 = vld [vmem:[#allocation5 + $0x48] sm:$0xff]  ;;  %s2075_s14 = sshll.u32 %s3066_s26, 4  ;;  %s2076_s14 = int_to_ptr.vmem [resolvable:$true] %s2075_s14 }
  0x8a   :  { %2353 = vmatpush3.bf16.msra.mxu0 %v2350_v8  ;;  %2383 = vmatprep.subr.bf16.mxu1 %v2382_v19  ;;  %v174_v30 = vld [vmem:[#allocation2 + $0x58] sm:$0xff]  ;;  %v2390_v31 = vpack.c.bf16 %v261_v27, %v260_v26  ;;  %v175_v35 = vld [vmem:[#allocation2 + $0x60] sm:$0xff]  ;;  %v176_v36 = vld [vmem:[#allocation2 + $0x68] sm:$0xff]  ;;  %v2394_v37 = vpack.c.bf16 %v263_v33, %v262_v32  ;;  %p3024_p1 = scmp.lt.s32.totalorder %s2076_s14, %s2076_s14 }
  0x8b   :  { %2355 = vmatprep.subr.bf16.mxu0 %v2354_v11  ;;  %v2366_v34 = vpack.c.bf16 %v174_v30, %v173_v29  ;;  %v264_v38 = vld [vmem:[#allocation5 + $0x50] sm:$0xff]  ;;  %v265_v39 = vld [vmem:[#allocation5 + $0x58] sm:$0xff]  ;;  %v2370_v40 = vpack.c.bf16 %v176_v36, %v175_v35  ;;  %v266_v44 = vld [vmem:[#allocation5 + $0x60] sm:$0xff] }
  0x8c   :  { %v177_v41 = vld [vmem:[#allocation2 + $0x70] sm:$0xff]  ;;  %v178_v42 = vld [vmem:[#allocation2 + $0x78] sm:$0xff]  ;;  %v2398_v43 = vpack.c.bf16 %v265_v39, %v264_v38  ;;  %v267_v45 = vld [vmem:[#allocation5 + $0x68] sm:$0xff] }
  0x8d   :  { %155 = vperm.xlu0 %2812, %v148_v6   ;;  %2385 = vmatpush3.bf16.msra.mxu1 %v2382_v19  ;;  %v2374_v46 = vpack.c.bf16 %v178_v42, %v177_v41  ;;  %v2402_v47 = vpack.c.bf16 %v267_v45, %v266_v44  ;;  %v268_v48 = vld [vmem:[#allocation5 + $0x70] sm:$0xff]  ;;  %v269_v49 = vld [vmem:[#allocation5 + $0x78] sm:$0xff]  ;;  %v2094_v58 = vld [vmem:[#allocation7] ss:$0 sm:$0xff] }
  0x8e   :  { %2357 = vmatpush3.bf16.msra.mxu0 %v2354_v11  ;;  %2387 = vmatprep.subr.bf16.mxu1 %v2386_v25  ;;  %v2406_v50 = vpack.c.bf16 %v269_v49, %v268_v48  ;;  %v396_v1 = vld [vmem:[#allocation10 + $0x8] sm:$0xff]  ;;  %v398_v2 = vld [vmem:[#allocation10 + $0x18] sm:$0xff]  ;;  %v395_v3 = vld [vmem:[#allocation10] sm:$0xff] }
  0x8f   :  { %2359 = vmatprep.subr.bf16.mxu0 %v2358_v22  ;;  %v2410_v4 = vpack.c.bf16 %v398_v2, %v396_v1  ;;  %v397_v5 = vld [vmem:[#allocation10 + $0x10] sm:$0xff]  ;;  %v400_v6 = vld [vmem:[#allocation10 + $0x28] sm:$0xff]  ;;  %v402_v7 = vld [vmem:[#allocation10 + $0x38] sm:$0xff] }
  0x90   :  { %v2412_v8 = vpack.c.bf16 %v397_v5, %v395_v3  ;;  %v2414_v9 = vpack.c.bf16 %v402_v7, %v400_v6  ;;  %v399_v10 = vld [vmem:[#allocation10 + $0x20] sm:$0xff]  ;;  %v401_v11 = vld [vmem:[#allocation10 + $0x30] sm:$0xff]  ;;  %v404_v12 = vld [vmem:[#allocation10 + $0x48] sm:$0xff] }
  0x91   :  { %2389 = vmatpush3.bf16.msra.mxu1 %v2386_v25  ;;  %v406_v13 = vld [vmem:[#allocation10 + $0x58] sm:$0xff]  ;;  %v2416_v14 = vpack.c.bf16 %v401_v11, %v399_v10  ;;  %v403_v16 = vld [vmem:[#allocation10 + $0x40] sm:$0xff]  ;;  %v405_v17 = vld [vmem:[#allocation10 + $0x50] sm:$0xff]  ;;  %v430_v11 = vshrl.u32 %v149_v51, 7 }
  0x92   :  { %2361 = vmatpush3.bf16.msra.mxu0 %v2358_v22  ;;  %2391 = vmatprep.subr.bf16.mxu1 %v2390_v31  ;;  %v2418_v15 = vpack.c.bf16 %v406_v13, %v404_v12  ;;  %v2420_v18 = vpack.c.bf16 %v405_v17, %v403_v16  ;;  %v408_v27 = vld [vmem:[#allocation10 + $0x68] sm:$0xff]  ;;  %v407_v30 = vld [vmem:[#allocation10 + $0x60] sm:$0xff]  ;;  %v421_v49 = vld [vmem:[#allocation10 + $0xd0] sm:$0xff] }
  0x93   :  { %2363 = vmatprep.subr.bf16.mxu0 %v2362_v28  ;;  %v412_v33 = vld [vmem:[#allocation10 + $0x88] sm:$0xff]  ;;  %v411_v36 = vld [vmem:[#allocation10 + $0x80] sm:$0xff]  ;;  %v2095_v2 = vld [vmem:[#allocation8] ss:$0 sm:$0xff]  ;;  %v3282_v12 = vsub.s32 0, %v430_v11  ;;  %v3284_v13 = vsub.s32 1, %v430_v11 }
  0x94   :  { %v416_v39 = vld [vmem:[#allocation10 + $0xa8] sm:$0xff]  ;;  %v415_v42 = vld [vmem:[#allocation10 + $0xa0] sm:$0xff] }
  0x95   :  { %2393 = vmatpush3.bf16.msra.mxu1 %v2390_v31  ;;  %v409_v31 = vld [vmem:[#allocation10 + $0x70] sm:$0xff]  ;;  %v420_v45 = vld [vmem:[#allocation10 + $0xc8] sm:$0xff]  ;;  %v419_v48 = vld [vmem:[#allocation10 + $0xc0] sm:$0xff] }
  0x96   :  { %2365 = vmatpush3.bf16.msra.mxu0 %v2362_v28  ;;  %2395 = vmatprep.subr.bf16.mxu1 %v2394_v37  ;;  %v410_v28 = vld [vmem:[#allocation10 + $0x78] sm:$0xff]  ;;  %v2424_v32 = vpack.c.bf16 %v409_v31, %v407_v30  ;;  %v586_v30 = vld [vmem:[#allocation11 + $0x8] sm:$0xff] }
  0x97   :  { %2367 = vmatprep.subr.bf16.mxu0 %v2366_v34  ;;  %v2422_v29 = vpack.c.bf16 %v410_v28, %v408_v27  ;;  %v588_v31 = vld [vmem:[#allocation11 + $0x18] sm:$0xff]  ;;  %v614_v11 = vld [vmem:[#allocation11 + $0xe8] sm:$0xff] }
  0x99   :  { %2397 = vmatpush3.bf16.msra.mxu1 %v2394_v37  ;;  %v413_v37 = vld [vmem:[#allocation10 + $0x90] sm:$0xff] }
  0x9a   :  { %2369 = vmatpush3.bf16.msra.mxu0 %v2366_v34  ;;  %2399 = vmatprep.subr.bf16.mxu1 %v2398_v43  ;;  %v414_v34 = vld [vmem:[#allocation10 + $0x98] sm:$0xff]  ;;  %v2428_v38 = vpack.c.bf16 %v413_v37, %v411_v36 }
  0x9b   :  { %2371 = vmatprep.subr.bf16.mxu0 %v2370_v40  ;;  %v2426_v35 = vpack.c.bf16 %v414_v34, %v412_v33  ;;  %v2442_v33 = vpack.c.bf16 %v588_v31, %v586_v30  ;;  %v587_v34 = vld [vmem:[#allocation11 + $0x10] sm:$0xff]  ;;  %v592_v36 = vld [vmem:[#allocation11 + $0x38] sm:$0xff]  ;;  %v617_v30 = vld [vmem:[#allocation11 + $0x100] sm:$0xff] }
  0x9c   :  { %v619_v31 = vld [vmem:[#allocation11 + $0x110] sm:$0xff] }
  0x9d   :  { %2401 = vmatpush3.bf16.msra.mxu1 %v2398_v43  ;;  %v417_v43 = vld [vmem:[#allocation10 + $0xb0] sm:$0xff] }
  0x9e   :  { %2373 = vmatpush3.bf16.msra.mxu0 %v2370_v40  ;;  %2403 = vmatprep.subr.bf16.mxu1 %v2402_v47  ;;  %v418_v40 = vld [vmem:[#allocation10 + $0xb8] sm:$0xff]  ;;  %v2432_v44 = vpack.c.bf16 %v417_v43, %v415_v42 }
  0x9f   :  { %2375 = vmatprep.subr.bf16.mxu0 %v2374_v46  ;;  %v2430_v41 = vpack.c.bf16 %v418_v40, %v416_v39  ;;  %v589_v39 = vld [vmem:[#allocation11 + $0x20] sm:$0xff]  ;;  %v591_v40 = vld [vmem:[#allocation11 + $0x30] sm:$0xff]  ;;  %v596_v42 = vld [vmem:[#allocation11 + $0x58] sm:$0xff] }
  0xa0   :  { %v2448_v43 = vpack.c.bf16 %v591_v40, %v589_v39  ;;  %v628_v39 = vld [vmem:[#allocation11 + $0x158] sm:$0xff] }
  0xa1   :  { %2405 = vmatpush3.bf16.msra.mxu1 %v2402_v47 }
  0xa2   :  { %2377 = vmatpush3.bf16.msra.mxu0 %v2374_v46  ;;  %2407 = vmatprep.subr.bf16.mxu1 %v2406_v50  ;;  %v422_v46 = vld [vmem:[#allocation10 + $0xd8] sm:$0xff] }
  0xa3   :  { %2411 = vmatprep.subr.bf16.mxu0 %v2410_v4  ;;  %v2434_v47 = vpack.c.bf16 %v422_v46, %v420_v45  ;;  %v2096_v4 = vld [vmem:[%s3620_s5] ss:$0 sm:$0xff]  ;;  %v593_v45 = vld [vmem:[#allocation11 + $0x40] sm:$0xff]  ;;  %v595_v46 = vld [vmem:[#allocation11 + $0x50] sm:$0xff] }
  0xa5   :  { %2409 = vmatpush3.bf16.msra.mxu1 %v2406_v50  ;;  %v2436_v50 = vpack.c.bf16 %v421_v49, %v419_v48  ;;  %v600_v48 = vld [vmem:[#allocation11 + $0x78] sm:$0xff]  ;;  %v2452_v49 = vpack.c.bf16 %v595_v46, %v593_v45 }
  0xa6   :  { %2443 = vmatprep.subr.bf16.mxu1 %v2442_v33  ;;  %v624_v33 = vld [vmem:[#allocation11 + $0x138] sm:$0xff] }
 0x108   :  { %v153_v53 = vpop.permute.xlu0 %152 }
 0x109   :  { %vm157_vm0 = vcmp.eq.s32.totalorder %v150_v52, %v153_v53  ;;  %v426_v53 = vld [vmem:[#allocation10 + $0xf8] sm:$0xff] }
 0x10a   :  { %2308 = vmatprep.mubr.msk.f32.mxu0 %vm157_vm0, %v3064_v54 }
 0x10c   :  { %v156_v55 = vpop.permute.xlu0 %155 }
 0x10d   :  { %vm158_vm1 = vcmp.eq.s32.totalorder %v150_v52, %v156_v55  ;;  %v424_v52 = vld [vmem:[#allocation10 + $0xe8] sm:$0xff]  ;;  %v423_v55 = vld [vmem:[#allocation10 + $0xe0] sm:$0xff] }
 0x10e   :  { %2309 = vmatmul.mubr.msk.f32.vlgmr.msra.gmra.mrb[0].mxu0 %vm158_vm1, %v3064_v54  ;;  %v2438_v54 = vpack.c.bf16 %v426_v53, %v424_v52  ;;  %v597_v52 = vld [vmem:[#allocation11 + $0x60] sm:$0xff]  ;;  %v599_v53 = vld [vmem:[#allocation11 + $0x70] sm:$0xff] }
 0x10f   :  { %2413 = vmatpush1.bf16.msra.mxu0 %v2412_v8 }
 0x110   :  { %2415 = vmatprep.subr.bf16.mxu0 %v2414_v9 }
 0x113   :  { %2417 = vmatpush1.bf16.msra.mxu0 %v2416_v14  ;;  %v427_v14 = vld [vmem:[%s3622_s7] sm:$0x3] }
 0x114   :  { %2419 = vmatprep.subr.bf16.mxu0 %v2418_v15  ;;  %v432_v15 = vrot.slane %v427_v14, %v3282_v12  ;;  %v436_v16 = vrot.slane %v427_v14, %v3284_v13  ;;  %v616_v14 = vld [vmem:[#allocation11 + $0xf8] sm:$0xff] }
 0x117   :  { %2421 = vmatpush1.bf16.msra.mxu0 %v2420_v18 }
 0x118   :  { %2423 = vmatprep.subr.bf16.mxu0 %v2422_v29 }
 0x11b   :  { %2425 = vmatpush1.bf16.msra.mxu0 %v2424_v32  ;;  %v585_v32 = vld [vmem:[#allocation11] sm:$0xff] }
 0x11c   :  { %2427 = vmatprep.subr.bf16.mxu0 %v2426_v35  ;;  %v590_v35 = vld [vmem:[#allocation11 + $0x28] sm:$0xff]  ;;  %v2444_v37 = vpack.c.bf16 %v587_v34, %v585_v32  ;;  %v2476_v34 = vpack.c.bf16 %v619_v31, %v617_v30 }
 0x11d   :  { %v622_v32 = vld [vmem:[#allocation11 + $0x128] sm:$0xff] }
 0x11f   :  { %2429 = vmatpush1.bf16.msra.mxu0 %v2428_v38  ;;  %v2446_v38 = vpack.c.bf16 %v592_v36, %v590_v35  ;;  %v2478_v35 = vpack.c.bf16 %v624_v33, %v622_v32  ;;  %v621_v36 = vld [vmem:[#allocation11 + $0x120] sm:$0xff] }
 0x120   :  { %2431 = vmatprep.subr.bf16.mxu0 %v2430_v41  ;;  %v594_v41 = vld [vmem:[#allocation11 + $0x48] sm:$0xff] }
 0x123   :  { %2433 = vmatpush1.bf16.msra.mxu0 %v2432_v44  ;;  %v2450_v44 = vpack.c.bf16 %v596_v42, %v594_v41  ;;  %v625_v42 = vld [vmem:[#allocation11 + $0x140] sm:$0xff] }
 0x124   :  { %2435 = vmatprep.subr.bf16.mxu0 %v2434_v47  ;;  %v598_v47 = vld [vmem:[#allocation11 + $0x68] sm:$0xff] }
 0x127   :  { %2437 = vmatpush1.bf16.msra.mxu0 %v2436_v50  ;;  %v2454_v50 = vpack.c.bf16 %v600_v48, %v598_v47 }
 0x128   :  { %2439 = vmatprep.subr.bf16.mxu0 %v2438_v54  ;;  %v602_v54 = vld [vmem:[#allocation11 + $0x88] sm:$0xff] }
 0x1e1   :  { %v2310_v56 = vpop.f32.mrb[0].mxu0 }
 0x1e2   :  { %v245_v57 = vpop.f32.mrb[1].mxu0 }
 0x1e3   :  { %2343 = vmatprep.mubr.f32.mxu1 %v245_v57 }
 0x1e4   :  { %2344 = vmatmul.mubr.f32.vlgmr.msra.gmra.mrb[0].mxu1 %v2310_v56  ;;  %v425_v56 = vld [vmem:[#allocation10 + $0xf0] sm:$0xff] }
 0x1e5   :  { %v2440_v57 = vpack.c.bf16 %v425_v56, %v423_v55  ;;  %2445 = vmatpush1.bf16.msra.mxu1 %v2444_v37  ;;  %v604_v55 = vld [vmem:[#allocation11 + $0x98] sm:$0xff]  ;;  %v2456_v56 = vpack.c.bf16 %v599_v53, %v597_v52  ;;  %v623_v37 = vld [vmem:[#allocation11 + $0x130] sm:$0xff] }
 0x1e6   :  { %2447 = vmatprep.subr.bf16.mxu1 %v2446_v38  ;;  %v626_v38 = vld [vmem:[#allocation11 + $0x148] sm:$0xff]  ;;  %v2480_v40 = vpack.c.bf16 %v623_v37, %v621_v36 }
 0x1e7   :  { %2441 = vmatpush1.bf16.msra.mxu0 %v2440_v57  ;;  %v2458_v57 = vpack.c.bf16 %v604_v55, %v602_v54  ;;  %v2482_v41 = vpack.c.bf16 %v628_v39, %v626_v38  ;;  %v520_v36 = vld [vmem:[%s3623_s8] sm:$0x3] }
 0x1e8   :  { %v521_v37 = vld [vmem:[%s3624_s9] sm:$0x3]  ;;  %v559_v38 = vrot.slane %v520_v36, %v3282_v12  ;;  %v563_v39 = vrot.slane %v520_v36, %v3284_v13 }
 0x1e9   :  { %2449 = vmatpush1.bf16.msra.mxu1 %v2448_v43  ;;  %v627_v43 = vld [vmem:[#allocation11 + $0x150] sm:$0xff] }
 0x1ea   :  { %2451 = vmatprep.subr.bf16.mxu1 %v2450_v44  ;;  %v2484_v44 = vpack.c.bf16 %v627_v43, %v625_v42  ;;  %v574_v42 = vrot.slane %v521_v37, %v3282_v12  ;;  %v578_v43 = vrot.slane %v521_v37, %v3284_v13 }
 0x1ed   :  { %2453 = vmatpush1.bf16.msra.mxu1 %v2452_v49 }
 0x1ee   :  { %2455 = vmatprep.subr.bf16.mxu1 %v2454_v50 }
 0x1f1   :  { %2457 = vmatpush1.bf16.msra.mxu1 %v2456_v56  ;;  %v630_v56 = vld [vmem:[#allocation11 + $0x168] sm:$0xff] }
 0x1f2   :  { %2459 = vmatprep.subr.bf16.mxu1 %v2458_v57  ;;  %v632_v57 = vld [vmem:[#allocation11 + $0x178] sm:$0xff] }
 0x2b7   :  { %v2345_v59 = vpop.f32.mrb[0].mxu1 }
 0x2b8   :  { %v343_v60 = vpop.f32.mrb[1].mxu1  ;;  %v349_v62 = vadd.f32 %v2345_v59, %v2094_v58 }
 0x2b9   :  { %v344_v61 = vadd.f32 %v2094_v58, %v343_v60  ;;  %v3065_v58 = vmov 0.0  }
 0x2ba   :  { %v353_v0 = vmax.f32 %v349_v62, 0.0  ;;  %503 = vmatprep.mubr.f32.mxu0 %v3065_v58 }
 0x2bb   :  { %v352_v63 = vmax.f32 %v344_v61, 0.0 }
 0x2bd   :  { %356 = vadd.xlane.f32.xlu1 %v352_v63 }
 0x2c1   :  { %358 = vadd.xlane.f32.xlu1 %v353_v0 }
 0x34a   :  { %v357_v19 = vpop.xlane.xlu1 %356 }
 0x34b   :  { %v361_v20 = vmul.f32 0.0078125, %v357_v19 }
 0x34d   :  { %v363_v21 = vsub.f32 %v352_v63, %v361_v20 }
 0x34e   :  { %v359_v22 = vpop.xlane.xlu1 %358 }
 0x34f   :  { %v362_v23 = vmul.f32 0.0078125, %v359_v22  ;;  %v365_v24 = vmul.f32 %v363_v21, %v363_v21 }
 0x351   :  { %v364_v25 = vsub.f32 %v353_v0, %v362_v23  ;;  %367 = vadd.xlane.f32.xlu0 %v365_v24 }
 0x353   :  { %v366_v26 = vmul.f32 %v364_v25, %v364_v25 }
 0x355   :  { %369 = vadd.xlane.f32.xlu1 %v366_v26 }
 0x3de   :  { %v368_v59 = vpop.xlane.xlu0 %367 }
 0x3df   :  { %v371_v60 = vmul.f32 0.0078125, %v368_v59  ;;  %v601_v59 = vld [vmem:[#allocation11 + $0x80] sm:$0xff] }
 0x3e1   :  { %v373_v61 = vadd.f32 1e-05, %v371_v60  ;;  %v603_v60 = vld [vmem:[#allocation11 + $0x90] sm:$0xff] }
 0x3e2   :  { %v370_v62 = vpop.xlane.xlu1 %369 }
 0x3e3   :  { %2813 = vrsqrt.f32 %v373_v61  ;;  %v372_v63 = vmul.f32 0.0078125, %v370_v62  ;;  %v606_v61 = vld [vmem:[#allocation11 + $0xa8] sm:$0xff]  ;;  %v608_v62 = vld [vmem:[#allocation11 + $0xb8] sm:$0xff] }
 0x3e5   :  { %v374_v0 = vadd.f32 1e-05, %v372_v63  ;;  %v2460_v63 = vpack.c.bf16 %v603_v60, %v601_v59  ;;  %v2486_v59 = vpack.c.bf16 %v632_v57, %v630_v56 }
 0x3e7   :  { %2815 = vrsqrt.f32 %v374_v0  ;;  %v2462_v0 = vpack.c.bf16 %v608_v62, %v606_v61  ;;  %2461 = vmatpush1.bf16.msra.mxu1 %v2460_v63  ;;  %v633_v62 = vld [vmem:[#allocation11 + $0x180] sm:$0xff]  ;;  %v635_v63 = vld [vmem:[#allocation11 + $0x190] sm:$0xff] }
 0x3e9   :  { %2463 = vmatprep.subr.bf16.mxu1 %v2462_v0  ;;  %v2492_v0 = vpack.c.bf16 %v635_v63, %v633_v62 }
 0x3ed   :  { %v2814_v1 = vpop.eup %2813 }
 0x3ee   :  { %v3271_v3 = vmul.f32 %v2814_v1, %v363_v21  ;;  %v605_v1 = vld [vmem:[#allocation11 + $0xa0] sm:$0xff] }
 0x3f0   :  { %v385_v5 = vmul.f32 %v2095_v2, %v3271_v3 }
 0x3f1   :  { %v2816_v6 = vpop.eup %2815 }
 0x3f2   :  { %v393_v7 = vadd.f32 %v2096_v4, %v385_v5  ;;  %v3277_v8 = vmul.f32 %v2816_v6, %v364_v25  ;;  %v612_v5 = vld [vmem:[#allocation11 + $0xd8] sm:$0xff] }
 0x3f4   :  { %504 = vmatmul.mubr.f32.vlgmr.msra.gmra.mrb[2].mxu0 %v393_v7  ;;  %v386_v9 = vmul.f32 %v2095_v2, %v3277_v8  ;;  %v607_v2 = vld [vmem:[#allocation11 + $0xb0] sm:$0xff] }
 0x3f5   :  { %509 = vmatprep.mubr.f32.mxu0 %v3065_v58  ;;  %v2464_v6 = vpack.c.bf16 %v607_v2, %v605_v1  ;;  %v638_v1 = vld [vmem:[#allocation11 + $0x1a8] sm:$0xff]  ;;  %v640_v2 = vld [vmem:[#allocation11 + $0x1b8] sm:$0xff] }
 0x3f6   :  { %v394_v10 = vadd.f32 %v2096_v4, %v386_v9  ;;  %v610_v4 = vld [vmem:[#allocation11 + $0xc8] sm:$0xff]  ;;  %v609_v9 = vld [vmem:[#allocation11 + $0xc0] sm:$0xff] }
 0x3f7   :  { %v2466_v7 = vpack.c.bf16 %v612_v5, %v610_v4  ;;  %2465 = vmatpush1.bf16.msra.mxu1 %v2464_v6  ;;  %v2494_v4 = vpack.c.bf16 %v640_v2, %v638_v1  ;;  %v637_v5 = vld [vmem:[#allocation11 + $0x1a0] sm:$0xff]  ;;  %v639_v6 = vld [vmem:[#allocation11 + $0x1b0] sm:$0xff] }
 0x3f8   :  { %510 = vmatmul.mubr.f32.gmra.mrb[4].mxu0 %v394_v10  ;;  %v611_v10 = vld [vmem:[#allocation11 + $0xd0] sm:$0xff] }
 0x3f9   :  { %2467 = vmatprep.subr.bf16.mxu1 %v2466_v7  ;;  %v642_v7 = vld [vmem:[#allocation11 + $0x1c8] sm:$0xff] }
 0x4c7   :  { %v505_v17 = vpop.f32.mrb[2].mxu0 }
 0x4c8   :  { %v3291_v18 = vadd.f32 %v505_v17, %v432_v15  ;;  %v507_v19 = vpop.f32.mrb[3].mxu0  ;;  %v613_v17 = vld [vmem:[#allocation11 + $0xe0] sm:$0xff] }
 0x4c9   :  { %v3293_v20 = vadd.f32 %v507_v19, %v436_v16  ;;  %v615_v19 = vld [vmem:[#allocation11 + $0xf0] sm:$0xff] }
 0x4ca   :  { %v516_v51 = vmax.f32 %v3291_v18, 0.0 }
 0x4cb   :  { %v517_v21 = vmax.f32 %v3293_v20, 0.0  ;;  %v511_v22 = vpop.f32.mrb[4].mxu0 }
 0x4cc   :  { %v3297_v23 = vadd.f32 %v511_v22, %v432_v15  ;;  %v513_v24 = vpop.f32.mrb[5].mxu0  ;;  %v2468_v15 = vpack.c.bf16 %v611_v10, %v609_v9  ;;  %v618_v22 = vld [vmem:[#allocation11 + $0x108] sm:$0xff]  ;;  %v2496_v9 = vpack.c.bf16 %v639_v6, %v637_v5  ;;  %v644_v10 = vld [vmem:[#allocation11 + $0x1d8] sm:$0xff]  ;;  %v806_v6 = vld [vmem:[#allocation13] sm:$0xff] }
 0x4cd   :  { %v3299_v25 = vadd.f32 %v513_v24, %v436_v16  ;;  %v522_v26 = vadd.f32 %v517_v21, %v516_v51  ;;  %v2470_v16 = vpack.c.bf16 %v616_v14, %v614_v11  ;;  %v620_v24 = vld [vmem:[#allocation11 + $0x118] sm:$0xff]  ;;  %v641_v11 = vld [vmem:[#allocation11 + $0x1c0] sm:$0xff]  ;;  %v643_v14 = vld [vmem:[#allocation11 + $0x1d0] sm:$0xff] }
 0x4ce   :  { %v518_v27 = vmax.f32 %v3297_v23, 0.0  ;;  %2469 = vmatpush1.bf16.msra.mxu1 %v2468_v15  ;;  %v629_v23 = vld [vmem:[#allocation11 + $0x160] sm:$0xff]  ;;  %v2498_v15 = vpack.c.bf16 %v644_v10, %v642_v7  ;;  %v823_v5 = vld [vmem:[#allocation13 + $0x88] sm:$0xff]  ;;  %v824_v10 = vld [vmem:[#allocation13 + $0x90] sm:$0xff] }
 0x4cf   :  { %v519_v28 = vmax.f32 %v3299_v25, 0.0  ;;  %523 = vadd.xlane.f32.xlu1 %v522_v26  ;;  %v2472_v26 = vpack.c.bf16 %v615_v19, %v613_v17  ;;  %2471 = vmatprep.subr.bf16.mxu1 %v2470_v16  ;;  %v634_v25 = vld [vmem:[#allocation11 + $0x188] sm:$0xff]  ;;  %v648_v17 = vld [vmem:[#allocation11 + $0x1f8] sm:$0xff]  ;;  %v2500_v19 = vpack.c.bf16 %v643_v14, %v641_v11 }
 0x4d0   :  { %v646_v16 = vld [vmem:[#allocation11 + $0x1e8] sm:$0xff]  ;;  %v825_v11 = vld [vmem:[#allocation13 + $0x98] sm:$0xff] }
 0x4d1   :  { %v525_v29 = vadd.f32 %v519_v28, %v518_v27 }
 0x4d2   :  { %2473 = vmatpush1.bf16.msra.mxu1 %v2472_v26  ;;  %v647_v26 = vld [vmem:[#allocation11 + $0x1f0] sm:$0xff] }
 0x4d3   :  { %526 = vadd.xlane.f32.xlu1 %v525_v29  ;;  %v2474_v29 = vpack.c.bf16 %v620_v24, %v618_v22  ;;  %v2502_v22 = vpack.c.bf16 %v648_v17, %v646_v16  ;;  %v645_v24 = vld [vmem:[#allocation11 + $0x1e0] sm:$0xff]  ;;  %v808_v16 = vld [vmem:[#allocation13 + $0x10] sm:$0xff]  ;;  %v809_v17 = vld [vmem:[#allocation13 + $0x18] sm:$0xff] }
 0x4d5   :  { %2475 = vmatprep.subr.bf16.mxu1 %v2474_v29  ;;  %v2504_v29 = vpack.c.bf16 %v647_v26, %v645_v24  ;;  %v2512_v24 = vpack.c.bf16 %v809_v17, %v808_v16 }
 0x4d6   :  { %2477 = vmatpush1.bf16.msra.mxu1 %v2476_v34 }
 0x4d7   :  { %2479 = vmatprep.subr.bf16.mxu1 %v2478_v35 }
 0x4da   :  { %2481 = vmatpush1.bf16.msra.mxu1 %v2480_v40 }
 0x4db   :  { %2483 = vmatprep.subr.bf16.mxu1 %v2482_v41 }
 0x4de   :  { %2485 = vmatpush1.bf16.msra.mxu1 %v2484_v44 }
 0x4df   :  { %2487 = vmatprep.subr.bf16.mxu1 %v2486_v59 }
 0x55c   :  { %v524_v45 = vpop.xlane.xlu1 %523 }
 0x55d   :  { %v529_v46 = vmul.f32 0.00390625, %v524_v45 }
 0x55f   :  { %v3313_v47 = vsub.f32 %v516_v51, %v529_v46  ;;  %v3317_v48 = vsub.f32 %v517_v21, %v529_v46 }
 0x560   :  { %v527_v49 = vpop.xlane.xlu1 %526 }
 0x561   :  { %v530_v50 = vmul.f32 0.00390625, %v527_v49  ;;  %v535_v52 = vmul.f32 %v3313_v47, %v3313_v47  ;;  %v536_v53 = vmul.f32 %v3317_v48, %v3317_v48 }
 0x563   :  { %v3325_v54 = vsub.f32 %v518_v27, %v530_v50  ;;  %v3329_v18 = vsub.f32 %v519_v28, %v530_v50  ;;  %v539_v51 = vadd.f32 %v536_v53, %v535_v52  ;;  %v631_v27 = vld [vmem:[#allocation11 + $0x170] sm:$0xff]  ;;  %v636_v28 = vld [vmem:[#allocation11 + $0x198] sm:$0xff] }
 0x564   :  { %v2488_v60 = vpack.c.bf16 %v631_v27, %v629_v23  ;;  %v2490_v61 = vpack.c.bf16 %v636_v28, %v634_v25 }
 0x565   :  { %540 = vadd.xlane.f32.xlu1 %v539_v51  ;;  %v537_v20 = vmul.f32 %v3325_v54, %v3325_v54  ;;  %v538_v21 = vmul.f32 %v3329_v18, %v3329_v18 }
 0x566   :  { %2489 = vmatpush1.bf16.msra.mxu1 %v2488_v60 }
 0x567   :  { %v542_v55 = vadd.f32 %v538_v21, %v537_v20  ;;  %2491 = vmatprep.subr.bf16.mxu1 %v2490_v61 }
 0x569   :  { %543 = vadd.xlane.f32.xlu1 %v542_v55 }
 0x56a   :  { %2493 = vmatpush1.bf16.msra.mxu1 %v2492_v0 }
 0x56b   :  { %2495 = vmatprep.subr.bf16.mxu1 %v2494_v4  ;;  %v822_v4 = vld [vmem:[#allocation13 + $0x80] sm:$0xff] }
 0x56c   :  { %v2506_v7 = vpack.c.bf16 %v823_v5, %v822_v4  ;;  %v820_v4 = vld [vmem:[#allocation13 + $0x70] sm:$0xff]  ;;  %v821_v5 = vld [vmem:[#allocation13 + $0x78] sm:$0xff] }
 0x56e   :  { %2497 = vmatpush1.bf16.msra.mxu1 %v2496_v9  ;;  %v807_v9 = vld [vmem:[#allocation13 + $0x8] sm:$0xff]  ;;  %2507 = vmatprep.subr.bf16.mxu0 %v2506_v7 }
 0x56f   :  { %2499 = vmatprep.subr.bf16.mxu1 %v2498_v15  ;;  %v2508_v14 = vpack.c.bf16 %v807_v9, %v806_v6  ;;  %v2510_v15 = vpack.c.bf16 %v825_v11, %v824_v10  ;;  %v2536_v6 = vpack.c.bf16 %v821_v5, %v820_v4  ;;  %v956_v7 = vld [vmem:[#allocation10 + $0x108] sm:$0xff]  ;;  %v958_v9 = vld [vmem:[#allocation10 + $0x118] sm:$0xff] }
 0x570   :  { %v2538_v10 = vpack.c.bf16 %v958_v9, %v956_v7  ;;  %v978_v4 = vld [vmem:[#allocation10 + $0x1b8] sm:$0xff]  ;;  %v975_v7 = vld [vmem:[#allocation10 + $0x1a0] sm:$0xff]  ;;  %v977_v9 = vld [vmem:[#allocation10 + $0x1b0] sm:$0xff] }
 0x571   :  { %2509 = vmatpush3.bf16.msra.mxu0 %v2508_v14 }
 0x572   :  { %2501 = vmatpush1.bf16.msra.mxu1 %v2500_v19  ;;  %v826_v19 = vld [vmem:[#allocation13 + $0xa0] sm:$0xff]  ;;  %2511 = vmatprep.subr.bf16.mxu0 %v2510_v15 }
 0x573   :  { %2503 = vmatprep.subr.bf16.mxu1 %v2502_v22  ;;  %v827_v22 = vld [vmem:[#allocation13 + $0xa8] sm:$0xff] }
 0x574   :  { %v2514_v26 = vpack.c.bf16 %v827_v22, %v826_v19  ;;  %v742_v22 = vld [vmem:[%s3627_s12] sm:$0x3] }
 0x575   :  { %2513 = vmatpush3.bf16.msra.mxu0 %v2512_v24  ;;  %v743_v24 = vld [vmem:[%s3628_s13] sm:$0x3] }
 0x576   :  { %2505 = vmatpush1.bf16.msra.mxu1 %v2504_v29  ;;  %v810_v29 = vld [vmem:[#allocation13 + $0x20] sm:$0xff]  ;;  %2515 = vmatprep.subr.bf16.mxu0 %v2514_v26  ;;  %v780_v26 = vrot.slane %v742_v22, %v3282_v12 }
 0x5f2   :  { %v541_v30 = vpop.xlane.xlu1 %540 }
 0x5f3   :  { %v545_v31 = vmul.f32 0.00390625, %v541_v30  ;;  %v811_v30 = vld [vmem:[#allocation13 + $0x28] sm:$0xff] }
 0x5f5   :  { %v547_v32 = vadd.f32 1e-05, %v545_v31  ;;  %v2516_v31 = vpack.c.bf16 %v811_v30, %v810_v29  ;;  %v784_v29 = vrot.slane %v742_v22, %v3284_v13  ;;  %v986_v22 = vld [vmem:[#allocation10 + $0x1f8] sm:$0xff] }
 0x5f6   :  { %v544_v33 = vpop.xlane.xlu1 %543 }
 0x5f7   :  { %2817 = vrsqrt.f32 %v547_v32  ;;  %v546_v34 = vmul.f32 0.00390625, %v544_v33  ;;  %2517 = vmatpush3.bf16.msra.mxu0 %v2516_v31 }
 0x5f9   :  { %v548_v35 = vadd.f32 1e-05, %v546_v34 }
 0x5fb   :  { %2819 = vrsqrt.f32 %v548_v35 }
 0x601   :  { %v2818_v40 = vpop.eup %2817 }
 0x602   :  { %v552_v41 = vmul.f32 %v2818_v40, %v3317_v48  ;;  %v551_v44 = vmul.f32 %v2818_v40, %v3313_v47  ;;  %v649_v47 = vld [vmem:[%s3626_s11] sm:$0x3] }
 0x603   :  { %v654_v56 = vrot.slane %v649_v47, %v3282_v12  ;;  %v658_v57 = vrot.slane %v649_v47, %v3284_v13  ;;  %v815_v47 = vld [vmem:[#allocation13 + $0x48] sm:$0xff] }
 0x604   :  { %v567_v45 = vmul.f32 %v563_v39, %v552_v41  ;;  %v566_v46 = vmul.f32 %v559_v38, %v551_v44 }
 0x605   :  { %v2820_v49 = vpop.eup %2819 }
 0x606   :  { %v582_v50 = vadd.f32 %v578_v43, %v567_v45  ;;  %v581_v52 = vadd.f32 %v574_v42, %v566_v46  ;;  %v554_v53 = vmul.f32 %v2820_v49, %v3329_v18  ;;  %v553_v51 = vmul.f32 %v2820_v49, %v3325_v54  ;;  %v828_v46 = vld [vmem:[#allocation13 + $0xb0] sm:$0xff]  ;;  %v829_v49 = vld [vmem:[#allocation13 + $0xb8] sm:$0xff] }
 0x608   :  { %725 = vmatprep.mubr.f32.mxu1 %v582_v50  ;;  %v569_v20 = vmul.f32 %v563_v39, %v554_v53  ;;  %v568_v21 = vmul.f32 %v559_v38, %v553_v51  ;;  %v2518_v50 = vpack.c.bf16 %v829_v49, %v828_v46  ;;  %v813_v53 = vld [vmem:[#allocation13 + $0x38] sm:$0xff] }
 0x609   :  { %726 = vmatmul.mubr.f32.vlgmr.msra.gmra.mrb[2].mxu1 %v581_v52  ;;  %v812_v52 = vld [vmem:[#allocation13 + $0x30] sm:$0xff] }
 0x60a   :  { %v584_v48 = vadd.f32 %v578_v43, %v569_v20  ;;  %v583_v55 = vadd.f32 %v574_v42, %v568_v21  ;;  %v2520_v51 = vpack.c.bf16 %v813_v53, %v812_v52  ;;  %2519 = vmatprep.subr.bf16.mxu0 %v2518_v50  ;;  %v830_v20 = vld [vmem:[#allocation13 + $0xc0] sm:$0xff]  ;;  %v831_v21 = vld [vmem:[#allocation13 + $0xc8] sm:$0xff] }
 0x60c   :  { %731 = vmatprep.mubr.f32.mxu1 %v584_v48  ;;  %2521 = vmatpush3.bf16.msra.mxu0 %v2520_v51  ;;  %v2522_v48 = vpack.c.bf16 %v831_v21, %v830_v20  ;;  %v961_v51 = vld [vmem:[#allocation10 + $0x130] sm:$0xff] }
 0x60d   :  { %732 = vmatmul.mubr.f32.gmra.mrb[4].mxu1 %v583_v55  ;;  %v814_v55 = vld [vmem:[#allocation13 + $0x40] sm:$0xff] }
 0x60e   :  { %2523 = vmatprep.subr.bf16.mxu0 %v2522_v48  ;;  %v964_v48 = vld [vmem:[#allocation10 + $0x148] sm:$0xff] }
 0x6dc   :  { %v727_v59 = vpop.f32.mrb[2].mxu1 }
 0x6dd   :  { %v728_v18 = vadd.f32 %v727_v59, %v654_v56  ;;  %v729_v23 = vpop.f32.mrb[3].mxu1  ;;  %v833_v59 = vld [vmem:[#allocation13 + $0xd8] sm:$0xff] }
 0x6de   :  { %v730_v54 = vadd.f32 %v729_v23, %v658_v57  ;;  %v816_v23 = vld [vmem:[#allocation13 + $0x50] sm:$0xff] }
 0x6df   :  { %v738_v27 = vmax.f32 %v728_v18, 0.0 }
 0x6e0   :  { %v739_v60 = vmax.f32 %v730_v54, 0.0  ;;  %v733_v25 = vpop.f32.mrb[4].mxu1  ;;  %v817_v54 = vld [vmem:[#allocation13 + $0x58] sm:$0xff] }
 0x6e1   :  { %v734_v28 = vadd.f32 %v733_v25, %v654_v56  ;;  %v735_v61 = vpop.f32.mrb[5].mxu1  ;;  %v2524_v56 = vpack.c.bf16 %v815_v47, %v814_v55  ;;  %v835_v25 = vld [vmem:[#allocation13 + $0xe8] sm:$0xff]  ;;  %v966_v55 = vld [vmem:[#allocation10 + $0x158] sm:$0xff] }
 0x6e2   :  { %v736_v62 = vadd.f32 %v735_v61, %v658_v57  ;;  %v744_v63 = vadd.f32 %v739_v60, %v738_v27  ;;  %v832_v57 = vld [vmem:[#allocation13 + $0xd0] sm:$0xff]  ;;  %v818_v61 = vld [vmem:[#allocation13 + $0x60] sm:$0xff] }
 0x6e3   :  { %v740_v0 = vmax.f32 %v734_v28, 0.0  ;;  %2525 = vmatpush3.bf16.msra.mxu0 %v2524_v56  ;;  %v2526_v18 = vpack.c.bf16 %v833_v59, %v832_v57  ;;  %v2546_v59 = vpack.c.bf16 %v966_v55, %v964_v48  ;;  %v2103_v55 = vld [vmem:[%s3622_s7 + $0x2] sm:$0x3] }
 0x6e4   :  { %v741_v1 = vmax.f32 %v736_v62, 0.0  ;;  %745 = vadd.xlane.f32.xlu1 %v744_v63  ;;  %v819_v62 = vld [vmem:[#allocation13 + $0x68] sm:$0xff] }
 0x6e5   :  { %2527 = vmatprep.subr.bf16.mxu0 %v2526_v18  ;;  %v2532_v63 = vpack.c.bf16 %v819_v62, %v818_v61  ;;  %v963_v18 = vld [vmem:[#allocation10 + $0x140] sm:$0xff]  ;;  %v974_v61 = vld [vmem:[#allocation10 + $0x198] sm:$0xff] }
 0x6e6   :  { %v747_v2 = vadd.f32 %v741_v1, %v740_v0 }
 0x6e8   :  { %748 = vadd.xlane.f32.xlu1 %v747_v2 }
 0x771   :  { %v746_v32 = vpop.xlane.xlu1 %745 }
 0x772   :  { %v750_v33 = vmul.f32 0.00390625, %v746_v32 }
 0x774   :  { %v3354_v34 = vsub.f32 %v738_v27, %v750_v33  ;;  %v3356_v35 = vsub.f32 %v739_v60, %v750_v33  ;;  %v2528_v27 = vpack.c.bf16 %v817_v54, %v816_v23  ;;  %v834_v60 = vld [vmem:[#allocation13 + $0xe0] sm:$0xff]  ;;  %v795_v33 = vrot.slane %v743_v24, %v3282_v12  ;;  %v965_v23 = vld [vmem:[#allocation10 + $0x150] sm:$0xff] }
 0x775   :  { %v749_v36 = vpop.xlane.xlu1 %748  ;;  %v2530_v28 = vpack.c.bf16 %v835_v25, %v834_v60  ;;  %v2548_v54 = vpack.c.bf16 %v965_v23, %v963_v18  ;;  %v967_v60 = vld [vmem:[#allocation10 + $0x160] sm:$0xff]  ;;  %v969_v25 = vld [vmem:[#allocation10 + $0x170] sm:$0xff] }
 0x776   :  { %v751_v37 = vmul.f32 0.00390625, %v749_v36  ;;  %v756_v38 = vmul.f32 %v3354_v34, %v3354_v34  ;;  %v757_v39 = vmul.f32 %v3356_v35, %v3356_v35  ;;  %2529 = vmatpush3.bf16.msra.mxu0 %v2528_v27  ;;  %v799_v36 = vrot.slane %v743_v24, %v3284_v13 }
 0x777   :  { %2531 = vmatprep.subr.bf16.mxu0 %v2530_v28  ;;  %v972_v28 = vld [vmem:[#allocation10 + $0x188] sm:$0xff]  ;;  %v2552_v62 = vpack.c.bf16 %v969_v25, %v967_v60 }
 0x778   :  { %v3362_v40 = vsub.f32 %v740_v0, %v751_v37  ;;  %v3364_v41 = vsub.f32 %v741_v1, %v751_v37  ;;  %v760_v42 = vadd.f32 %v757_v39, %v756_v38  ;;  %v836_v0 = vld [vmem:[#allocation13 + $0xf0] sm:$0xff]  ;;  %v837_v1 = vld [vmem:[#allocation13 + $0xf8] sm:$0xff]  ;;  %v955_v37 = vld [vmem:[#allocation10 + $0x100] sm:$0xff] }
 0x779   :  { %v2534_v2 = vpack.c.bf16 %v837_v1, %v836_v0  ;;  %v957_v38 = vld [vmem:[#allocation10 + $0x110] sm:$0xff]  ;;  %v971_v0 = vld [vmem:[#allocation10 + $0x180] sm:$0xff] }
 0x77a   :  { %761 = vadd.xlane.f32.xlu1 %v760_v42  ;;  %v758_v43 = vmul.f32 %v3362_v40, %v3362_v40  ;;  %v759_v44 = vmul.f32 %v3364_v41, %v3364_v41  ;;  %2533 = vmatpush3.bf16.msra.mxu0 %v2532_v63  ;;  %v2540_v46 = vpack.c.bf16 %v957_v38, %v955_v37  ;;  %v973_v1 = vld [vmem:[#allocation10 + $0x190] sm:$0xff] }
 0x77b   :  { %2535 = vmatprep.subr.bf16.mxu0 %v2534_v2  ;;  %v2554_v63 = vpack.c.bf16 %v974_v61, %v972_v28  ;;  %v976_v2 = vld [vmem:[#allocation10 + $0x1a8] sm:$0xff]  ;;  %v2556_v5 = vpack.c.bf16 %v973_v1, %v971_v0 }
 0x77c   :  { %v763_v45 = vadd.f32 %v759_v44, %v758_v43  ;;  %v960_v43 = vld [vmem:[#allocation10 + $0x128] sm:$0xff]  ;;  %v962_v44 = vld [vmem:[#allocation10 + $0x138] sm:$0xff] }
 0x77d   :  { %v2542_v53 = vpack.c.bf16 %v962_v44, %v960_v43  ;;  %v2097_v43 = vld [vmem:[%s3630_s15] ss:$0 sm:$0xff] }
 0x77e   :  { %764 = vadd.xlane.f32.xlu0 %v763_v45  ;;  %2537 = vmatpush3.bf16.msra.mxu0 %v2536_v6  ;;  %v2558_v6 = vpack.c.bf16 %v978_v4, %v976_v2  ;;  %v1149_v2 = vld [vmem:[#allocation11 + $0x208] sm:$0xff]  ;;  %v1151_v4 = vld [vmem:[#allocation11 + $0x218] sm:$0xff] }
 0x77f   :  { %2539 = vmatprep.subr.bf16.mxu0 %v2538_v10  ;;  %v980_v10 = vld [vmem:[#allocation10 + $0x1c8] sm:$0xff] }
 0x807   :  { %v762_v11 = vpop.xlane.xlu1 %761 }
 0x808   :  { %v766_v14 = vmul.f32 0.00390625, %v762_v11  ;;  %v982_v11 = vld [vmem:[#allocation10 + $0x1d8] sm:$0xff] }
 0x80a   :  { %v768_v15 = vadd.f32 1e-05, %v766_v14  ;;  %v2560_v14 = vpack.c.bf16 %v977_v9, %v975_v7  ;;  %v1150_v7 = vld [vmem:[#allocation11 + $0x210] sm:$0xff]  ;;  %v1153_v9 = vld [vmem:[#allocation11 + $0x228] sm:$0xff] }
 0x80b   :  { %v765_v16 = vpop.xlane.xlu0 %764 }
 0x80c   :  { %2821 = vrsqrt.f32 %v768_v15  ;;  %v767_v17 = vmul.f32 0.00390625, %v765_v16  ;;  %v2562_v15 = vpack.c.bf16 %v982_v11, %v980_v10  ;;  %v979_v16 = vld [vmem:[#allocation10 + $0x1c0] sm:$0xff]  ;;  %v1155_v10 = vld [vmem:[#allocation11 + $0x238] sm:$0xff] }
 0x80e   :  { %v769_v19 = vadd.f32 1e-05, %v767_v17  ;;  %v981_v17 = vld [vmem:[#allocation10 + $0x1d0] sm:$0xff] }
 0x80f   :  { %v2564_v24 = vpack.c.bf16 %v981_v17, %v979_v16  ;;  %v1154_v16 = vld [vmem:[#allocation11 + $0x230] sm:$0xff]  ;;  %v1157_v17 = vld [vmem:[#allocation11 + $0x248] sm:$0xff] }
 0x810   :  { %2823 = vrsqrt.f32 %v769_v19  ;;  %v984_v19 = vld [vmem:[#allocation10 + $0x1e8] sm:$0xff] }
 0x816   :  { %v2822_v30 = vpop.eup %2821 }
 0x817   :  { %v772_v31 = vmul.f32 %v2822_v30, %v3354_v34  ;;  %v773_v32 = vmul.f32 %v2822_v30, %v3356_v35  ;;  %v959_v35 = vld [vmem:[#allocation10 + $0x120] sm:$0xff]  ;;  %v985_v30 = vld [vmem:[#allocation10 + $0x1f0] sm:$0xff] }
 0x818   :  { %v2544_v57 = vpack.c.bf16 %v961_v51, %v959_v35 }
 0x819   :  { %v787_v39 = vmul.f32 %v780_v26, %v772_v31  ;;  %v788_v42 = vmul.f32 %v784_v29, %v773_v32  ;;  %v2101_v31 = vld [vmem:[#allocation8 + $0x1] ss:$0 sm:$0xff] }
 0x81a   :  { %v2824_v45 = vpop.eup %2823  ;;  %v945_v38 = vmul.f32 %v2101_v31, %v3277_v8 }
 0x81b   :  { %v802_v49 = vadd.f32 %v795_v33, %v787_v39  ;;  %v803_v50 = vadd.f32 %v799_v36, %v788_v42  ;;  %v775_v52 = vmul.f32 %v2824_v45, %v3364_v41  ;;  %v774_v34 = vmul.f32 %v2824_v45, %v3362_v40  ;;  %v968_v41 = vld [vmem:[#allocation10 + $0x168] sm:$0xff]  ;;  %v970_v40 = vld [vmem:[#allocation10 + $0x178] sm:$0xff] }
 0x81c   :  { %v2550_v27 = vpack.c.bf16 %v970_v40, %v968_v41 }
 0x81d   :  { %909 = vmatprep.mubr.f32.mxu0 %v803_v50  ;;  %v790_v20 = vmul.f32 %v784_v29, %v775_v52  ;;  %v789_v21 = vmul.f32 %v780_v26, %v774_v34  ;;  %v2566_v26 = vpack.c.bf16 %v986_v22, %v984_v19  ;;  %v983_v29 = vld [vmem:[#allocation10 + $0x1e0] sm:$0xff]  ;;  %v1159_v19 = vld [vmem:[#allocation11 + $0x258] sm:$0xff] }
 0x81e   :  { %910 = vmatmul.mubr.f32.vlgmr.msra.gmra.mrb[6].mxu0 %v802_v49  ;;  %v2568_v32 = vpack.c.bf16 %v985_v30, %v983_v29  ;;  %v1158_v29 = vld [vmem:[#allocation11 + $0x250] sm:$0xff]  ;;  %v1161_v30 = vld [vmem:[#allocation11 + $0x268] sm:$0xff] }
 0x81f   :  { %2541 = vmatpush1.bf16.msra.mxu0 %v2540_v46  ;;  %v805_v47 = vadd.f32 %v799_v36, %v790_v20  ;;  %v804_v56 = vadd.f32 %v795_v33, %v789_v21  ;;  %v944_v33 = vmul.f32 %v2101_v31, %v3271_v3  ;;  %v2102_v36 = vld [vmem:[%s3620_s5 + $0x1] ss:$0 sm:$0xff]  ;;  %v1163_v31 = vld [vmem:[#allocation11 + $0x278] sm:$0xff] }
 0x820   :  { %2543 = vmatprep.subr.bf16.mxu0 %v2542_v53  ;;  %v953_v39 = vadd.f32 %v2102_v36, %v945_v38  ;;  %v1165_v38 = vld [vmem:[#allocation11 + $0x288] sm:$0xff] }
 0x821   :  { %914 = vmatprep.mubr.f32.mxu0 %v805_v47  ;;  %v952_v37 = vadd.f32 %v2102_v36, %v944_v33  ;;  %v993_v47 = vrot.slane %v2103_v55, %v3282_v12  ;;  %v2582_v33 = vpack.c.bf16 %v1163_v31, %v1161_v30  ;;  %v1160_v36 = vld [vmem:[#allocation11 + $0x260] sm:$0xff] }
 0x822   :  { %915 = vmatmul.mubr.f32.gmra.mrb[8].mxu0 %v804_v56  ;;  %v997_v56 = vrot.slane %v2103_v55, %v3284_v13  ;;  %v1174_v55 = vld [vmem:[#allocation11 + $0x2d0] sm:$0xff] }
 0x823   :  { %2545 = vmatpush1.bf16.msra.mxu0 %v2544_v57  ;;  %1064 = vmatprep.mubr.f32.mxu0 %v3065_v58 }
 0x824   :  { %2547 = vmatprep.subr.bf16.mxu0 %v2546_v59 }
 0x827   :  { %2549 = vmatpush1.bf16.msra.mxu0 %v2548_v54 }
 0x828   :  { %2551 = vmatprep.subr.bf16.mxu0 %v2550_v27 }
 0x82b   :  { %2553 = vmatpush1.bf16.msra.mxu0 %v2552_v62 }
 0x82c   :  { %2555 = vmatprep.subr.bf16.mxu0 %v2554_v63 }
 0x82f   :  { %2557 = vmatpush1.bf16.msra.mxu0 %v2556_v5  ;;  %v1148_v5 = vld [vmem:[#allocation11 + $0x200] sm:$0xff] }
 0x830   :  { %2559 = vmatprep.subr.bf16.mxu0 %v2558_v6  ;;  %v2570_v6 = vpack.c.bf16 %v1151_v4, %v1149_v2  ;;  %v2572_v11 = vpack.c.bf16 %v1150_v7, %v1148_v5  ;;  %v1180_v2 = vld [vmem:[#allocation11 + $0x300] sm:$0xff]  ;;  %v1182_v4 = vld [vmem:[#allocation11 + $0x310] sm:$0xff]  ;;  %v1185_v5 = vld [vmem:[#allocation11 + $0x328] sm:$0xff] }
 0x831   :  { %v2604_v7 = vpack.c.bf16 %v1182_v4, %v1180_v2 }
 0x832   :  { %2571 = vmatprep.subr.bf16.mxu1 %v2570_v6  ;;  %v1187_v6 = vld [vmem:[#allocation11 + $0x338] sm:$0xff] }
 0x833   :  { %2561 = vmatpush1.bf16.msra.mxu0 %v2560_v14  ;;  %v2574_v14 = vpack.c.bf16 %v1155_v10, %v1153_v9  ;;  %2573 = vmatpush1.bf16.msra.mxu1 %v2572_v11  ;;  %v2606_v9 = vpack.c.bf16 %v1187_v6, %v1185_v5  ;;  %v1184_v10 = vld [vmem:[#allocation11 + $0x320] sm:$0xff]  ;;  %v1186_v11 = vld [vmem:[#allocation11 + $0x330] sm:$0xff] }
 0x834   :  { %2563 = vmatprep.subr.bf16.mxu0 %v2562_v15  ;;  %v1152_v15 = vld [vmem:[#allocation11 + $0x220] sm:$0xff] }
 0x835   :  { %v2576_v22 = vpack.c.bf16 %v1154_v16, %v1152_v15  ;;  %2575 = vmatprep.subr.bf16.mxu1 %v2574_v14  ;;  %v1189_v14 = vld [vmem:[#allocation11 + $0x348] sm:$0xff]  ;;  %v1191_v15 = vld [vmem:[#allocation11 + $0x358] sm:$0xff]  ;;  %v2608_v16 = vpack.c.bf16 %v1186_v11, %v1184_v10 }
 0x836   :  { %v2104_v10 = vld [vmem:[%s3623_s8 + $0x2] sm:$0x3] }
 0x837   :  { %2565 = vmatpush1.bf16.msra.mxu0 %v2564_v24  ;;  %v2578_v24 = vpack.c.bf16 %v1159_v19, %v1157_v17  ;;  %2577 = vmatpush1.bf16.msra.mxu1 %v2576_v22  ;;  %v2610_v17 = vpack.c.bf16 %v1191_v15, %v1189_v14  ;;  %v1188_v19 = vld [vmem:[#allocation11 + $0x340] sm:$0xff]  ;;  %v1190_v22 = vld [vmem:[#allocation11 + $0x350] sm:$0xff]  ;;  %v2105_v11 = vld [vmem:[%s3624_s9 + $0x2] sm:$0x3]  ;;  %v1121_v14 = vrot.slane %v2104_v10, %v3282_v12 }
 0x838   :  { %2567 = vmatprep.subr.bf16.mxu0 %v2566_v26  ;;  %v1156_v26 = vld [vmem:[#allocation11 + $0x240] sm:$0xff]  ;;  %v1125_v15 = vrot.slane %v2104_v10, %v3284_v13 }
 0x839   :  { %2579 = vmatprep.subr.bf16.mxu1 %v2578_v24  ;;  %v2612_v24 = vpack.c.bf16 %v1190_v22, %v1188_v19  ;;  %v1136_v22 = vrot.slane %v2105_v11, %v3282_v12 }
 0x83b   :  { %2569 = vmatpush1.bf16.msra.mxu0 %v2568_v32  ;;  %v2580_v32 = vpack.c.bf16 %v1158_v29, %v1156_v26 }
 0x83d   :  { %2581 = vmatpush1.bf16.msra.mxu1 %v2580_v32 }
 0x83e   :  { %1065 = vmatmul.mubr.f32.vlgmr.msra.gmra.mrb[10].mxu0 %v952_v37  ;;  %v1162_v37 = vld [vmem:[#allocation11 + $0x270] sm:$0xff]  ;;  %2583 = vmatprep.subr.bf16.mxu1 %v2582_v33 }
 0x83f   :  { %1070 = vmatprep.mubr.f32.mxu0 %v3065_v58 }
 0x842   :  { %1071 = vmatmul.mubr.f32.gmra.mrb[12].mxu0 %v953_v39  ;;  %v1167_v39 = vld [vmem:[#allocation11 + $0x298] sm:$0xff] }
 0x8f1   :  { %v2194_v42 = vpop.f32.mrb[6].mxu0 }
 0x8f2   :  { %v2195_v44 = vpop.f32.mrb[7].mxu0 }
 0x8f3   :  { %v2196_v45 = vadd.f32 %v2195_v44, %v2194_v42  ;;  %v2584_v42 = vpack.c.bf16 %v1162_v37, %v1160_v36  ;;  %v1164_v44 = vld [vmem:[#allocation11 + $0x280] sm:$0xff] }
 0x8f5   :  { %v912_v46 = vadd.f32 %v2196_v45, %v2097_v43  ;;  %v2197_v49 = vpop.f32.mrb[8].mxu0  ;;  %v1166_v45 = vld [vmem:[#allocation11 + $0x290] sm:$0xff]  ;;  %2585 = vmatpush1.bf16.msra.mxu1 %v2584_v42  ;;  %v1193_v42 = vld [vmem:[#allocation11 + $0x368] sm:$0xff] }
 0x8f6   :  { %v2198_v50 = vpop.f32.mrb[9].mxu0 }
 0x8f7   :  { %v2098_v52 = vmul.f32 -1.442695, %v912_v46  ;;  %v2199_v34 = vadd.f32 %v2198_v50, %v2197_v49  ;;  %v1169_v46 = vld [vmem:[#allocation11 + $0x2a8] sm:$0xff]  ;;  %v1171_v49 = vld [vmem:[#allocation11 + $0x2b8] sm:$0xff]  ;;  %v2588_v50 = vpack.c.bf16 %v1166_v45, %v1164_v44 }
 0x8f9   :  { %2825 = vpow2.f32 %v2098_v52  ;;  %v917_v53 = vadd.f32 %v2199_v34, %v2097_v43  ;;  %v2586_v43 = vpack.c.bf16 %v1167_v39, %v1165_v38  ;;  %v2590_v52 = vpack.c.bf16 %v1171_v49, %v1169_v46  ;;  %v1168_v34 = vld [vmem:[#allocation11 + $0x2a0] sm:$0xff] }
 0x8fa   :  { %v1196_v49 = vld [vmem:[#allocation11 + $0x380] sm:$0xff] }
 0x8fb   :  { %v2099_v35 = vmul.f32 -1.442695, %v917_v53  ;;  %2587 = vmatprep.subr.bf16.mxu1 %v2586_v43  ;;  %v1170_v53 = vld [vmem:[#allocation11 + $0x2b0] sm:$0xff]  ;;  %v1195_v43 = vld [vmem:[#allocation11 + $0x378] sm:$0xff] }
 0x8fc   :  { %2589 = vmatpush1.bf16.msra.mxu1 %v2588_v50  ;;  %v2614_v44 = vpack.c.bf16 %v1195_v43, %v1193_v42  ;;  %v1198_v50 = vld [vmem:[#allocation11 + $0x390] sm:$0xff] }
 0x8fd   :  { %2827 = vpow2.f32 %v2099_v35  ;;  %v1173_v35 = vld [vmem:[#allocation11 + $0x2c8] sm:$0xff]  ;;  %2591 = vmatprep.subr.bf16.mxu1 %v2590_v52  ;;  %v2620_v52 = vpack.c.bf16 %v1198_v50, %v1196_v49 }
 0x903   :  { %v2826_v51 = vpop.eup %2825 }
 0x904   :  { %v926_v20 = vadd.f32 1.0, %v2826_v51  ;;  %v1175_v51 = vld [vmem:[#allocation11 + $0x2d8] sm:$0xff] }
 0x906   :  { %2829 = vrcp.f32 %v926_v20  ;;  %v2592_v20 = vpack.c.bf16 %v1170_v53, %v1168_v34  ;;  %v1201_v34 = vld [vmem:[#allocation11 + $0x3a8] sm:$0xff]  ;;  %v1203_v53 = vld [vmem:[#allocation11 + $0x3b8] sm:$0xff] }
 0x907   :  { %v2828_v21 = vpop.eup %2827 }
 0x908   :  { %v927_v48 = vadd.f32 1.0, %v2828_v21  ;;  %v2594_v21 = vpack.c.bf16 %v1175_v51, %v1173_v35  ;;  %2593 = vmatpush1.bf16.msra.mxu1 %v2592_v20  ;;  %v2622_v35 = vpack.c.bf16 %v1203_v53, %v1201_v34  ;;  %v1200_v51 = vld [vmem:[#allocation11 + $0x3a0] sm:$0xff]  ;;  %v1202_v20 = vld [vmem:[#allocation11 + $0x3b0] sm:$0xff] }
 0x90a   :  { %2831 = vrcp.f32 %v927_v48  ;;  %v1172_v48 = vld [vmem:[#allocation11 + $0x2c0] sm:$0xff]  ;;  %2595 = vmatprep.subr.bf16.mxu1 %v2594_v21  ;;  %v2624_v21 = vpack.c.bf16 %v1202_v20, %v1200_v51  ;;  %v1390_v51 = vld [vmem:[#allocation13 + $0x188] sm:$0xff] }
 0x90b   :  { %v1373_v20 = vld [vmem:[#allocation13 + $0x100] sm:$0xff] }
 0x910   :  { %v2830_v57 = vpop.eup %2829 }
 0x911   :  { %932 = vst [vmem:[#allocation14] sm:$0xff] %v2830_v57  ;;  %v1066_v59 = vpop.f32.mrb[10].mxu0  ;;  %v2596_v57 = vpack.c.bf16 %v1174_v55, %v1172_v48  ;;  %v1205_v48 = vld [vmem:[#allocation11 + $0x3c8] sm:$0xff]  ;;  %v1207_v55 = vld [vmem:[#allocation11 + $0x3d8] sm:$0xff] }
 0x912   :  { %v3399_v18 = vadd.f32 %v1066_v59, %v993_v47  ;;  %v1068_v23 = vpop.f32.mrb[11].mxu0 }
 0x913   :  { %v3401_v41 = vadd.f32 %v1068_v23, %v997_v56  ;;  %v1176_v23 = vld [vmem:[#allocation11 + $0x2e0] sm:$0xff]  ;;  %2597 = vmatpush1.bf16.msra.mxu1 %v2596_v57  ;;  %v1206_v57 = vld [vmem:[#allocation11 + $0x3d0] sm:$0xff] }
 0x914   :  { %v2832_v40 = vpop.eup %2831  ;;  %v1077_v54 = vmax.f32 %v3399_v18, 0.0 }
 0x915   :  { %933 = vst [vmem:[#allocation14 + $0x18] sm:$0xff] %v2832_v40  ;;  %v1078_v27 = vmax.f32 %v3401_v41, 0.0  ;;  %v1072_v60 = vpop.f32.mrb[12].mxu0  ;;  %v1178_v40 = vld [vmem:[#allocation11 + $0x2f0] sm:$0xff] }
 0x916   :  { %v3405_v25 = vadd.f32 %v1072_v60, %v993_v47  ;;  %v1074_v28 = vpop.f32.mrb[13].mxu0  ;;  %v1177_v47 = vld [vmem:[#allocation11 + $0x2e8] sm:$0xff] }
 0x917   :  { %v3407_v61 = vadd.f32 %v1074_v28, %v997_v56  ;;  %v1085_v62 = vadd.f32 %v1078_v27, %v1077_v54  ;;  %v1179_v56 = vld [vmem:[#allocation11 + $0x2f8] sm:$0xff]  ;;  %v1181_v60 = vld [vmem:[#allocation11 + $0x308] sm:$0xff] }
 0x918   :  { %v1079_v63 = vmax.f32 %v3405_v25, 0.0  ;;  %v2598_v59 = vpack.c.bf16 %v1179_v56, %v1177_v47  ;;  %v1183_v28 = vld [vmem:[#allocation11 + $0x318] sm:$0xff]  ;;  %v1192_v25 = vld [vmem:[#allocation11 + $0x360] sm:$0xff]  ;;  %v2626_v47 = vpack.c.bf16 %v1207_v55, %v1205_v48  ;;  %v1374_v48 = vld [vmem:[#allocation13 + $0x108] sm:$0xff] }
 0x919   :  { %v1080_v0 = vmax.f32 %v3407_v61, 0.0  ;;  %1086 = vadd.xlane.f32.xlu1 %v1085_v62  ;;  %v2600_v62 = vpack.c.bf16 %v1178_v40, %v1176_v23  ;;  %v1197_v61 = vld [vmem:[#allocation11 + $0x388] sm:$0xff]  ;;  %v1204_v56 = vld [vmem:[#allocation11 + $0x3c0] sm:$0xff]  ;;  %v1211_v40 = vld [vmem:[#allocation11 + $0x3f8] sm:$0xff] }
 0x91a   :  { %2599 = vmatprep.subr.bf16.mxu1 %v2598_v59  ;;  %v2628_v59 = vpack.c.bf16 %v1206_v57, %v1204_v56  ;;  %v1209_v23 = vld [vmem:[#allocation11 + $0x3e8] sm:$0xff]  ;;  %v1391_v55 = vld [vmem:[#allocation13 + $0x190] sm:$0xff]  ;;  %v2636_v56 = vpack.c.bf16 %v1374_v48, %v1373_v20  ;;  %v1526_v48 = vld [vmem:[#allocation10 + $0x218] sm:$0xff] }
 0x91b   :  { %v1088_v1 = vadd.f32 %v1080_v0, %v1079_v63  ;;  %2601 = vmatpush1.bf16.msra.mxu1 %v2600_v62  ;;  %v1210_v62 = vld [vmem:[#allocation11 + $0x3f0] sm:$0xff] }
 0x91d   :  { %1089 = vadd.xlane.f32.xlu0 %v1088_v1  ;;  %v2602_v1 = vpack.c.bf16 %v1183_v28, %v1181_v60  ;;  %v1208_v60 = vld [vmem:[#allocation11 + $0x3e0] sm:$0xff]  ;;  %v2630_v28 = vpack.c.bf16 %v1211_v40, %v1209_v23  ;;  %v1376_v23 = vld [vmem:[#allocation13 + $0x118] sm:$0xff] }
 0x91e   :  { %v1393_v40 = vld [vmem:[#allocation13 + $0x1a0] sm:$0xff] }
 0x91f   :  { %2603 = vmatprep.subr.bf16.mxu1 %v2602_v1  ;;  %v2632_v1 = vpack.c.bf16 %v1210_v62, %v1208_v60  ;;  %v1394_v60 = vld [vmem:[#allocation13 + $0x1a8] sm:$0xff] }
 0x920   :  { %2605 = vmatpush1.bf16.msra.mxu1 %v2604_v7  ;;  %v2642_v62 = vpack.c.bf16 %v1394_v60, %v1393_v40  ;;  %v2107_v60 = vld [vmem:[%s3627_s12 + $0x2] sm:$0x3] }
 0x921   :  { %2607 = vmatprep.subr.bf16.mxu1 %v2606_v9 }
 0x924   :  { %2609 = vmatpush1.bf16.msra.mxu1 %v2608_v16 }
 0x925   :  { %2611 = vmatprep.subr.bf16.mxu1 %v2610_v17 }
 0x928   :  { %2613 = vmatpush1.bf16.msra.mxu1 %v2612_v24  ;;  %v1140_v24 = vrot.slane %v2105_v11, %v3284_v13 }
 0x929   :  { %2615 = vmatprep.subr.bf16.mxu1 %v2614_v44 }
 0x9a6   :  { %v1087_v26 = vpop.xlane.xlu1 %1086 }
 0x9a7   :  { %v1091_v29 = vmul.f32 0.00390625, %v1087_v26 }
 0x9a9   :  { %v3421_v30 = vsub.f32 %v1077_v54, %v1091_v29  ;;  %v3425_v31 = vsub.f32 %v1078_v27, %v1091_v29 }
 0x9aa   :  { %v1090_v32 = vpop.xlane.xlu0 %1089 }
 0x9ab   :  { %v1092_v33 = vmul.f32 0.00390625, %v1090_v32  ;;  %v1097_v36 = vmul.f32 %v3421_v30, %v3421_v30  ;;  %v1098_v37 = vmul.f32 %v3425_v31, %v3425_v31 }
 0x9ad   :  { %v3433_v38 = vsub.f32 %v1079_v63, %v1092_v33  ;;  %v3437_v18 = vsub.f32 %v1080_v0, %v1092_v33  ;;  %v1101_v54 = vadd.f32 %v1098_v37, %v1097_v36  ;;  %v1194_v63 = vld [vmem:[#allocation11 + $0x370] sm:$0xff]  ;;  %v1199_v0 = vld [vmem:[#allocation11 + $0x398] sm:$0xff] }
 0x9ae   :  { %v2616_v45 = vpack.c.bf16 %v1194_v63, %v1192_v25  ;;  %v2618_v46 = vpack.c.bf16 %v1199_v0, %v1197_v61 }
 0x9af   :  { %1102 = vadd.xlane.f32.xlu1 %v1101_v54  ;;  %v1099_v41 = vmul.f32 %v3433_v38, %v3433_v38  ;;  %v1100_v27 = vmul.f32 %v3437_v18, %v3437_v18 }
 0x9b0   :  { %2617 = vmatpush1.bf16.msra.mxu1 %v2616_v45 }
 0x9b1   :  { %v1104_v39 = vadd.f32 %v1100_v27, %v1099_v41  ;;  %2619 = vmatprep.subr.bf16.mxu1 %v2618_v46 }
 0x9b3   :  { %1105 = vadd.xlane.f32.xlu0 %v1104_v39 }
 0x9b4   :  { %2621 = vmatpush1.bf16.msra.mxu1 %v2620_v52 }
 0x9b5   :  { %2623 = vmatprep.subr.bf16.mxu1 %v2622_v35  ;;  %v1389_v35 = vld [vmem:[#allocation13 + $0x180] sm:$0xff] }
 0x9b8   :  { %2625 = vmatpush1.bf16.msra.mxu1 %v2624_v21  ;;  %v2634_v21 = vpack.c.bf16 %v1390_v51, %v1389_v35  ;;  %v1387_v35 = vld [vmem:[#allocation13 + $0x170] sm:$0xff]  ;;  %v1388_v51 = vld [vmem:[#allocation13 + $0x178] sm:$0xff] }
 0x9b9   :  { %2627 = vmatprep.subr.bf16.mxu1 %v2626_v47  ;;  %v1392_v47 = vld [vmem:[#allocation13 + $0x198] sm:$0xff]  ;;  %v2664_v20 = vpack.c.bf16 %v1388_v51, %v1387_v35 }
 0x9ba   :  { %v2638_v57 = vpack.c.bf16 %v1392_v47, %v1391_v55  ;;  %2635 = vmatprep.subr.bf16.mxu0 %v2634_v21  ;;  %v1524_v21 = vld [vmem:[#allocation10 + $0x208] sm:$0xff]  ;;  %v1546_v35 = vld [vmem:[#allocation10 + $0x2b8] sm:$0xff] }
 0x9bb   :  { %2637 = vmatpush3.bf16.msra.mxu0 %v2636_v56  ;;  %v2666_v55 = vpack.c.bf16 %v1526_v48, %v1524_v21  ;;  %v1543_v21 = vld [vmem:[#allocation10 + $0x2a0] sm:$0xff]  ;;  %v1545_v48 = vld [vmem:[#allocation10 + $0x2b0] sm:$0xff] }
 0x9bc   :  { %2629 = vmatpush1.bf16.msra.mxu1 %v2628_v59  ;;  %v1375_v59 = vld [vmem:[#allocation13 + $0x110] sm:$0xff]  ;;  %2639 = vmatprep.subr.bf16.mxu0 %v2638_v57 }
 0x9bd   :  { %2631 = vmatprep.subr.bf16.mxu1 %v2630_v28  ;;  %v2640_v28 = vpack.c.bf16 %v1376_v23, %v1375_v59 }
 0x9bf   :  { %2641 = vmatpush3.bf16.msra.mxu0 %v2640_v28  ;;  %v2108_v28 = vld [vmem:[%s3628_s13 + $0x2] sm:$0x3] }
 0x9c0   :  { %2633 = vmatpush1.bf16.msra.mxu1 %v2632_v1  ;;  %v1377_v1 = vld [vmem:[#allocation13 + $0x120] sm:$0xff]  ;;  %2643 = vmatprep.subr.bf16.mxu0 %v2642_v62  ;;  %v1346_v62 = vrot.slane %v2107_v60, %v3282_v12 }
 0xa3c   :  { %v1103_v2 = vpop.xlane.xlu1 %1102 }
 0xa3d   :  { %v1107_v4 = vmul.f32 0.00390625, %v1103_v2  ;;  %v1378_v2 = vld [vmem:[#allocation13 + $0x128] sm:$0xff] }
 0xa3f   :  { %v1109_v5 = vadd.f32 1e-05, %v1107_v4  ;;  %v2644_v4 = vpack.c.bf16 %v1378_v2, %v1377_v1  ;;  %v1350_v1 = vrot.slane %v2107_v60, %v3284_v13  ;;  %v1554_v60 = vld [vmem:[#allocation10 + $0x2f8] sm:$0xff] }
 0xa40   :  { %v1106_v6 = vpop.xlane.xlu0 %1105 }
 0xa41   :  { %2833 = vrsqrt.f32 %v1109_v5  ;;  %v1108_v7 = vmul.f32 0.00390625, %v1106_v6  ;;  %2645 = vmatpush3.bf16.msra.mxu0 %v2644_v4 }
 0xa43   :  { %v1110_v9 = vadd.f32 1e-05, %v1108_v7 }
 0xa45   :  { %2835 = vrsqrt.f32 %v1110_v9 }
 0xa4b   :  { %v2834_v16 = vpop.eup %2833 }
 0xa4c   :  { %v1113_v17 = vmul.f32 %v2834_v16, %v3421_v30  ;;  %v1114_v19 = vmul.f32 %v2834_v16, %v3425_v31  ;;  %v2106_v31 = vld [vmem:[%s3626_s11 + $0x2] sm:$0x3] }
 0xa4d   :  { %v1218_v42 = vrot.slane %v2106_v31, %v3282_v12  ;;  %v1222_v43 = vrot.slane %v2106_v31, %v3284_v13  ;;  %v1382_v31 = vld [vmem:[#allocation13 + $0x148] sm:$0xff] }
 0xa4e   :  { %v1128_v26 = vmul.f32 %v1121_v14, %v1113_v17  ;;  %v1129_v29 = vmul.f32 %v1125_v15, %v1114_v19 }
 0xa4f   :  { %v2836_v32 = vpop.eup %2835 }
 0xa50   :  { %v1143_v33 = vadd.f32 %v1136_v22, %v1128_v26  ;;  %v1144_v36 = vadd.f32 %v1140_v24, %v1129_v29  ;;  %v1116_v37 = vmul.f32 %v2836_v32, %v3437_v18  ;;  %v1115_v54 = vmul.f32 %v2836_v32, %v3433_v38  ;;  %v1395_v29 = vld [vmem:[#allocation13 + $0x1b0] sm:$0xff]  ;;  %v1396_v32 = vld [vmem:[#allocation13 + $0x1b8] sm:$0xff] }
 0xa52   :  { %1289 = vmatprep.mubr.f32.mxu1 %v1144_v36  ;;  %v1131_v41 = vmul.f32 %v1125_v15, %v1116_v37  ;;  %v1130_v27 = vmul.f32 %v1121_v14, %v1115_v54  ;;  %v1379_v36 = vld [vmem:[#allocation13 + $0x130] sm:$0xff]  ;;  %v1380_v37 = vld [vmem:[#allocation13 + $0x138] sm:$0xff] }
 0xa53   :  { %1290 = vmatmul.mubr.f32.vlgmr.msra.gmra.mrb[6].mxu1 %v1143_v33  ;;  %v2646_v33 = vpack.c.bf16 %v1396_v32, %v1395_v29  ;;  %v2648_v54 = vpack.c.bf16 %v1380_v37, %v1379_v36 }
 0xa54   :  { %v1146_v30 = vadd.f32 %v1140_v24, %v1131_v41  ;;  %v1145_v39 = vadd.f32 %v1136_v22, %v1130_v27  ;;  %v1397_v41 = vld [vmem:[#allocation13 + $0x1c0] sm:$0xff]  ;;  %v1398_v27 = vld [vmem:[#allocation13 + $0x1c8] sm:$0xff] }
 0xa55   :  { %2647 = vmatprep.subr.bf16.mxu0 %v2646_v33 }
 0xa56   :  { %1295 = vmatprep.mubr.f32.mxu1 %v1146_v30  ;;  %2649 = vmatpush3.bf16.msra.mxu0 %v2648_v54  ;;  %v2650_v30 = vpack.c.bf16 %v1398_v27, %v1397_v41  ;;  %v1529_v54 = vld [vmem:[#allocation10 + $0x230] sm:$0xff] }
 0xa57   :  { %1296 = vmatmul.mubr.f32.gmra.mrb[8].mxu1 %v1145_v39  ;;  %v1381_v39 = vld [vmem:[#allocation13 + $0x140] sm:$0xff] }
 0xa58   :  { %2651 = vmatprep.subr.bf16.mxu0 %v2650_v30  ;;  %v1532_v30 = vld [vmem:[#allocation10 + $0x248] sm:$0xff] }
 0xb26   :  { %v1291_v44 = vpop.f32.mrb[6].mxu1 }
 0xb27   :  { %v1292_v18 = vadd.f32 %v1291_v44, %v1218_v42  ;;  %v1293_v25 = vpop.f32.mrb[7].mxu1  ;;  %v1400_v44 = vld [vmem:[#allocation13 + $0x1d8] sm:$0xff] }
 0xb28   :  { %v1294_v38 = vadd.f32 %v1293_v25, %v1222_v43  ;;  %v1383_v25 = vld [vmem:[#allocation13 + $0x150] sm:$0xff] }
 0xb29   :  { %v1302_v63 = vmax.f32 %v1292_v18, 0.0 }
 0xb2a   :  { %v1303_v45 = vmax.f32 %v1294_v38, 0.0  ;;  %v1297_v61 = vpop.f32.mrb[8].mxu1  ;;  %v1384_v38 = vld [vmem:[#allocation13 + $0x158] sm:$0xff] }
 0xb2b   :  { %v1298_v0 = vadd.f32 %v1297_v61, %v1218_v42  ;;  %v1299_v46 = vpop.f32.mrb[9].mxu1  ;;  %v2652_v42 = vpack.c.bf16 %v1382_v31, %v1381_v39  ;;  %v1402_v61 = vld [vmem:[#allocation13 + $0x1e8] sm:$0xff]  ;;  %v1534_v39 = vld [vmem:[#allocation10 + $0x258] sm:$0xff] }
 0xb2c   :  { %v1300_v49 = vadd.f32 %v1299_v46, %v1222_v43  ;;  %v1310_v50 = vadd.f32 %v1303_v45, %v1302_v63  ;;  %v1399_v43 = vld [vmem:[#allocation13 + $0x1d0] sm:$0xff]  ;;  %v1385_v46 = vld [vmem:[#allocation13 + $0x160] sm:$0xff] }
 0xb2d   :  { %v1304_v52 = vmax.f32 %v1298_v0, 0.0  ;;  %2653 = vmatpush3.bf16.msra.mxu0 %v2652_v42  ;;  %v2654_v18 = vpack.c.bf16 %v1400_v44, %v1399_v43  ;;  %v2674_v44 = vpack.c.bf16 %v1534_v39, %v1532_v30 }
 0xb2e   :  { %v1305_v34 = vmax.f32 %v1300_v49, 0.0  ;;  %1311 = vadd.xlane.f32.xlu1 %v1310_v50  ;;  %v1386_v49 = vld [vmem:[#allocation13 + $0x168] sm:$0xff] }
 0xb2f   :  { %2655 = vmatprep.subr.bf16.mxu0 %v2654_v18  ;;  %v2660_v50 = vpack.c.bf16 %v1386_v49, %v1385_v46  ;;  %v1531_v18 = vld [vmem:[#allocation10 + $0x240] sm:$0xff]  ;;  %v1542_v46 = vld [vmem:[#allocation10 + $0x298] sm:$0xff] }
 0xb30   :  { %v1313_v53 = vadd.f32 %v1305_v34, %v1304_v52 }
 0xb32   :  { %1314 = vadd.xlane.f32.xlu0 %v1313_v53 }
 0xbbb   :  { %v1312_v5 = vpop.xlane.xlu1 %1311 }
 0xbbc   :  { %v1316_v6 = vmul.f32 0.00390625, %v1312_v5 }
 0xbbe   :  { %v3462_v7 = vsub.f32 %v1302_v63, %v1316_v6  ;;  %v3464_v9 = vsub.f32 %v1303_v45, %v1316_v6  ;;  %v2656_v63 = vpack.c.bf16 %v1384_v38, %v1383_v25  ;;  %v1401_v45 = vld [vmem:[#allocation13 + $0x1e0] sm:$0xff]  ;;  %v1361_v6 = vrot.slane %v2108_v28, %v3282_v12  ;;  %v1533_v25 = vld [vmem:[#allocation10 + $0x250] sm:$0xff] }
 0xbbf   :  { %v1315_v10 = vpop.xlane.xlu0 %1314  ;;  %v2658_v0 = vpack.c.bf16 %v1402_v61, %v1401_v45  ;;  %v2676_v38 = vpack.c.bf16 %v1533_v25, %v1531_v18  ;;  %v1535_v45 = vld [vmem:[#allocation10 + $0x260] sm:$0xff]  ;;  %v1537_v61 = vld [vmem:[#allocation10 + $0x270] sm:$0xff] }
 0xbc0   :  { %v1317_v11 = vmul.f32 0.00390625, %v1315_v10  ;;  %v1322_v14 = vmul.f32 %v3462_v7, %v3462_v7  ;;  %v1323_v15 = vmul.f32 %v3464_v9, %v3464_v9  ;;  %2657 = vmatpush3.bf16.msra.mxu0 %v2656_v63  ;;  %v1365_v10 = vrot.slane %v2108_v28, %v3284_v13 }
 0xbc1   :  { %2659 = vmatprep.subr.bf16.mxu0 %v2658_v0  ;;  %v1540_v0 = vld [vmem:[#allocation10 + $0x288] sm:$0xff]  ;;  %v2680_v49 = vpack.c.bf16 %v1537_v61, %v1535_v45 }
 0xbc2   :  { %v3470_v16 = vsub.f32 %v1304_v52, %v1317_v11  ;;  %v3472_v17 = vsub.f32 %v1305_v34, %v1317_v11  ;;  %v1326_v19 = vadd.f32 %v1323_v15, %v1322_v14  ;;  %v1403_v52 = vld [vmem:[#allocation13 + $0x1f0] sm:$0xff]  ;;  %v1404_v34 = vld [vmem:[#allocation13 + $0x1f8] sm:$0xff]  ;;  %v1523_v11 = vld [vmem:[#allocation10 + $0x200] sm:$0xff] }
 0xbc3   :  { %v2662_v53 = vpack.c.bf16 %v1404_v34, %v1403_v52  ;;  %v1525_v14 = vld [vmem:[#allocation10 + $0x210] sm:$0xff]  ;;  %v1539_v52 = vld [vmem:[#allocation10 + $0x280] sm:$0xff] }
 0xbc4   :  { %1327 = vadd.xlane.f32.xlu1 %v1326_v19  ;;  %v1324_v22 = vmul.f32 %v3470_v16, %v3470_v16  ;;  %v1325_v24 = vmul.f32 %v3472_v17, %v3472_v17  ;;  %2661 = vmatpush3.bf16.msra.mxu0 %v2660_v50  ;;  %v2668_v29 = vpack.c.bf16 %v1525_v14, %v1523_v11  ;;  %v1541_v34 = vld [vmem:[#allocation10 + $0x290] sm:$0xff] }
 0xbc5   :  { %2663 = vmatprep.subr.bf16.mxu0 %v2662_v53  ;;  %v2682_v50 = vpack.c.bf16 %v1542_v46, %v1540_v0  ;;  %v1544_v53 = vld [vmem:[#allocation10 + $0x2a8] sm:$0xff]  ;;  %v2684_v51 = vpack.c.bf16 %v1541_v34, %v1539_v52  ;;  %v1719_v52 = vld [vmem:[#allocation11 + $0x418] sm:$0xff]  ;;  %v1716_v34 = vld [vmem:[#allocation11 + $0x400] sm:$0xff] }
 0xbc6   :  { %v1329_v26 = vadd.f32 %v1325_v24, %v1324_v22  ;;  %v1528_v22 = vld [vmem:[#allocation10 + $0x228] sm:$0xff]  ;;  %v1530_v24 = vld [vmem:[#allocation10 + $0x238] sm:$0xff] }
 0xbc7   :  { %v2670_v37 = vpack.c.bf16 %v1530_v24, %v1528_v22  ;;  %v2110_v22 = vld [vmem:[%s3630_s15 + $0x1] ss:$0 sm:$0xff] }
 0xbc8   :  { %1330 = vadd.xlane.f32.xlu0 %v1329_v26  ;;  %2665 = vmatpush3.bf16.msra.mxu0 %v2664_v20  ;;  %v2686_v20 = vpack.c.bf16 %v1546_v35, %v1544_v53  ;;  %v1718_v35 = vld [vmem:[#allocation11 + $0x410] sm:$0xff] }
 0xbc9   :  { %2667 = vmatprep.subr.bf16.mxu0 %v2666_v55  ;;  %v1548_v55 = vld [vmem:[#allocation10 + $0x2c8] sm:$0xff] }
 0xc51   :  { %v1328_v47 = vpop.xlane.xlu1 %1327 }
 0xc52   :  { %v1332_v56 = vmul.f32 0.00390625, %v1328_v47  ;;  %v1550_v47 = vld [vmem:[#allocation10 + $0x2d8] sm:$0xff] }
 0xc54   :  { %v1334_v57 = vadd.f32 1e-05, %v1332_v56  ;;  %v2688_v56 = vpack.c.bf16 %v1545_v48, %v1543_v21  ;;  %v2700_v21 = vpack.c.bf16 %v1718_v35, %v1716_v34  ;;  %v1754_v35 = vld [vmem:[#allocation11 + $0x530] sm:$0xff] }
 0xc55   :  { %v1331_v59 = vpop.xlane.xlu0 %1330 }
 0xc56   :  { %2837 = vrsqrt.f32 %v1334_v57  ;;  %v1333_v23 = vmul.f32 0.00390625, %v1331_v59  ;;  %v2690_v57 = vpack.c.bf16 %v1550_v47, %v1548_v55  ;;  %v1547_v59 = vld [vmem:[#allocation10 + $0x2c0] sm:$0xff]  ;;  %v1722_v47 = vld [vmem:[#allocation11 + $0x430] sm:$0xff] }
 0xc57   :  { %v1720_v55 = vld [vmem:[#allocation11 + $0x420] sm:$0xff] }
 0xc58   :  { %v1335_v40 = vadd.f32 1e-05, %v1333_v23  ;;  %v1549_v23 = vld [vmem:[#allocation10 + $0x2d0] sm:$0xff] }
 0xc59   :  { %v2692_v28 = vpack.c.bf16 %v1549_v23, %v1547_v59  ;;  %v2704_v59 = vpack.c.bf16 %v1722_v47, %v1720_v55  ;;  %v1756_v55 = vld [vmem:[#allocation11 + $0x540] sm:$0xff]  ;;  %v1758_v47 = vld [vmem:[#allocation11 + $0x550] sm:$0xff] }
 0xc5a   :  { %2839 = vrsqrt.f32 %v1335_v40  ;;  %v1552_v40 = vld [vmem:[#allocation10 + $0x2e8] sm:$0xff] }
 0xc60   :  { %v2838_v2 = vpop.eup %2837 }
 0xc61   :  { %v1338_v4 = vmul.f32 %v2838_v2, %v3462_v7  ;;  %v1339_v5 = vmul.f32 %v2838_v2, %v3464_v9  ;;  %v1527_v9 = vld [vmem:[#allocation10 + $0x220] sm:$0xff]  ;;  %v1553_v2 = vld [vmem:[#allocation10 + $0x2f0] sm:$0xff] }
 0xc62   :  { %v2672_v43 = vpack.c.bf16 %v1529_v54, %v1527_v9 }
 0xc63   :  { %v1353_v15 = vmul.f32 %v1346_v62, %v1338_v4  ;;  %v1354_v19 = vmul.f32 %v1350_v1, %v1339_v5  ;;  %v2114_v4 = vld [vmem:[#allocation8 + $0x2] ss:$0 sm:$0xff] }
 0xc64   :  { %v2840_v26 = vpop.eup %2839  ;;  %v1513_v14 = vmul.f32 %v2114_v4, %v3277_v8 }
 0xc65   :  { %v1368_v32 = vadd.f32 %v1361_v6, %v1353_v15  ;;  %v1369_v33 = vadd.f32 %v1365_v10, %v1354_v19  ;;  %v1341_v36 = vmul.f32 %v2840_v26, %v3472_v17  ;;  %v1340_v7 = vmul.f32 %v2840_v26, %v3470_v16  ;;  %v1536_v17 = vld [vmem:[#allocation10 + $0x268] sm:$0xff]  ;;  %v1538_v16 = vld [vmem:[#allocation10 + $0x278] sm:$0xff] }
 0xc66   :  { %v2678_v63 = vpack.c.bf16 %v1538_v16, %v1536_v17 }
 0xc67   :  { %1477 = vmatprep.mubr.f32.mxu0 %v1369_v33  ;;  %v1356_v41 = vmul.f32 %v1350_v1, %v1341_v36  ;;  %v1355_v27 = vmul.f32 %v1346_v62, %v1340_v7  ;;  %v2694_v62 = vpack.c.bf16 %v1554_v60, %v1552_v40  ;;  %v1551_v1 = vld [vmem:[#allocation10 + $0x2e0] sm:$0xff]  ;;  %v1726_v60 = vld [vmem:[#allocation11 + $0x450] sm:$0xff] }
 0xc68   :  { %1478 = vmatmul.mubr.f32.vlgmr.msra.gmra.mrb[14].mxu0 %v1368_v32  ;;  %v2696_v5 = vpack.c.bf16 %v1553_v2, %v1551_v1  ;;  %v1724_v40 = vld [vmem:[#allocation11 + $0x440] sm:$0xff] }
 0xc69   :  { %2669 = vmatpush1.bf16.msra.mxu0 %v2668_v29  ;;  %v1371_v31 = vadd.f32 %v1365_v10, %v1356_v41  ;;  %v1370_v42 = vadd.f32 %v1361_v6, %v1355_v27  ;;  %v1512_v6 = vmul.f32 %v2114_v4, %v3271_v3  ;;  %v2115_v10 = vld [vmem:[%s3620_s5 + $0x2] ss:$0 sm:$0xff]  ;;  %v2116_v41 = vld [vmem:[%s3622_s7 + $0x4] sm:$0x3]  ;;  %v2708_v1 = vpack.c.bf16 %v1726_v60, %v1724_v40  ;;  %v1728_v4 = vld [vmem:[#allocation11 + $0x460] sm:$0xff] }
 0xc6a   :  { %2671 = vmatprep.subr.bf16.mxu0 %v2670_v37  ;;  %v1521_v15 = vadd.f32 %v2115_v10, %v1513_v14  ;;  %v1561_v27 = vrot.slane %v2116_v41, %v3282_v12  ;;  %v1565_v30 = vrot.slane %v2116_v41, %v3284_v13 }
 0xc6b   :  { %1482 = vmatprep.mubr.f32.mxu0 %v1371_v31  ;;  %v1520_v11 = vadd.f32 %v2115_v10, %v1512_v6  ;;  %v1733_v6 = vld [vmem:[#allocation11 + $0x488] sm:$0xff]  ;;  %v1735_v10 = vld [vmem:[#allocation11 + $0x498] sm:$0xff] }
 0xc6c   :  { %1483 = vmatmul.mubr.f32.gmra.mrb[16].mxu0 %v1370_v42  ;;  %v2714_v14 = vpack.c.bf16 %v1735_v10, %v1733_v6  ;;  %v1763_v6 = vld [vmem:[#allocation11 + $0x578] sm:$0xff] }
 0xc6d   :  { %2673 = vmatpush1.bf16.msra.mxu0 %v2672_v43  ;;  %1632 = vmatprep.mubr.f32.mxu0 %v3065_v58 }
 0xc6e   :  { %2675 = vmatprep.subr.bf16.mxu0 %v2674_v44 }
 0xc71   :  { %2677 = vmatpush1.bf16.msra.mxu0 %v2676_v38 }
 0xc72   :  { %2679 = vmatprep.subr.bf16.mxu0 %v2678_v63 }
 0xc75   :  { %2681 = vmatpush1.bf16.msra.mxu0 %v2680_v49 }
 0xc76   :  { %2683 = vmatprep.subr.bf16.mxu0 %v2682_v50  ;;  %v1717_v50 = vld [vmem:[#allocation11 + $0x408] sm:$0xff] }
 0xc77   :  { %v2698_v53 = vpack.c.bf16 %v1719_v52, %v1717_v50  ;;  %v1755_v50 = vld [vmem:[#allocation11 + $0x538] sm:$0xff] }
 0xc79   :  { %2685 = vmatpush1.bf16.msra.mxu0 %v2684_v51  ;;  %v1721_v51 = vld [vmem:[#allocation11 + $0x428] sm:$0xff]  ;;  %2699 = vmatprep.subr.bf16.mxu1 %v2698_v53  ;;  %v1752_v53 = vld [vmem:[#allocation11 + $0x520] sm:$0xff] }
 0xc7a   :  { %2687 = vmatprep.subr.bf16.mxu0 %v2686_v20  ;;  %v1723_v20 = vld [vmem:[#allocation11 + $0x438] sm:$0xff]  ;;  %2701 = vmatpush1.bf16.msra.mxu1 %v2700_v21  ;;  %v2736_v21 = vpack.c.bf16 %v1754_v35, %v1752_v53 }
 0xc7b   :  { %v2702_v48 = vpack.c.bf16 %v1723_v20, %v1721_v51  ;;  %v1757_v51 = vld [vmem:[#allocation11 + $0x548] sm:$0xff]  ;;  %v1759_v20 = vld [vmem:[#allocation11 + $0x558] sm:$0xff] }
 0xc7d   :  { %2689 = vmatpush1.bf16.msra.mxu0 %v2688_v56  ;;  %v1725_v56 = vld [vmem:[#allocation11 + $0x448] sm:$0xff]  ;;  %2703 = vmatprep.subr.bf16.mxu1 %v2702_v48  ;;  %v2738_v48 = vpack.c.bf16 %v1759_v20, %v1757_v51 }
 0xc7e   :  { %2691 = vmatprep.subr.bf16.mxu0 %v2690_v57  ;;  %v1727_v57 = vld [vmem:[#allocation11 + $0x458] sm:$0xff]  ;;  %2705 = vmatpush1.bf16.msra.mxu1 %v2704_v59 }
 0xc7f   :  { %v2706_v23 = vpack.c.bf16 %v1727_v57, %v1725_v56  ;;  %v2740_v56 = vpack.c.bf16 %v1758_v47, %v1756_v55 }
 0xc81   :  { %2693 = vmatpush1.bf16.msra.mxu0 %v2692_v28  ;;  %v1729_v28 = vld [vmem:[#allocation11 + $0x468] sm:$0xff]  ;;  %2707 = vmatprep.subr.bf16.mxu1 %v2706_v23 }
 0xc82   :  { %2695 = vmatprep.subr.bf16.mxu0 %v2694_v62  ;;  %v1731_v62 = vld [vmem:[#allocation11 + $0x478] sm:$0xff]  ;;  %2709 = vmatpush1.bf16.msra.mxu1 %v2708_v1 }
 0xc83   :  { %v2710_v2 = vpack.c.bf16 %v1731_v62, %v1729_v28 }
 0xc85   :  { %2697 = vmatpush1.bf16.msra.mxu0 %v2696_v5  ;;  %v1730_v5 = vld [vmem:[#allocation11 + $0x470] sm:$0xff]  ;;  %2711 = vmatprep.subr.bf16.mxu1 %v2710_v2 }
 0xc88   :  { %1633 = vmatmul.mubr.f32.vlgmr.msra.gmra.mrb[18].mxu0 %v1520_v11  ;;  %v2712_v11 = vpack.c.bf16 %v1730_v5, %v1728_v4  ;;  %v1761_v5 = vld [vmem:[#allocation11 + $0x568] sm:$0xff] }
 0xc89   :  { %1638 = vmatprep.mubr.f32.mxu0 %v3065_v58  ;;  %v2742_v10 = vpack.c.bf16 %v1763_v6, %v1761_v5 }
 0xc8a   :  { %2713 = vmatpush1.bf16.msra.mxu1 %v2712_v11 }
 0xc8b   :  { %2715 = vmatprep.subr.bf16.mxu1 %v2714_v14 }
 0xc8c   :  { %1639 = vmatmul.mubr.f32.gmra.mrb[20].mxu0 %v1521_v15  ;;  %v1732_v15 = vld [vmem:[#allocation11 + $0x480] sm:$0xff] }
 0xd3b   :  { %v2232_v19 = vpop.f32.mrb[14].mxu0 }
 0xd3c   :  { %v2233_v24 = vpop.f32.mrb[15].mxu0 }
 0xd3d   :  { %v2234_v3 = vadd.f32 %v2233_v24, %v2232_v19  ;;  %v1734_v19 = vld [vmem:[#allocation11 + $0x490] sm:$0xff]  ;;  %v1739_v24 = vld [vmem:[#allocation11 + $0x4b8] sm:$0xff] }
 0xd3f   :  { %v1480_v26 = vadd.f32 %v2234_v3, %v2110_v22  ;;  %v2235_v29 = vpop.f32.mrb[16].mxu0  ;;  %v2716_v3 = vpack.c.bf16 %v1734_v19, %v1732_v15  ;;  %v1764_v15 = vld [vmem:[#allocation11 + $0x580] sm:$0xff]  ;;  %v1766_v19 = vld [vmem:[#allocation11 + $0x590] sm:$0xff] }
 0xd40   :  { %v2236_v32 = vpop.f32.mrb[17].mxu0 }
 0xd41   :  { %v2111_v33 = vmul.f32 -1.442695, %v1480_v26  ;;  %v2237_v36 = vadd.f32 %v2236_v32, %v2235_v29  ;;  %v1736_v29 = vld [vmem:[#allocation11 + $0x4a0] sm:$0xff]  ;;  %v1738_v32 = vld [vmem:[#allocation11 + $0x4b0] sm:$0xff]  ;;  %2717 = vmatpush1.bf16.msra.mxu1 %v2716_v3  ;;  %v1771_v3 = vld [vmem:[#allocation11 + $0x5b8] sm:$0xff] }
 0xd43   :  { %2841 = vpow2.f32 %v2111_v33  ;;  %v1485_v7 = vadd.f32 %v2237_v36, %v2110_v22  ;;  %v1737_v22 = vld [vmem:[#allocation11 + $0x4a8] sm:$0xff]  ;;  %v1743_v36 = vld [vmem:[#allocation11 + $0x4d8] sm:$0xff] }
 0xd44   :  { %v2718_v26 = vpack.c.bf16 %v1739_v24, %v1737_v22  ;;  %v1741_v33 = vld [vmem:[#allocation11 + $0x4c8] sm:$0xff]  ;;  %v2748_v22 = vpack.c.bf16 %v1766_v19, %v1764_v15 }
 0xd45   :  { %v2112_v8 = vmul.f32 -1.442695, %v1485_v7  ;;  %v2720_v7 = vpack.c.bf16 %v1738_v32, %v1736_v29  ;;  %v1769_v24 = vld [vmem:[#allocation11 + $0x5a8] sm:$0xff]  ;;  %v1768_v29 = vld [vmem:[#allocation11 + $0x5a0] sm:$0xff]  ;;  %v1770_v32 = vld [vmem:[#allocation11 + $0x5b0] sm:$0xff] }
 0xd46   :  { %2719 = vmatprep.subr.bf16.mxu1 %v2718_v26  ;;  %v2750_v26 = vpack.c.bf16 %v1771_v3, %v1769_v24  ;;  %v1958_v24 = vld [vmem:[#allocation13 + $0x288] sm:$0xff]  ;;  %v1941_v3 = vld [vmem:[#allocation13 + $0x200] sm:$0xff] }
 0xd47   :  { %2843 = vpow2.f32 %v2112_v8  ;;  %v2722_v8 = vpack.c.bf16 %v1743_v36, %v1741_v33  ;;  %2721 = vmatpush1.bf16.msra.mxu1 %v2720_v7  ;;  %v2752_v33 = vpack.c.bf16 %v1770_v32, %v1768_v29  ;;  %v1773_v36 = vld [vmem:[#allocation11 + $0x5c8] sm:$0xff]  ;;  %v1775_v7 = vld [vmem:[#allocation11 + $0x5d8] sm:$0xff]  ;;  %v1959_v32 = vld [vmem:[#allocation13 + $0x290] sm:$0xff] }
 0xd48   :  { %v1942_v29 = vld [vmem:[#allocation13 + $0x208] sm:$0xff] }
 0xd49   :  { %2723 = vmatprep.subr.bf16.mxu1 %v2722_v8  ;;  %v2754_v8 = vpack.c.bf16 %v1775_v7, %v1773_v36  ;;  %v2764_v36 = vpack.c.bf16 %v1942_v29, %v1941_v3 }
 0xd4d   :  { %v2842_v37 = vpop.eup %2841 }
 0xd4e   :  { %v1494_v58 = vadd.f32 1.0, %v2842_v37  ;;  %v1740_v37 = vld [vmem:[#allocation11 + $0x4c0] sm:$0xff] }
 0xd50   :  { %2845 = vrcp.f32 %v1494_v58  ;;  %v1742_v58 = vld [vmem:[#allocation11 + $0x4d0] sm:$0xff] }
 0xd51   :  { %v2844_v9 = vpop.eup %2843  ;;  %v2724_v41 = vpack.c.bf16 %v1742_v58, %v1740_v37  ;;  %v1772_v37 = vld [vmem:[#allocation11 + $0x5c0] sm:$0xff]  ;;  %v1774_v58 = vld [vmem:[#allocation11 + $0x5d0] sm:$0xff] }
 0xd52   :  { %v1495_v54 = vadd.f32 1.0, %v2844_v9  ;;  %v1745_v9 = vld [vmem:[#allocation11 + $0x4e8] sm:$0xff] }
 0xd53   :  { %2725 = vmatpush1.bf16.msra.mxu1 %v2724_v41  ;;  %v1779_v41 = vld [vmem:[#allocation11 + $0x5f8] sm:$0xff] }
 0xd54   :  { %2847 = vrcp.f32 %v1495_v54  ;;  %v1747_v54 = vld [vmem:[#allocation11 + $0x4f8] sm:$0xff] }
 0xd5a   :  { %v2846_v39 = vpop.eup %2845 }
 0xd5b   :  { %1500 = vst [vmem:[#allocation14 + $0x8] sm:$0xff] %v2846_v39  ;;  %v1634_v31 = vpop.f32.mrb[18].mxu0  ;;  %v1746_v39 = vld [vmem:[#allocation11 + $0x4f0] sm:$0xff] }
 0xd5c   :  { %v3507_v42 = vadd.f32 %v1634_v31, %v1561_v27  ;;  %v1636_v43 = vpop.f32.mrb[19].mxu0  ;;  %v1749_v31 = vld [vmem:[#allocation11 + $0x508] sm:$0xff] }
 0xd5d   :  { %v3509_v44 = vadd.f32 %v1636_v43, %v1565_v30  ;;  %v1751_v43 = vld [vmem:[#allocation11 + $0x518] sm:$0xff] }
 0xd5e   :  { %v2848_v18 = vpop.eup %2847  ;;  %v1645_v25 = vmax.f32 %v3507_v42, 0.0 }
 0xd5f   :  { %1501 = vst [vmem:[#allocation14 + $0x20] sm:$0xff] %v2848_v18  ;;  %v1646_v17 = vmax.f32 %v3509_v44, 0.0  ;;  %v1640_v16 = vpop.f32.mrb[20].mxu0 }
 0xd60   :  { %v3513_v38 = vadd.f32 %v1640_v16, %v1561_v27  ;;  %v1642_v63 = vpop.f32.mrb[21].mxu0  ;;  %v2726_v27 = vpack.c.bf16 %v1747_v54, %v1745_v9  ;;  %v2730_v16 = vpack.c.bf16 %v1751_v43, %v1749_v31  ;;  %v2756_v9 = vpack.c.bf16 %v1774_v58, %v1772_v37  ;;  %v1777_v54 = vld [vmem:[#allocation11 + $0x5e8] sm:$0xff]  ;;  %v1944_v37 = vld [vmem:[#allocation13 + $0x218] sm:$0xff]  ;;  %v1961_v58 = vld [vmem:[#allocation13 + $0x2a0] sm:$0xff] }
 0xd61   :  { %v3515_v45 = vadd.f32 %v1642_v63, %v1565_v30  ;;  %v1653_v61 = vadd.f32 %v1646_v17, %v1645_v25  ;;  %v1744_v30 = vld [vmem:[#allocation11 + $0x4e0] sm:$0xff] }
 0xd62   :  { %v1647_v0 = vmax.f32 %v3513_v38, 0.0  ;;  %v2728_v18 = vpack.c.bf16 %v1746_v39, %v1744_v30  ;;  %2727 = vmatprep.subr.bf16.mxu1 %v2726_v27  ;;  %v1748_v63 = vld [vmem:[#allocation11 + $0x500] sm:$0xff]  ;;  %v2758_v30 = vpack.c.bf16 %v1779_v41, %v1777_v54  ;;  %v1778_v39 = vld [vmem:[#allocation11 + $0x5f0] sm:$0xff] }
 0xd63   :  { %v1648_v46 = vmax.f32 %v3515_v45, 0.0  ;;  %1654 = vadd.xlane.f32.xlu1 %v1653_v61  ;;  %v1750_v61 = vld [vmem:[#allocation11 + $0x510] sm:$0xff]  ;;  %v1760_v38 = vld [vmem:[#allocation11 + $0x560] sm:$0xff]  ;;  %v1765_v45 = vld [vmem:[#allocation11 + $0x588] sm:$0xff] }
 0xd64   :  { %2729 = vmatpush1.bf16.msra.mxu1 %v2728_v18  ;;  %v2732_v52 = vpack.c.bf16 %v1750_v61, %v1748_v63  ;;  %v1776_v27 = vld [vmem:[#allocation11 + $0x5e0] sm:$0xff] }
 0xd65   :  { %v1656_v49 = vadd.f32 %v1648_v46, %v1647_v0  ;;  %2731 = vmatprep.subr.bf16.mxu1 %v2730_v16  ;;  %v2760_v31 = vpack.c.bf16 %v1778_v39, %v1776_v27  ;;  %v1945_v27 = vld [vmem:[#allocation13 + $0x220] sm:$0xff] }
 0xd67   :  { %1657 = vadd.xlane.f32.xlu0 %v1656_v49  ;;  %v1753_v49 = vld [vmem:[#allocation11 + $0x528] sm:$0xff] }
 0xd68   :  { %v2734_v34 = vpack.c.bf16 %v1755_v50, %v1753_v49  ;;  %2733 = vmatpush1.bf16.msra.mxu1 %v2732_v52  ;;  %v2117_v50 = vld [vmem:[%s3623_s8 + $0x4] sm:$0x3] }
 0xd69   :  { %v2118_v52 = vld [vmem:[%s3624_s9 + $0x4] sm:$0x3]  ;;  %v1693_v53 = vrot.slane %v2117_v50, %v3284_v13 }
 0xd6a   :  { %2735 = vmatprep.subr.bf16.mxu1 %v2734_v34  ;;  %v1689_v34 = vrot.slane %v2117_v50, %v3282_v12 }
 0xd6c   :  { %2737 = vmatpush1.bf16.msra.mxu1 %v2736_v21  ;;  %v1704_v21 = vrot.slane %v2118_v52, %v3282_v12 }
 0xd6d   :  { %2739 = vmatprep.subr.bf16.mxu1 %v2738_v48  ;;  %v1708_v48 = vrot.slane %v2118_v52, %v3284_v13 }
 0xd70   :  { %2741 = vmatpush1.bf16.msra.mxu1 %v2740_v56 }
 0xd71   :  { %2743 = vmatprep.subr.bf16.mxu1 %v2742_v10 }
 0xdf0   :  { %v1655_v57 = vpop.xlane.xlu1 %1654 }
 0xdf1   :  { %v1659_v59 = vmul.f32 0.00390625, %v1655_v57 }
 0xdf3   :  { %v3529_v23 = vsub.f32 %v1645_v25, %v1659_v59  ;;  %v3533_v40 = vsub.f32 %v1646_v17, %v1659_v59 }
 0xdf4   :  { %v1658_v60 = vpop.xlane.xlu0 %1657 }
 0xdf5   :  { %v1660_v28 = vmul.f32 0.00390625, %v1658_v60  ;;  %v1665_v62 = vmul.f32 %v3529_v23, %v3529_v23  ;;  %v1666_v1 = vmul.f32 %v3533_v40, %v3533_v40 }
 0xdf7   :  { %v3541_v2 = vsub.f32 %v1647_v0, %v1660_v28  ;;  %v3545_v42 = vsub.f32 %v1648_v46, %v1660_v28  ;;  %v1669_v25 = vadd.f32 %v1666_v1, %v1665_v62  ;;  %v1762_v0 = vld [vmem:[#allocation11 + $0x570] sm:$0xff]  ;;  %v1767_v46 = vld [vmem:[#allocation11 + $0x598] sm:$0xff] }
 0xdf8   :  { %v2744_v11 = vpack.c.bf16 %v1762_v0, %v1760_v38  ;;  %v2746_v14 = vpack.c.bf16 %v1767_v46, %v1765_v45 }
 0xdf9   :  { %1670 = vadd.xlane.f32.xlu1 %v1669_v25  ;;  %v1667_v44 = vmul.f32 %v3541_v2, %v3541_v2  ;;  %v1668_v17 = vmul.f32 %v3545_v42, %v3545_v42 }
 0xdfa   :  { %2745 = vmatpush1.bf16.msra.mxu1 %v2744_v11 }
 0xdfb   :  { %v1672_v4 = vadd.f32 %v1668_v17, %v1667_v44  ;;  %2747 = vmatprep.subr.bf16.mxu1 %v2746_v14 }
 0xdfd   :  { %1673 = vadd.xlane.f32.xlu0 %v1672_v4 }
 0xdfe   :  { %2749 = vmatpush1.bf16.msra.mxu1 %v2748_v22  ;;  %v1957_v22 = vld [vmem:[#allocation13 + $0x280] sm:$0xff] }
 0xdff   :  { %2751 = vmatprep.subr.bf16.mxu1 %v2750_v26  ;;  %v2762_v26 = vpack.c.bf16 %v1958_v24, %v1957_v22 }
 0xe01   :  { %2763 = vmatprep.subr.bf16.mxu0 %v2762_v26 }
 0xe02   :  { %2753 = vmatpush1.bf16.msra.mxu1 %v2752_v33  ;;  %v1960_v33 = vld [vmem:[#allocation13 + $0x298] sm:$0xff]  ;;  %2765 = vmatpush3.bf16.msra.mxu0 %v2764_v36  ;;  %v2121_v36 = vld [vmem:[%s3628_s13 + $0x4] sm:$0x3] }
 0xe03   :  { %2755 = vmatprep.subr.bf16.mxu1 %v2754_v8  ;;  %v2766_v7 = vpack.c.bf16 %v1960_v33, %v1959_v32  ;;  %v1943_v8 = vld [vmem:[#allocation13 + $0x210] sm:$0xff]  ;;  %v2120_v33 = vld [vmem:[%s3627_s12 + $0x4] sm:$0x3] }
 0xe04   :  { %v2768_v54 = vpack.c.bf16 %v1944_v37, %v1943_v8  ;;  %v1918_v8 = vrot.slane %v2120_v33, %v3284_v13 }
 0xe05   :  { %2767 = vmatprep.subr.bf16.mxu0 %v2766_v7  ;;  %v1914_v7 = vrot.slane %v2120_v33, %v3282_v12 }
 0xe06   :  { %2757 = vmatpush1.bf16.msra.mxu1 %v2756_v9  ;;  %v1962_v9 = vld [vmem:[#allocation13 + $0x2a8] sm:$0xff]  ;;  %2769 = vmatpush3.bf16.msra.mxu0 %v2768_v54  ;;  %v1929_v54 = vrot.slane %v2121_v36, %v3282_v12 }
 0xe07   :  { %2759 = vmatprep.subr.bf16.mxu1 %v2758_v30  ;;  %v2770_v41 = vpack.c.bf16 %v1962_v9, %v1961_v58  ;;  %v1946_v30 = vld [vmem:[#allocation13 + $0x228] sm:$0xff] }
 0xe08   :  { %v2772_v39 = vpack.c.bf16 %v1946_v30, %v1945_v27 }
 0xe09   :  { %2771 = vmatprep.subr.bf16.mxu0 %v2770_v41  ;;  %v1933_v41 = vrot.slane %v2121_v36, %v3284_v13 }
 0xe0a   :  { %2761 = vmatpush1.bf16.msra.mxu1 %v2760_v31  ;;  %2773 = vmatpush3.bf16.msra.mxu0 %v2772_v39 }
 0xe86   :  { %v1671_v43 = vpop.xlane.xlu1 %1670 }
 0xe87   :  { %v1675_v18 = vmul.f32 0.00390625, %v1671_v43 }
 0xe89   :  { %v1677_v16 = vadd.f32 1e-05, %v1675_v18 }
 0xe8a   :  { %v1674_v63 = vpop.xlane.xlu0 %1673 }
 0xe8b   :  { %2849 = vrsqrt.f32 %v1677_v16  ;;  %v1676_v61 = vmul.f32 0.00390625, %v1674_v63 }
 0xe8d   :  { %v1678_v49 = vadd.f32 1e-05, %v1676_v61 }
 0xe8f   :  { %2851 = vrsqrt.f32 %v1678_v49 }
 0xe95   :  { %v2850_v35 = vpop.eup %2849 }
 0xe96   :  { %v1681_v51 = vmul.f32 %v2850_v35, %v3529_v23  ;;  %v1682_v20 = vmul.f32 %v2850_v35, %v3533_v40  ;;  %v2119_v40 = vld [vmem:[%s3626_s11 + $0x4] sm:$0x3] }
 0xe97   :  { %v1786_v44 = vrot.slane %v2119_v40, %v3282_v12  ;;  %v1790_v17 = vrot.slane %v2119_v40, %v3284_v13  ;;  %v1968_v40 = vld [vmem:[#allocation13 + $0x2d8] sm:$0xff]  ;;  %v2123_v13 = vld [vmem:[%s3630_s15 + $0x2] ss:$0 sm:$0xff]  ;;  %s3019_s15 = scalar_lea.vmem %s2076_s14, 768 }
 0xe98   :  { %v1696_v55 = vmul.f32 %v1689_v34, %v1681_v51  ;;  %v1697_v47 = vmul.f32 %v1693_v53, %v1682_v20  ;;  %p3020_p0 = scmp.ne.s32.totalorder %s2076_s14, %s3019_s15  ;;  %p3025_p2 = scmp.lt.s32.totalorder %s3019_s15, %s3019_s15 }
 0xe99   :  { %v2852_v56 = vpop.eup %2851 }
 0xe9a   :  { %v1711_v57 = vadd.f32 %v1704_v21, %v1696_v55  ;;  %v1712_v59 = vadd.f32 %v1708_v48, %v1697_v47  ;;  %v1684_v60 = vmul.f32 %v2852_v56, %v3545_v42  ;;  %v1683_v28 = vmul.f32 %v2852_v56, %v3541_v2  ;;  %v1947_v47 = vld [vmem:[#allocation13 + $0x230] sm:$0xff]  ;;  %v1948_v56 = vld [vmem:[#allocation13 + $0x238] sm:$0xff]  ;;  %p3026_p3 = por %p3025_p2, %p3024_p1 }
 0xe9c   :  { %1857 = vmatprep.mubr.f32.mxu1 %v1712_v59  ;;  %v1699_v62 = vmul.f32 %v1693_v53, %v1684_v60  ;;  %v1698_v1 = vmul.f32 %v1689_v34, %v1683_v28  ;;  %v1965_v59 = vld [vmem:[#allocation13 + $0x2c0] sm:$0xff]  ;;  %v1966_v60 = vld [vmem:[#allocation13 + $0x2c8] sm:$0xff]  ;;  %p3027_p4 = pnand %p3026_p3, %p3020_p0 }
 0xe9d   :  { %1858 = vmatmul.mubr.f32.vlgmr.msra.gmra.mrb[10].mxu1 %v1711_v57  ;;  %v2776_v57 = vpack.c.bf16 %v1948_v56, %v1947_v47  ;;  %v2778_v28 = vpack.c.bf16 %v1966_v60, %v1965_v59 }
 0xe9e   :  { %v1714_v23 = vadd.f32 %v1708_v48, %v1699_v62  ;;  %v1713_v25 = vadd.f32 %v1704_v21, %v1698_v1  ;;  %v1963_v21 = vld [vmem:[#allocation13 + $0x2b0] sm:$0xff]  ;;  %v1964_v48 = vld [vmem:[#allocation13 + $0x2b8] sm:$0xff]  ;;  %v1949_v62 = vld [vmem:[#allocation13 + $0x240] sm:$0xff] }
 0xe9f   :  { %v2774_v55 = vpack.c.bf16 %v1964_v48, %v1963_v21  ;;  %v1950_v1 = vld [vmem:[#allocation13 + $0x248] sm:$0xff] }
 0xea0   :  { %1863 = vmatprep.mubr.f32.mxu1 %v1714_v23  ;;  %v2780_v23 = vpack.c.bf16 %v1950_v1, %v1949_v62 }
 0xea1   :  { %1864 = vmatmul.mubr.f32.gmra.mrb[12].mxu1 %v1713_v25  ;;  %2775 = vmatprep.subr.bf16.mxu0 %v2774_v55  ;;  %v1967_v25 = vld [vmem:[#allocation13 + $0x2d0] sm:$0xff] }
 0xea2   :  { %2777 = vmatpush3.bf16.msra.mxu0 %v2776_v57 }
 0xea3   :  { %2779 = vmatprep.subr.bf16.mxu0 %v2778_v28 }
 0xea6   :  { %2781 = vmatpush3.bf16.msra.mxu0 %v2780_v23 }
 0xf70   :  { %v1859_v4 = vpop.f32.mrb[10].mxu1 }
 0xf71   :  { %v1860_v42 = vadd.f32 %v1859_v4, %v1786_v44  ;;  %v1861_v5 = vpop.f32.mrb[11].mxu1  ;;  %v1952_v4 = vld [vmem:[#allocation13 + $0x258] sm:$0xff] }
 0xf72   :  { %v1862_v2 = vadd.f32 %v1861_v5, %v1790_v17  ;;  %v1969_v5 = vld [vmem:[#allocation13 + $0x2e0] sm:$0xff] }
 0xf73   :  { %v1870_v6 = vmax.f32 %v1860_v42, 0.0 }
 0xf74   :  { %v1871_v10 = vmax.f32 %v1862_v2, 0.0  ;;  %v1865_v38 = vpop.f32.mrb[12].mxu1  ;;  %v1970_v2 = vld [vmem:[#allocation13 + $0x2e8] sm:$0xff] }
 0xf75   :  { %v1866_v0 = vadd.f32 %v1865_v38, %v1786_v44  ;;  %v1867_v11 = vpop.f32.mrb[13].mxu1  ;;  %v2782_v44 = vpack.c.bf16 %v1968_v40, %v1967_v25  ;;  %v1954_v38 = vld [vmem:[#allocation13 + $0x268] sm:$0xff] }
 0xf76   :  { %v1868_v45 = vadd.f32 %v1867_v11, %v1790_v17  ;;  %v1878_v46 = vadd.f32 %v1871_v10, %v1870_v6  ;;  %v1951_v17 = vld [vmem:[#allocation13 + $0x250] sm:$0xff] }
 0xf77   :  { %v1872_v14 = vmax.f32 %v1866_v0, 0.0  ;;  %v2784_v42 = vpack.c.bf16 %v1952_v4, %v1951_v17  ;;  %2783 = vmatprep.subr.bf16.mxu0 %v2782_v44  ;;  %v1971_v11 = vld [vmem:[#allocation13 + $0x2f0] sm:$0xff] }
 0xf78   :  { %v1873_v15 = vmax.f32 %v1868_v45, 0.0  ;;  %1879 = vadd.xlane.f32.xlu1 %v1878_v46  ;;  %v1972_v45 = vld [vmem:[#allocation13 + $0x2f8] sm:$0xff]  ;;  %v1955_v46 = vld [vmem:[#allocation13 + $0x270] sm:$0xff] }
 0xf79   :  { %2785 = vmatpush3.bf16.msra.mxu0 %v2784_v42 }
 0xf7a   :  { %v1881_v19 = vadd.f32 %v1873_v15, %v1872_v14 }
 0xf7c   :  { %1882 = vadd.xlane.f32.xlu0 %v1881_v19 }
0x1005   :  { %v1880_v31 = vpop.xlane.xlu1 %1879 }
0x1006   :  { %v1884_v43 = vmul.f32 0.00390625, %v1880_v31 }
0x1008   :  { %v3570_v18 = vsub.f32 %v1870_v6, %v1884_v43  ;;  %v3572_v16 = vsub.f32 %v1871_v10, %v1884_v43  ;;  %v2786_v6 = vpack.c.bf16 %v1970_v2, %v1969_v5  ;;  %v1953_v10 = vld [vmem:[#allocation13 + $0x260] sm:$0xff] }
0x1009   :  { %v1883_v63 = vpop.xlane.xlu0 %1882  ;;  %v2788_v0 = vpack.c.bf16 %v1954_v38, %v1953_v10 }
0x100a   :  { %v1885_v61 = vmul.f32 0.00390625, %v1883_v63  ;;  %v1890_v49 = vmul.f32 %v3570_v18, %v3570_v18  ;;  %v1891_v50 = vmul.f32 %v3572_v16, %v3572_v16  ;;  %2787 = vmatprep.subr.bf16.mxu0 %v2786_v6 }
0x100b   :  { %2789 = vmatpush3.bf16.msra.mxu0 %v2788_v0 }
0x100c   :  { %v3578_v52 = vsub.f32 %v1872_v14, %v1885_v61  ;;  %v3580_v34 = vsub.f32 %v1873_v15, %v1885_v61  ;;  %v1894_v53 = vadd.f32 %v1891_v50, %v1890_v49  ;;  %v2790_v14 = vpack.c.bf16 %v1972_v45, %v1971_v11  ;;  %v1956_v15 = vld [vmem:[#allocation13 + $0x278] sm:$0xff] }
0x100d   :  { %v2792_v19 = vpack.c.bf16 %v1956_v15, %v1955_v46 }
0x100e   :  { %1895 = vadd.xlane.f32.xlu1 %v1894_v53  ;;  %v1892_v35 = vmul.f32 %v3578_v52, %v3578_v52  ;;  %v1893_v51 = vmul.f32 %v3580_v34, %v3580_v34  ;;  %2791 = vmatprep.subr.bf16.mxu0 %v2790_v14 }
0x100f   :  { %2793 = vmatpush3.bf16.msra.mxu0 %v2792_v19 }
0x1010   :  { %v1897_v20 = vadd.f32 %v1893_v51, %v1892_v35 }
0x1012   :  { %1898 = vadd.xlane.f32.xlu0 %v1897_v20 }
0x109b   :  { %v1896_v22 = vpop.xlane.xlu1 %1895 }
0x109c   :  { %v1900_v24 = vmul.f32 0.00390625, %v1896_v22 }
0x109e   :  { %v1902_v3 = vadd.f32 1e-05, %v1900_v24 }
0x109f   :  { %v1899_v26 = vpop.xlane.xlu0 %1898 }
0x10a0   :  { %2853 = vrsqrt.f32 %v1902_v3  ;;  %v1901_v29 = vmul.f32 0.00390625, %v1899_v26 }
0x10a2   :  { %v1903_v32 = vadd.f32 1e-05, %v1901_v29 }
0x10a4   :  { %2855 = vrsqrt.f32 %v1903_v32 }
0x10aa   :  { %v2854_v37 = vpop.eup %2853 }
0x10ab   :  { %v1906_v58 = vmul.f32 %v2854_v37, %v3570_v18  ;;  %v1907_v9 = vmul.f32 %v2854_v37, %v3572_v16 }
0x10ad   :  { %v1921_v27 = vmul.f32 %v1914_v7, %v1906_v58  ;;  %v1922_v30 = vmul.f32 %v1918_v8, %v1907_v9 }
0x10ae   :  { %v2856_v39 = vpop.eup %2855 }
0x10af   :  { %v1936_v31 = vadd.f32 %v1929_v54, %v1921_v27  ;;  %v1937_v43 = vadd.f32 %v1933_v41, %v1922_v30  ;;  %v1909_v63 = vmul.f32 %v2856_v39, %v3580_v34  ;;  %v1908_v61 = vmul.f32 %v2856_v39, %v3578_v52 }
0x10b1   :  { %2045 = vmatprep.mubr.f32.mxu0 %v1937_v43  ;;  %v1924_v49 = vmul.f32 %v1918_v8, %v1909_v63  ;;  %v1923_v50 = vmul.f32 %v1914_v7, %v1908_v61 }
0x10b2   :  { %2046 = vmatmul.mubr.f32.vlgmr.msra.gmra.mrb[22].mxu0 %v1936_v31 }
0x10b3   :  { %v1939_v18 = vadd.f32 %v1933_v41, %v1924_v49  ;;  %v1938_v53 = vadd.f32 %v1929_v54, %v1923_v50 }
0x10b5   :  { %2050 = vmatprep.mubr.f32.mxu0 %v1939_v18 }
0x10b6   :  { %2051 = vmatmul.mubr.f32.gmra.mrb[24].mxu0 %v1938_v53 }
0x1185   :  { %v2270_v12 = vpop.f32.mrb[22].mxu0 }
0x1186   :  { %v2271_v16 = vpop.f32.mrb[23].mxu0 }
0x1187   :  { %v2272_v35 = vadd.f32 %v2271_v16, %v2270_v12 }
0x1189   :  { %v2048_v51 = vadd.f32 %v2272_v35, %v2123_v13  ;;  %v2273_v20 = vpop.f32.mrb[24].mxu0 }
0x118a   :  { %v2274_v34 = vpop.f32.mrb[25].mxu0 }
0x118b   :  { %v2124_v21 = vmul.f32 -1.442695, %v2048_v51  ;;  %v2275_v52 = vadd.f32 %v2274_v34, %v2273_v20 }
0x118d   :  { %2857 = vpow2.f32 %v2124_v21  ;;  %v2053_v48 = vadd.f32 %v2275_v52, %v2123_v13 }
0x118f   :  { %v2125_v55 = vmul.f32 -1.442695, %v2053_v48 }
0x1191   :  { %2859 = vpow2.f32 %v2125_v55 }
0x1197   :  { %v2858_v47 = vpop.eup %2857 }
0x1198   :  { %v2062_v56 = vadd.f32 1.0, %v2858_v47 }
0x119a   :  { %2861 = vrcp.f32 %v2062_v56 }
0x119b   :  { %v2860_v57 = vpop.eup %2859 }
0x119c   :  { %v2063_v59 = vadd.f32 1.0, %v2860_v57 }
0x119e   :  { %2863 = vrcp.f32 %v2063_v59 }
0x11a4   :  { %v2862_v60 = vpop.eup %2861 }
0x11a5   :  { %2068 = vst [vmem:[#allocation14 + $0x10] sm:$0xff] %v2862_v60 }
0x11a8   :  { %v2864_v28 = vpop.eup %2863 }
0x11a9   :  { %2069 = vst [vmem:[#allocation14 + $0x28] sm:$0xff] %v2864_v28 }
0x11aa   :  { %3030 = shalt.err (!%p3027_p4)
}
0x11ab   :  { %s3031_s28 = scalar_lea.hbm %s3631_s16, 768 }
0x11ac   :  { %p3032_p5 = scmp.ne.s32.totalorder %s3631_s16, %s3031_s28  ;;  %p3035_p6 = scmp.lt.u32.totalorder %s3031_s28, %s3631_s16 }
0x11ae   :  { %p3037_p7 = pnand %p3035_p6, %p3032_p5 }
0x11b0   :  { %3040 = shalt.err (!%p3037_p7)
}
0x11b1   :  { %s3067_s1 = smov 384   ;;  %s3068_s27 = smov 24  }
0x11b2   :  { %2081 = dma.vmem_to_hbm [thread:$0]  %s2076_s14, 768, %s3631_s16, [#allocation4], %s3067_s1, %s3067_s1, %s3068_s27  }
0x11b3   :  { %3049 = dma.done.wait [#allocation4], 768  }
0x11b4   :  { %3050 = vsyncadd [#allocation4], 4294966528 }
0x11b5   :  { %2085 = vsyncpa [#allocation3], 1 }
0x11b6   :  { %2086 = vsyncpa [#allocation6], 1 }
0x11b7   :  { %2087 = vsyncpa [#allocation9], 1 }
0x11b8   :  { %2088 = vsyncpa [#allocation12], 1 }
0x11b9   :  { %2089 = vsyncpa [#allocation4], 1 }

</bundles_post_ra>
